<compile_context>
chip_gen: v6e
topology: v6e:2x2x1
jax: 0.10.0
libtpu: 0.0.40
codegen_flags: <defaults>
</compile_context>

<pallas_src>
import functools

import jax
import jax.numpy as jnp
from jax.experimental import pallas as pl
from jax.experimental.pallas import tpu as pltpu


def _round_up(x, m):
    return (x + m - 1) // m * m


def _vmem_usable_bytes():
    """~3/4 of physical VMEM (48 MiB on v7x, 96 MiB on v5e/v6e), safe fallback."""
    cap = 64 * 1024 * 1024  # conservative default (v7x-sized)
    try:
        info = pltpu.get_tpu_info()
        cap = int(getattr(info, "vmem_capacity_bytes", cap))
    except Exception:
        pass
    usable = (cap * 3) // 4
    return max(32 * 1024 * 1024, min(usable, 112 * 1024 * 1024))


def _choose_time_chunk(T, Bt, Dp, Hp, Cp, L, usable):
    """Largest per-chunk timestep count whose resident VMEM fits the budget."""
    w_elems = Dp * 4 * Hp + (2 * L - 1) * Hp * 4 * Hp + Hp * Cp
    fixed = 2 * (2 * w_elems)                 # bf16 weights, x2 buffering slack
    fixed += 2 * L * Bt * Hp * 4              # h/c carry state (f32)
    fixed += 2 * 2 * Bt * Cp * 4              # logits block (double-buffered)
    fixed += 512 * 4 * Hp * 4                 # f32 temp of row-blocked projection
    fixed += 4 * (1 << 20)                    # compiler temporaries headroom
    per_t = Bt * (2 * Dp * 2                  # x chunk (bf16, double-buffered)
                  + 4 * Hp * 2                # pg projection scratch (bf16)
                  + (Hp * 4 if L > 1 else 0)) # inter-layer hidden chunk (f32)
    avail = usable - fixed
    tc = avail // per_t if avail > 0 else 8
    return int(max(8, min(tc, 1024, max(T, 8))))


# ------------------------------ Fused LSTM kernel ------------------------------
def _fused_lstm_kernel(T, Tc, num_layers, Bt, Hp, unroll, *refs):
    """One grid step = one (batch tile, time chunk). All layers + FC head fused.

    refs = x_ref,
           [wih_l, whh_l, bias_l] * num_layers,
           wfc_ref, bfc_ref,
           out_ref,
           h_st, c_st, buf_ref, pg_ref            (scratch)
    """
    x_ref = refs[0]
    layer_refs = [refs[1 + 3 * l: 4 + 3 * l] for l in range(num_layers)]
    wfc_ref = refs[1 + 3 * num_layers]
    bfc_ref = refs[2 + 3 * num_layers]
    out_ref = refs[3 + 3 * num_layers]
    h_st, c_st, buf_ref, pg_ref = refs[4 + 3 * num_layers:]

    chunk = pl.program_id(1)
    n_chunks = pl.num_programs(1)
    t0 = chunk * Tc

    @pl.when(chunk == 0)
    def _init():
        h_st[...] = jnp.zeros(h_st.shape, h_st.dtype)
        c_st[...] = jnp.zeros(c_st.shape, c_st.dtype)

    def _sigmoid(v):  # 1 EUP op instead of exp+recip
        return 0.5 * jnp.tanh(0.5 * v) + 0.5

    rows_total = Tc * Bt
    rblk = min(rows_total, max(Bt, (512 // Bt) * Bt))  # bounds the f32 dot temp

    for l in range(num_layers):
        wih_ref, whh_ref, b_ref = layer_refs[l]
        wih = wih_ref[...]            # (d_in_p, 4Hp) bf16
        whh = whh_ref[...]            # (Hp, 4Hp)     bf16
        bias = b_ref[...]             # (1, 4Hp)      f32
        d_in = wih_ref.shape[0]

        # ---- Hoisted per-chunk input projection (row-blocked, bias folded),
        # ---- stored bf16; the MXU dot still accumulates in f32. ----
        r = 0
        while r < rows_total:
            n = min(rblk, rows_total - r)
            if l == 0:
                lhs = x_ref[r // Bt:(r + n) // Bt].reshape(n, d_in)
            else:
                lhs = buf_ref[r:r + n, :].astype(jnp.bfloat16)
            pg_ref[r:r + n, :] = (
                jnp.dot(lhs, wih, preferred_element_type=jnp.float32) + bias
            ).astype(pg_ref.dtype)
            r += n

        write_seq = l < num_layers - 1

        def step(t, carry, whh=whh, write_seq=write_seq):
            h_prev, c_prev = carry                     # f32 (Bt, Hp)
            row = pl.multiple_of(t * Bt, Bt)
            gates = pg_ref[pl.ds(row, Bt), :].astype(jnp.float32) + jnp.dot(
                h_prev.astype(jnp.bfloat16), whh,
                preferred_element_type=jnp.float32)
            i_g = _sigmoid(gates[:, 0 * Hp:1 * Hp])
            f_g = _sigmoid(gates[:, 1 * Hp:2 * Hp])
            g_g = jnp.tanh(gates[:, 2 * Hp:3 * Hp])
            o_g = _sigmoid(gates[:, 3 * Hp:4 * Hp])
            c_new = f_g * c_prev + i_g * g_g
            h_new = o_g * jnp.tanh(c_new)
            valid = (t0 + t) < T       # mask padded tail timesteps (last chunk)
            h_new = jnp.where(valid, h_new, h_prev)
            c_new = jnp.where(valid, c_new, c_prev)
            if write_seq:              # next layer's input, stays in VMEM
                buf_ref[pl.ds(row, Bt), :] = h_new
            return h_new, c_new

        h_last, c_last = jax.lax.fori_loop(
            0, Tc, step, (h_st[l], c_st[l]), unroll=unroll)
        h_st[l] = h_last
        c_st[l] = c_last

    # Fused FC head: only the final hidden state of the top layer is projected.
    @pl.when(chunk == n_chunks - 1)
    def _head():
        out_ref[...] = (
            jnp.dot(h_st[num_layers - 1].astype(jnp.bfloat16), wfc_ref[...],
                    preferred_element_type=jnp.float32)
            + bfc_ref[...]
        )


# ------------------------------ Parameter creation ------------------------------
def init_params(key, input_size, hidden_size, num_layers, num_classes):
    """uniform(-1/sqrt(H), 1/sqrt(H)) init like nn.LSTM / nn.Linear, stored
    pre-transposed, zero-padded to TPU-friendly shapes, MXU operands in bf16."""
    H = hidden_size
    Hp = _round_up(H, 128)
    Dp = _round_up(input_size, 128)
    Cp = _round_up(num_classes, 128)
    k = 1.0 / (float(H) ** 0.5)

    params = {"layers": []}
    for layer in range(num_layers):
        d_in = input_size if layer == 0 else H
        d_in_p = Dp if layer == 0 else Hp
        key, k1, k2, k3, k4 = jax.random.split(key, 5)
        w_ih = jax.random.uniform(k1, (4 * H, d_in), jnp.float32, -k, k)
        w_hh = jax.random.uniform(k2, (4 * H, H), jnp.float32, -k, k)
        b_ih = jax.random.uniform(k3, (4 * H,), jnp.float32, -k, k)
        b_hh = jax.random.uniform(k4, (4 * H,), jnp.float32, -k, k)
        b = b_ih + b_hh

        wih_t = jnp.zeros((d_in_p, 4 * Hp), jnp.float32)
        whh_t = jnp.zeros((Hp, 4 * Hp), jnp.float32)
        bias = jnp.zeros((1, 4 * Hp), jnp.float32)
        for g in range(4):  # PyTorch gate order (i, f, g, o), per-gate padded
            wih_t = wih_t.at[:d_in, g * Hp:g * Hp + H].set(w_ih[g * H:(g + 1) * H, :].T)
            whh_t = whh_t.at[:H, g * Hp:g * Hp + H].set(w_hh[g * H:(g + 1) * H, :].T)
            bias = bias.at[0, g * Hp:g * Hp + H].set(b[g * H:(g + 1) * H])

        params["layers"].append({
            "wih_t": wih_t.astype(jnp.bfloat16),   # (D_in_p, 4Hp)
            "whh_t": whh_t.astype(jnp.bfloat16),   # (Hp, 4Hp)
            "bias": bias,                          # (1, 4Hp) f32
        })

    key, k5, k6 = jax.random.split(key, 3)
    w_fc = jax.random.uniform(k5, (num_classes, H), jnp.float32, -k, k)
    b_fc = jax.random.uniform(k6, (num_classes,), jnp.float32, -k, k)
    wfc_t = jnp.zeros((Hp, Cp), jnp.float32).at[:H, :num_classes].set(w_fc.T)
    bfc = jnp.zeros((1, Cp), jnp.float32).at[0, :num_classes].set(b_fc)
    params["wfc_t"] = wfc_t.astype(jnp.bfloat16)   # (Hp, Cp)
    params["bfc"] = bfc                            # (1, Cp) f32
    return params


# ----------------------------------- Forward ------------------------------------
@functools.partial(jax.jit, static_argnames=("num_classes",))
def lstm_classifier_forward(x, params, *, num_classes):
    """x: (B, T, input_size) batch-first, like the PyTorch module. Returns (B, C)."""
    B, T, D = x.shape
    layers = params["layers"]
    L = len(layers)
    Hp = layers[0]["whh_t"].shape[0]
    Dp = layers[0]["wih_t"].shape[0]
    Cp = params["wfc_t"].shape[1]

    # Batch padding / tiling: two batch tiles (parallel axis -> v7x's 2 TCs)
    # once the padded batch reaches 16 rows; otherwise a single 8-row tile.
    if B > 8:
        Bp = _round_up(B, 16)
        n_btiles, Bt = 2, _round_up(B, 16) // 2
    else:
        Bp, n_btiles, Bt = 8, 1, 8

    usable = _vmem_usable_bytes()
    Tc = _choose_time_chunk(T, Bt, Dp, Hp, Cp, L, usable)
    NC = -(-T // Tc)
    Tp = NC * Tc
    unroll = min(8, Tc)

    # time-major, zero-padded (T -> Tp, B -> Bp, D -> Dp), bf16 stream
    x_tm = jnp.transpose(x, (1, 0, 2))
    x_tm = jnp.pad(x_tm, ((0, Tp - T), (0, Bp - B), (0, Dp - D))).astype(jnp.bfloat16)

    in_specs = [pl.BlockSpec((Tc, Bt, Dp), lambda b, c: (c, b, 0))]
    args = [x_tm]
    for lp in layers:
        d_in_p = lp["wih_t"].shape[0]
        in_specs += [
            pl.BlockSpec((d_in_p, 4 * Hp), lambda b, c: (0, 0)),
            pl.BlockSpec((Hp, 4 * Hp), lambda b, c: (0, 0)),
            pl.BlockSpec((1, 4 * Hp), lambda b, c: (0, 0)),
        ]
        args += [lp["wih_t"], lp["whh_t"], lp["bias"]]
    in_specs += [
        pl.BlockSpec((Hp, Cp), lambda b, c: (0, 0)),
        pl.BlockSpec((1, Cp), lambda b, c: (0, 0)),
    ]
    args += [params["wfc_t"], params["bfc"]]

    buf_rows = Tc * Bt if L > 1 else 8
    scratch_shapes = [
        pltpu.VMEM((L, Bt, Hp), jnp.float32),          # h state, all layers
        pltpu.VMEM((L, Bt, Hp), jnp.float32),          # c state, all layers
        pltpu.VMEM((buf_rows, Hp), jnp.float32),       # inter-layer hidden chunk
        pltpu.VMEM((Tc * Bt, 4 * Hp), jnp.bfloat16),   # hoisted projection chunk
    ]

    kern = functools.partial(_fused_lstm_kernel, T, Tc, L, Bt, Hp, unroll)
    logits_p = pl.pallas_call(
        kern,
        out_shape=jax.ShapeDtypeStruct((Bp, Cp), jnp.float32),
        grid_spec=pltpu.PrefetchScalarGridSpec(
            num_scalar_prefetch=0,
            grid=(n_btiles, NC),
            in_specs=in_specs,
            out_specs=pl.BlockSpec((Bt, Cp), lambda b, c: (b, 0)),
            scratch_shapes=scratch_shapes,
        ),
        compiler_params=pltpu.CompilerParams(
            dimension_semantics=("parallel", "arbitrary"),  # batch tiles | time
            vmem_limit_bytes=int(usable),
        ),
    )(*args)
    return logits_p[:B, :num_classes]


if __name__ == "__main__":
    # Small shapes consistent with the module's forward.
    batch, seq_len = 2, 8
    input_size, hidden_size, num_layers, num_classes = 16, 32, 2, 4

    key = jax.random.PRNGKey(0)
    key, kx, kp = jax.random.split(key, 3)
    x = jax.random.normal(kx, (batch, seq_len, input_size), jnp.float32)
    params = init_params(kp, input_size, hidden_size, num_layers, num_classes)

    logits = lstm_classifier_forward(x, params, num_classes=num_classes)
    jax.block_until_ready(logits)
    assert logits.shape == (batch, num_classes)
    assert bool(jnp.all(jnp.isfinite(logits)))
    print("KERNEL_OK")
</pallas_src>

<mosaic_0001>
module attributes {stable_mosaic.version = 11 : i64} {
  func.func @_fused_lstm_kernel(%arg0: i32, %arg1: i32, %arg2: memref<8x8x128xbf16, #tpu.memory_space<vmem>>, %arg3: memref<128x512xbf16, #tpu.memory_space<vmem>>, %arg4: memref<128x512xbf16, #tpu.memory_space<vmem>>, %arg5: memref<1x512xf32, #tpu.memory_space<vmem>>, %arg6: memref<128x512xbf16, #tpu.memory_space<vmem>>, %arg7: memref<128x512xbf16, #tpu.memory_space<vmem>>, %arg8: memref<1x512xf32, #tpu.memory_space<vmem>>, %arg9: memref<128x128xbf16, #tpu.memory_space<vmem>>, %arg10: memref<1x128xf32, #tpu.memory_space<vmem>>, %arg11: memref<8x128xf32, #tpu.memory_space<vmem>>, %arg12: memref<2x8x128xf32, #tpu.memory_space<vmem>>, %arg13: memref<2x8x128xf32, #tpu.memory_space<vmem>>, %arg14: memref<64x128xf32, #tpu.memory_space<vmem>>, %arg15: memref<64x512xbf16, #tpu.memory_space<vmem>>) attributes {dimension_semantics = [#tpu.dimension_semantics<parallel>, #tpu.dimension_semantics<arbitrary>], iteration_bounds = array<i64: 1, 1>, scalar_prefetch = 0 : i64, scratch_operands = 4 : i64, tpu.core_type = #tpu.core_type<tc>, window_params = [{transform_indices = @transform_0, window_bounds = array<i64: 8, 8, 128>}, {pipeline_mode = #tpu.pipeline_mode<synchronous>, transform_indices = @transform_1, window_bounds = array<i64: 128, 512>}, {pipeline_mode = #tpu.pipeline_mode<synchronous>, transform_indices = @transform_2, window_bounds = array<i64: 128, 512>}, {pipeline_mode = #tpu.pipeline_mode<synchronous>, transform_indices = @transform_3, window_bounds = array<i64: 1, 512>}, {pipeline_mode = #tpu.pipeline_mode<synchronous>, transform_indices = @transform_4, window_bounds = array<i64: 128, 512>}, {pipeline_mode = #tpu.pipeline_mode<synchronous>, transform_indices = @transform_5, window_bounds = array<i64: 128, 512>}, {pipeline_mode = #tpu.pipeline_mode<synchronous>, transform_indices = @transform_6, window_bounds = array<i64: 1, 512>}, {pipeline_mode = #tpu.pipeline_mode<synchronous>, transform_indices = @transform_7, window_bounds = array<i64: 128, 128>}, {pipeline_mode = #tpu.pipeline_mode<synchronous>, transform_indices = @transform_8, window_bounds = array<i64: 1, 128>}, {transform_indices = @transform_9, window_bounds = array<i64: 8, 128>}]} {
    %c8_i32 = arith.constant 8 : i32
    %0 = arith.muli %arg1, %c8_i32 : i32
    %c0_i32 = arith.constant 0 : i32
    %1 = arith.cmpi eq, %arg1, %c0_i32 : i32
    %2 = arith.extui %1 : i1 to i32
    %c0_i32_0 = arith.constant 0 : i32
    %3 = arith.cmpi ne, %2, %c0_i32_0 : i32
    scf.if %3 {
      %cst_274 = arith.constant 0.000000e+00 : f32
      %751 = vector.broadcast %cst_274 : f32 to vector<2x8x128xf32>
      %c0_275 = arith.constant 0 : index
      %c0_276 = arith.constant 0 : index
      %c0_277 = arith.constant 0 : index
      %752 = vector.load %arg12[%c0_275, %c0_276, %c0_277] : memref<2x8x128xf32, #tpu.memory_space<vmem>>, vector<2x8x128xf32>
      tpu.vector_store %arg12[%c0_275, %c0_276, %c0_277], %751 {strides = array<i32>} : memref<2x8x128xf32, #tpu.memory_space<vmem>>, vector<2x8x128xf32>,
      %cst_278 = arith.constant 0.000000e+00 : f32
      %753 = vector.broadcast %cst_278 : f32 to vector<2x8x128xf32>
      %c0_279 = arith.constant 0 : index
      %c0_280 = arith.constant 0 : index
      %c0_281 = arith.constant 0 : index
      %754 = vector.load %arg13[%c0_279, %c0_280, %c0_281] : memref<2x8x128xf32, #tpu.memory_space<vmem>>, vector<2x8x128xf32>
      tpu.vector_store %arg13[%c0_279, %c0_280, %c0_281], %753 {strides = array<i32>} : memref<2x8x128xf32, #tpu.memory_space<vmem>>, vector<2x8x128xf32>,
    } else {
    }
    %c0 = arith.constant 0 : index
    %c0_1 = arith.constant 0 : index
    %4 = vector.load %arg3[%c0, %c0_1] : memref<128x512xbf16, #tpu.memory_space<vmem>>, vector<128x512xbf16>
    %c0_2 = arith.constant 0 : index
    %c0_3 = arith.constant 0 : index
    %5 = vector.load %arg4[%c0_2, %c0_3] : memref<128x512xbf16, #tpu.memory_space<vmem>>, vector<128x512xbf16>
    %c0_4 = arith.constant 0 : index
    %c0_5 = arith.constant 0 : index
    %6 = vector.load %arg5[%c0_4, %c0_5] : memref<1x512xf32, #tpu.memory_space<vmem>>, vector<1x512xf32>
    %c0_6 = arith.constant 0 : index
    %c0_7 = arith.constant 0 : index
    %c0_8 = arith.constant 0 : index
    %7 = vector.load %arg2[%c0_6, %c0_7, %c0_8] : memref<8x8x128xbf16, #tpu.memory_space<vmem>>, vector<8x8x128xbf16>
    %8 = vector.shape_cast %7 : vector<8x8x128xbf16> to vector<64x128xbf16>
    %cst = arith.constant dense<0.000000e+00> : vector<64x512xf32>
    %9 = tpu.matmul %8, %4, %cst {dimension_numbers = #tpu.dot_dimension_numbers<[1], [0], [0], [1], [0, 0, 1, 1], [], []>} : vector<64x128xbf16>, vector<128x512xbf16>, vector<64x512xf32> -> vector<64x512xf32>
    %10 = vector.broadcast %6 : vector<1x512xf32> to vector<64x512xf32>
    %11 = arith.addf %9, %10 : vector<64x512xf32>
    %12 = arith.truncf %11 : vector<64x512xf32> to vector<64x512xbf16>
    %c0_9 = arith.constant 0 : index
    %c0_10 = arith.constant 0 : index
    %13 = vector.load %arg15[%c0_9, %c0_10] : memref<64x512xbf16, #tpu.memory_space<vmem>>, vector<64x512xbf16>
    tpu.vector_store %arg15[%c0_9, %c0_10], %12 {strides = array<i32>} : memref<64x512xbf16, #tpu.memory_space<vmem>>, vector<64x512xbf16>,
    %c0_11 = arith.constant 0 : index
    %c0_12 = arith.constant 0 : index
    %c0_13 = arith.constant 0 : index
    %14 = vector.load %arg12[%c0_11, %c0_12, %c0_13] : memref<2x8x128xf32, #tpu.memory_space<vmem>>, vector<1x8x128xf32>
    %15 = vector.shape_cast %14 : vector<1x8x128xf32> to vector<8x128xf32>
    %c0_14 = arith.constant 0 : index
    %c0_15 = arith.constant 0 : index
    %c0_16 = arith.constant 0 : index
    %16 = vector.load %arg13[%c0_14, %c0_15, %c0_16] : memref<2x8x128xf32, #tpu.memory_space<vmem>>, vector<1x8x128xf32>
    %17 = vector.shape_cast %16 : vector<1x8x128xf32> to vector<8x128xf32>
    %c0_i32_17 = arith.constant 0 : i32
    %c8_i32_18 = arith.constant 8 : i32
    %18 = arith.muli %c0_i32_17, %c8_i32_18 : i32
    %19 = tpu.assume_multiple %18, 8 : i32
    %20 = arith.index_cast %19 : i32 to index
    %c0_19 = arith.constant 0 : index
    %21 = vector.load %arg15[%20, %c0_19] : memref<64x512xbf16, #tpu.memory_space<vmem>>, vector<8x512xbf16>
    %22 = arith.extf %21 : vector<8x512xbf16> to vector<8x512xf32>
    %23 = arith.truncf %15 : vector<8x128xf32> to vector<8x128xbf16>
    %cst_20 = arith.constant dense<0.000000e+00> : vector<8x512xf32>
    %24 = tpu.matmul %23, %5, %cst_20 {dimension_numbers = #tpu.dot_dimension_numbers<[1], [0], [0], [1], [0, 0, 1, 1], [], []>} : vector<8x128xbf16>, vector<128x512xbf16>, vector<8x512xf32> -> vector<8x512xf32>
    %25 = arith.addf %22, %24 : vector<8x512xf32>
    %26 = vector.extract_strided_slice %25 {offsets = [0, 0], sizes = [8, 128], strides = [1, 1]} : vector<8x512xf32> to vector<8x128xf32>
    %cst_21 = arith.constant 5.000000e-01 : f32
    %27 = vector.broadcast %cst_21 : f32 to vector<8x128xf32>
    %28 = arith.mulf %27, %26 : vector<8x128xf32>
    %29 = math.tanh %28 : vector<8x128xf32>
    %cst_22 = arith.constant 5.000000e-01 : f32
    %30 = vector.broadcast %cst_22 : f32 to vector<8x128xf32>
    %31 = arith.mulf %30, %29 : vector<8x128xf32>
    %cst_23 = arith.constant 5.000000e-01 : f32
    %32 = vector.broadcast %cst_23 : f32 to vector<8x128xf32>
    %33 = arith.addf %31, %32 : vector<8x128xf32>
    %34 = vector.extract_strided_slice %25 {offsets = [0, 128], sizes = [8, 128], strides = [1, 1]} : vector<8x512xf32> to vector<8x128xf32>
    %cst_24 = arith.constant 5.000000e-01 : f32
    %35 = vector.broadcast %cst_24 : f32 to vector<8x128xf32>
    %36 = arith.mulf %35, %34 : vector<8x128xf32>
    %37 = math.tanh %36 : vector<8x128xf32>
    %cst_25 = arith.constant 5.000000e-01 : f32
    %38 = vector.broadcast %cst_25 : f32 to vector<8x128xf32>
    %39 = arith.mulf %38, %37 : vector<8x128xf32>
    %cst_26 = arith.constant 5.000000e-01 : f32
    %40 = vector.broadcast %cst_26 : f32 to vector<8x128xf32>
    %41 = arith.addf %39, %40 : vector<8x128xf32>
    %42 = vector.extract_strided_slice %25 {offsets = [0, 256], sizes = [8, 128], strides = [1, 1]} : vector<8x512xf32> to vector<8x128xf32>
    %43 = math.tanh %42 : vector<8x128xf32>
    %44 = vector.extract_strided_slice %25 {offsets = [0, 384], sizes = [8, 128], strides = [1, 1]} : vector<8x512xf32> to vector<8x128xf32>
    %cst_27 = arith.constant 5.000000e-01 : f32
    %45 = vector.broadcast %cst_27 : f32 to vector<8x128xf32>
    %46 = arith.mulf %45, %44 : vector<8x128xf32>
    %47 = math.tanh %46 : vector<8x128xf32>
    %cst_28 = arith.constant 5.000000e-01 : f32
    %48 = vector.broadcast %cst_28 : f32 to vector<8x128xf32>
    %49 = arith.mulf %48, %47 : vector<8x128xf32>
    %cst_29 = arith.constant 5.000000e-01 : f32
    %50 = vector.broadcast %cst_29 : f32 to vector<8x128xf32>
    %51 = arith.addf %49, %50 : vector<8x128xf32>
    %52 = arith.mulf %41, %17 : vector<8x128xf32>
    %53 = arith.mulf %33, %43 : vector<8x128xf32>
    %54 = arith.addf %52, %53 : vector<8x128xf32>
    %55 = math.tanh %54 : vector<8x128xf32>
    %56 = arith.mulf %51, %55 : vector<8x128xf32>
    %57 = arith.addi %0, %c0_i32_17 : i32
    %c8_i32_30 = arith.constant 8 : i32
    %58 = arith.cmpi slt, %57, %c8_i32_30 : i32
    %59 = arith.select %58, %56, %15 : vector<8x128xf32>
    %60 = arith.select %58, %54, %17 : vector<8x128xf32>
    %61 = arith.index_cast %19 : i32 to index
    %c0_31 = arith.constant 0 : index
    %62 = vector.load %arg14[%61, %c0_31] : memref<64x128xf32, #tpu.memory_space<vmem>>, vector<8x128xf32>
    tpu.vector_store %arg14[%61, %c0_31], %59 {strides = array<i32>} : memref<64x128xf32, #tpu.memory_space<vmem>>, vector<8x128xf32>,
    %c1_i32 = arith.constant 1 : i32
    %c8_i32_32 = arith.constant 8 : i32
    %63 = arith.muli %c1_i32, %c8_i32_32 : i32
    %64 = tpu.assume_multiple %63, 8 : i32
    %65 = arith.index_cast %64 : i32 to index
    %c0_33 = arith.constant 0 : index
    %66 = vector.load %arg15[%65, %c0_33] : memref<64x512xbf16, #tpu.memory_space<vmem>>, vector<8x512xbf16>
    %67 = arith.extf %66 : vector<8x512xbf16> to vector<8x512xf32>
    %68 = arith.truncf %59 : vector<8x128xf32> to vector<8x128xbf16>
    %cst_34 = arith.constant dense<0.000000e+00> : vector<8x512xf32>
    %69 = tpu.matmul %68, %5, %cst_34 {dimension_numbers = #tpu.dot_dimension_numbers<[1], [0], [0], [1], [0, 0, 1, 1], [], []>} : vector<8x128xbf16>, vector<128x512xbf16>, vector<8x512xf32> -> vector<8x512xf32>
    %70 = arith.addf %67, %69 : vector<8x512xf32>
    %71 = vector.extract_strided_slice %70 {offsets = [0, 0], sizes = [8, 128], strides = [1, 1]} : vector<8x512xf32> to vector<8x128xf32>
    %cst_35 = arith.constant 5.000000e-01 : f32
    %72 = vector.broadcast %cst_35 : f32 to vector<8x128xf32>
    %73 = arith.mulf %72, %71 : vector<8x128xf32>
    %74 = math.tanh %73 : vector<8x128xf32>
    %cst_36 = arith.constant 5.000000e-01 : f32
    %75 = vector.broadcast %cst_36 : f32 to vector<8x128xf32>
    %76 = arith.mulf %75, %74 : vector<8x128xf32>
    %cst_37 = arith.constant 5.000000e-01 : f32
    %77 = vector.broadcast %cst_37 : f32 to vector<8x128xf32>
    %78 = arith.addf %76, %77 : vector<8x128xf32>
    %79 = vector.extract_strided_slice %70 {offsets = [0, 128], sizes = [8, 128], strides = [1, 1]} : vector<8x512xf32> to vector<8x128xf32>
    %cst_38 = arith.constant 5.000000e-01 : f32
    %80 = vector.broadcast %cst_38 : f32 to vector<8x128xf32>
    %81 = arith.mulf %80, %79 : vector<8x128xf32>
    %82 = math.tanh %81 : vector<8x128xf32>
    %cst_39 = arith.constant 5.000000e-01 : f32
    %83 = vector.broadcast %cst_39 : f32 to vector<8x128xf32>
    %84 = arith.mulf %83, %82 : vector<8x128xf32>
    %cst_40 = arith.constant 5.000000e-01 : f32
    %85 = vector.broadcast %cst_40 : f32 to vector<8x128xf32>
    %86 = arith.addf %84, %85 : vector<8x128xf32>
    %87 = vector.extract_strided_slice %70 {offsets = [0, 256], sizes = [8, 128], strides = [1, 1]} : vector<8x512xf32> to vector<8x128xf32>
    %88 = math.tanh %87 : vector<8x128xf32>
    %89 = vector.extract_strided_slice %70 {offsets = [0, 384], sizes = [8, 128], strides = [1, 1]} : vector<8x512xf32> to vector<8x128xf32>
    %cst_41 = arith.constant 5.000000e-01 : f32
    %90 = vector.broadcast %cst_41 : f32 to vector<8x128xf32>
    %91 = arith.mulf %90, %89 : vector<8x128xf32>
    %92 = math.tanh %91 : vector<8x128xf32>
    %cst_42 = arith.constant 5.000000e-01 : f32
    %93 = vector.broadcast %cst_42 : f32 to vector<8x128xf32>
    %94 = arith.mulf %93, %92 : vector<8x128xf32>
    %cst_43 = arith.constant 5.000000e-01 : f32
    %95 = vector.broadcast %cst_43 : f32 to vector<8x128xf32>
    %96 = arith.addf %94, %95 : vector<8x128xf32>
    %97 = arith.mulf %86, %60 : vector<8x128xf32>
    %98 = arith.mulf %78, %88 : vector<8x128xf32>
    %99 = arith.addf %97, %98 : vector<8x128xf32>
    %100 = math.tanh %99 : vector<8x128xf32>
    %101 = arith.mulf %96, %100 : vector<8x128xf32>
    %102 = arith.addi %0, %c1_i32 : i32
    %c8_i32_44 = arith.constant 8 : i32
    %103 = arith.cmpi slt, %102, %c8_i32_44 : i32
    %104 = arith.select %103, %101, %59 : vector<8x128xf32>
    %105 = arith.select %103, %99, %60 : vector<8x128xf32>
    %106 = arith.index_cast %64 : i32 to index
    %c0_45 = arith.constant 0 : index
    %107 = vector.load %arg14[%106, %c0_45] : memref<64x128xf32, #tpu.memory_space<vmem>>, vector<8x128xf32>
    tpu.vector_store %arg14[%106, %c0_45], %104 {strides = array<i32>} : memref<64x128xf32, #tpu.memory_space<vmem>>, vector<8x128xf32>,
    %c2_i32 = arith.constant 2 : i32
    %c8_i32_46 = arith.constant 8 : i32
    %108 = arith.muli %c2_i32, %c8_i32_46 : i32
    %109 = tpu.assume_multiple %108, 8 : i32
    %110 = arith.index_cast %109 : i32 to index
    %c0_47 = arith.constant 0 : index
    %111 = vector.load %arg15[%110, %c0_47] : memref<64x512xbf16, #tpu.memory_space<vmem>>, vector<8x512xbf16>
    %112 = arith.extf %111 : vector<8x512xbf16> to vector<8x512xf32>
    %113 = arith.truncf %104 : vector<8x128xf32> to vector<8x128xbf16>
    %cst_48 = arith.constant dense<0.000000e+00> : vector<8x512xf32>
    %114 = tpu.matmul %113, %5, %cst_48 {dimension_numbers = #tpu.dot_dimension_numbers<[1], [0], [0], [1], [0, 0, 1, 1], [], []>} : vector<8x128xbf16>, vector<128x512xbf16>, vector<8x512xf32> -> vector<8x512xf32>
    %115 = arith.addf %112, %114 : vector<8x512xf32>
    %116 = vector.extract_strided_slice %115 {offsets = [0, 0], sizes = [8, 128], strides = [1, 1]} : vector<8x512xf32> to vector<8x128xf32>
    %cst_49 = arith.constant 5.000000e-01 : f32
    %117 = vector.broadcast %cst_49 : f32 to vector<8x128xf32>
    %118 = arith.mulf %117, %116 : vector<8x128xf32>
    %119 = math.tanh %118 : vector<8x128xf32>
    %cst_50 = arith.constant 5.000000e-01 : f32
    %120 = vector.broadcast %cst_50 : f32 to vector<8x128xf32>
    %121 = arith.mulf %120, %119 : vector<8x128xf32>
    %cst_51 = arith.constant 5.000000e-01 : f32
    %122 = vector.broadcast %cst_51 : f32 to vector<8x128xf32>
    %123 = arith.addf %121, %122 : vector<8x128xf32>
    %124 = vector.extract_strided_slice %115 {offsets = [0, 128], sizes = [8, 128], strides = [1, 1]} : vector<8x512xf32> to vector<8x128xf32>
    %cst_52 = arith.constant 5.000000e-01 : f32
    %125 = vector.broadcast %cst_52 : f32 to vector<8x128xf32>
    %126 = arith.mulf %125, %124 : vector<8x128xf32>
    %127 = math.tanh %126 : vector<8x128xf32>
    %cst_53 = arith.constant 5.000000e-01 : f32
    %128 = vector.broadcast %cst_53 : f32 to vector<8x128xf32>
    %129 = arith.mulf %128, %127 : vector<8x128xf32>
    %cst_54 = arith.constant 5.000000e-01 : f32
    %130 = vector.broadcast %cst_54 : f32 to vector<8x128xf32>
    %131 = arith.addf %129, %130 : vector<8x128xf32>
    %132 = vector.extract_strided_slice %115 {offsets = [0, 256], sizes = [8, 128], strides = [1, 1]} : vector<8x512xf32> to vector<8x128xf32>
    %133 = math.tanh %132 : vector<8x128xf32>
    %134 = vector.extract_strided_slice %115 {offsets = [0, 384], sizes = [8, 128], strides = [1, 1]} : vector<8x512xf32> to vector<8x128xf32>
    %cst_55 = arith.constant 5.000000e-01 : f32
    %135 = vector.broadcast %cst_55 : f32 to vector<8x128xf32>
    %136 = arith.mulf %135, %134 : vector<8x128xf32>
    %137 = math.tanh %136 : vector<8x128xf32>
    %cst_56 = arith.constant 5.000000e-01 : f32
    %138 = vector.broadcast %cst_56 : f32 to vector<8x128xf32>
    %139 = arith.mulf %138, %137 : vector<8x128xf32>
    %cst_57 = arith.constant 5.000000e-01 : f32
    %140 = vector.broadcast %cst_57 : f32 to vector<8x128xf32>
    %141 = arith.addf %139, %140 : vector<8x128xf32>
    %142 = arith.mulf %131, %105 : vector<8x128xf32>
    %143 = arith.mulf %123, %133 : vector<8x128xf32>
    %144 = arith.addf %142, %143 : vector<8x128xf32>
    %145 = math.tanh %144 : vector<8x128xf32>
    %146 = arith.mulf %141, %145 : vector<8x128xf32>
    %147 = arith.addi %0, %c2_i32 : i32
    %c8_i32_58 = arith.constant 8 : i32
    %148 = arith.cmpi slt, %147, %c8_i32_58 : i32
    %149 = arith.select %148, %146, %104 : vector<8x128xf32>
    %150 = arith.select %148, %144, %105 : vector<8x128xf32>
    %151 = arith.index_cast %109 : i32 to index
    %c0_59 = arith.constant 0 : index
    %152 = vector.load %arg14[%151, %c0_59] : memref<64x128xf32, #tpu.memory_space<vmem>>, vector<8x128xf32>
    tpu.vector_store %arg14[%151, %c0_59], %149 {strides = array<i32>} : memref<64x128xf32, #tpu.memory_space<vmem>>, vector<8x128xf32>,
    %c3_i32 = arith.constant 3 : i32
    %c8_i32_60 = arith.constant 8 : i32
    %153 = arith.muli %c3_i32, %c8_i32_60 : i32
    %154 = tpu.assume_multiple %153, 8 : i32
    %155 = arith.index_cast %154 : i32 to index
    %c0_61 = arith.constant 0 : index
    %156 = vector.load %arg15[%155, %c0_61] : memref<64x512xbf16, #tpu.memory_space<vmem>>, vector<8x512xbf16>
    %157 = arith.extf %156 : vector<8x512xbf16> to vector<8x512xf32>
    %158 = arith.truncf %149 : vector<8x128xf32> to vector<8x128xbf16>
    %cst_62 = arith.constant dense<0.000000e+00> : vector<8x512xf32>
    %159 = tpu.matmul %158, %5, %cst_62 {dimension_numbers = #tpu.dot_dimension_numbers<[1], [0], [0], [1], [0, 0, 1, 1], [], []>} : vector<8x128xbf16>, vector<128x512xbf16>, vector<8x512xf32> -> vector<8x512xf32>
    %160 = arith.addf %157, %159 : vector<8x512xf32>
    %161 = vector.extract_strided_slice %160 {offsets = [0, 0], sizes = [8, 128], strides = [1, 1]} : vector<8x512xf32> to vector<8x128xf32>
    %cst_63 = arith.constant 5.000000e-01 : f32
    %162 = vector.broadcast %cst_63 : f32 to vector<8x128xf32>
    %163 = arith.mulf %162, %161 : vector<8x128xf32>
    %164 = math.tanh %163 : vector<8x128xf32>
    %cst_64 = arith.constant 5.000000e-01 : f32
    %165 = vector.broadcast %cst_64 : f32 to vector<8x128xf32>
    %166 = arith.mulf %165, %164 : vector<8x128xf32>
    %cst_65 = arith.constant 5.000000e-01 : f32
    %167 = vector.broadcast %cst_65 : f32 to vector<8x128xf32>
    %168 = arith.addf %166, %167 : vector<8x128xf32>
    %169 = vector.extract_strided_slice %160 {offsets = [0, 128], sizes = [8, 128], strides = [1, 1]} : vector<8x512xf32> to vector<8x128xf32>
    %cst_66 = arith.constant 5.000000e-01 : f32
    %170 = vector.broadcast %cst_66 : f32 to vector<8x128xf32>
    %171 = arith.mulf %170, %169 : vector<8x128xf32>
    %172 = math.tanh %171 : vector<8x128xf32>
    %cst_67 = arith.constant 5.000000e-01 : f32
    %173 = vector.broadcast %cst_67 : f32 to vector<8x128xf32>
    %174 = arith.mulf %173, %172 : vector<8x128xf32>
    %cst_68 = arith.constant 5.000000e-01 : f32
    %175 = vector.broadcast %cst_68 : f32 to vector<8x128xf32>
    %176 = arith.addf %174, %175 : vector<8x128xf32>
    %177 = vector.extract_strided_slice %160 {offsets = [0, 256], sizes = [8, 128], strides = [1, 1]} : vector<8x512xf32> to vector<8x128xf32>
    %178 = math.tanh %177 : vector<8x128xf32>
    %179 = vector.extract_strided_slice %160 {offsets = [0, 384], sizes = [8, 128], strides = [1, 1]} : vector<8x512xf32> to vector<8x128xf32>
    %cst_69 = arith.constant 5.000000e-01 : f32
    %180 = vector.broadcast %cst_69 : f32 to vector<8x128xf32>
    %181 = arith.mulf %180, %179 : vector<8x128xf32>
    %182 = math.tanh %181 : vector<8x128xf32>
    %cst_70 = arith.constant 5.000000e-01 : f32
    %183 = vector.broadcast %cst_70 : f32 to vector<8x128xf32>
    %184 = arith.mulf %183, %182 : vector<8x128xf32>
    %cst_71 = arith.constant 5.000000e-01 : f32
    %185 = vector.broadcast %cst_71 : f32 to vector<8x128xf32>
    %186 = arith.addf %184, %185 : vector<8x128xf32>
    %187 = arith.mulf %176, %150 : vector<8x128xf32>
    %188 = arith.mulf %168, %178 : vector<8x128xf32>
    %189 = arith.addf %187, %188 : vector<8x128xf32>
    %190 = math.tanh %189 : vector<8x128xf32>
    %191 = arith.mulf %186, %190 : vector<8x128xf32>
    %192 = arith.addi %0, %c3_i32 : i32
    %c8_i32_72 = arith.constant 8 : i32
    %193 = arith.cmpi slt, %192, %c8_i32_72 : i32
    %194 = arith.select %193, %191, %149 : vector<8x128xf32>
    %195 = arith.select %193, %189, %150 : vector<8x128xf32>
    %196 = arith.index_cast %154 : i32 to index
    %c0_73 = arith.constant 0 : index
    %197 = vector.load %arg14[%196, %c0_73] : memref<64x128xf32, #tpu.memory_space<vmem>>, vector<8x128xf32>
    tpu.vector_store %arg14[%196, %c0_73], %194 {strides = array<i32>} : memref<64x128xf32, #tpu.memory_space<vmem>>, vector<8x128xf32>,
    %c4_i32 = arith.constant 4 : i32
    %c8_i32_74 = arith.constant 8 : i32
    %198 = arith.muli %c4_i32, %c8_i32_74 : i32
    %199 = tpu.assume_multiple %198, 8 : i32
    %200 = arith.index_cast %199 : i32 to index
    %c0_75 = arith.constant 0 : index
    %201 = vector.load %arg15[%200, %c0_75] : memref<64x512xbf16, #tpu.memory_space<vmem>>, vector<8x512xbf16>
    %202 = arith.extf %201 : vector<8x512xbf16> to vector<8x512xf32>
    %203 = arith.truncf %194 : vector<8x128xf32> to vector<8x128xbf16>
    %cst_76 = arith.constant dense<0.000000e+00> : vector<8x512xf32>
    %204 = tpu.matmul %203, %5, %cst_76 {dimension_numbers = #tpu.dot_dimension_numbers<[1], [0], [0], [1], [0, 0, 1, 1], [], []>} : vector<8x128xbf16>, vector<128x512xbf16>, vector<8x512xf32> -> vector<8x512xf32>
    %205 = arith.addf %202, %204 : vector<8x512xf32>
    %206 = vector.extract_strided_slice %205 {offsets = [0, 0], sizes = [8, 128], strides = [1, 1]} : vector<8x512xf32> to vector<8x128xf32>
    %cst_77 = arith.constant 5.000000e-01 : f32
    %207 = vector.broadcast %cst_77 : f32 to vector<8x128xf32>
    %208 = arith.mulf %207, %206 : vector<8x128xf32>
    %209 = math.tanh %208 : vector<8x128xf32>
    %cst_78 = arith.constant 5.000000e-01 : f32
    %210 = vector.broadcast %cst_78 : f32 to vector<8x128xf32>
    %211 = arith.mulf %210, %209 : vector<8x128xf32>
    %cst_79 = arith.constant 5.000000e-01 : f32
    %212 = vector.broadcast %cst_79 : f32 to vector<8x128xf32>
    %213 = arith.addf %211, %212 : vector<8x128xf32>
    %214 = vector.extract_strided_slice %205 {offsets = [0, 128], sizes = [8, 128], strides = [1, 1]} : vector<8x512xf32> to vector<8x128xf32>
    %cst_80 = arith.constant 5.000000e-01 : f32
    %215 = vector.broadcast %cst_80 : f32 to vector<8x128xf32>
    %216 = arith.mulf %215, %214 : vector<8x128xf32>
    %217 = math.tanh %216 : vector<8x128xf32>
    %cst_81 = arith.constant 5.000000e-01 : f32
    %218 = vector.broadcast %cst_81 : f32 to vector<8x128xf32>
    %219 = arith.mulf %218, %217 : vector<8x128xf32>
    %cst_82 = arith.constant 5.000000e-01 : f32
    %220 = vector.broadcast %cst_82 : f32 to vector<8x128xf32>
    %221 = arith.addf %219, %220 : vector<8x128xf32>
    %222 = vector.extract_strided_slice %205 {offsets = [0, 256], sizes = [8, 128], strides = [1, 1]} : vector<8x512xf32> to vector<8x128xf32>
    %223 = math.tanh %222 : vector<8x128xf32>
    %224 = vector.extract_strided_slice %205 {offsets = [0, 384], sizes = [8, 128], strides = [1, 1]} : vector<8x512xf32> to vector<8x128xf32>
    %cst_83 = arith.constant 5.000000e-01 : f32
    %225 = vector.broadcast %cst_83 : f32 to vector<8x128xf32>
    %226 = arith.mulf %225, %224 : vector<8x128xf32>
    %227 = math.tanh %226 : vector<8x128xf32>
    %cst_84 = arith.constant 5.000000e-01 : f32
    %228 = vector.broadcast %cst_84 : f32 to vector<8x128xf32>
    %229 = arith.mulf %228, %227 : vector<8x128xf32>
    %cst_85 = arith.constant 5.000000e-01 : f32
    %230 = vector.broadcast %cst_85 : f32 to vector<8x128xf32>
    %231 = arith.addf %229, %230 : vector<8x128xf32>
    %232 = arith.mulf %221, %195 : vector<8x128xf32>
    %233 = arith.mulf %213, %223 : vector<8x128xf32>
    %234 = arith.addf %232, %233 : vector<8x128xf32>
    %235 = math.tanh %234 : vector<8x128xf32>
    %236 = arith.mulf %231, %235 : vector<8x128xf32>
    %237 = arith.addi %0, %c4_i32 : i32
    %c8_i32_86 = arith.constant 8 : i32
    %238 = arith.cmpi slt, %237, %c8_i32_86 : i32
    %239 = arith.select %238, %236, %194 : vector<8x128xf32>
    %240 = arith.select %238, %234, %195 : vector<8x128xf32>
    %241 = arith.index_cast %199 : i32 to index
    %c0_87 = arith.constant 0 : index
    %242 = vector.load %arg14[%241, %c0_87] : memref<64x128xf32, #tpu.memory_space<vmem>>, vector<8x128xf32>
    tpu.vector_store %arg14[%241, %c0_87], %239 {strides = array<i32>} : memref<64x128xf32, #tpu.memory_space<vmem>>, vector<8x128xf32>,
    %c5_i32 = arith.constant 5 : i32
    %c8_i32_88 = arith.constant 8 : i32
    %243 = arith.muli %c5_i32, %c8_i32_88 : i32
    %244 = tpu.assume_multiple %243, 8 : i32
    %245 = arith.index_cast %244 : i32 to index
    %c0_89 = arith.constant 0 : index
    %246 = vector.load %arg15[%245, %c0_89] : memref<64x512xbf16, #tpu.memory_space<vmem>>, vector<8x512xbf16>
    %247 = arith.extf %246 : vector<8x512xbf16> to vector<8x512xf32>
    %248 = arith.truncf %239 : vector<8x128xf32> to vector<8x128xbf16>
    %cst_90 = arith.constant dense<0.000000e+00> : vector<8x512xf32>
    %249 = tpu.matmul %248, %5, %cst_90 {dimension_numbers = #tpu.dot_dimension_numbers<[1], [0], [0], [1], [0, 0, 1, 1], [], []>} : vector<8x128xbf16>, vector<128x512xbf16>, vector<8x512xf32> -> vector<8x512xf32>
    %250 = arith.addf %247, %249 : vector<8x512xf32>
    %251 = vector.extract_strided_slice %250 {offsets = [0, 0], sizes = [8, 128], strides = [1, 1]} : vector<8x512xf32> to vector<8x128xf32>
    %cst_91 = arith.constant 5.000000e-01 : f32
    %252 = vector.broadcast %cst_91 : f32 to vector<8x128xf32>
    %253 = arith.mulf %252, %251 : vector<8x128xf32>
    %254 = math.tanh %253 : vector<8x128xf32>
    %cst_92 = arith.constant 5.000000e-01 : f32
    %255 = vector.broadcast %cst_92 : f32 to vector<8x128xf32>
    %256 = arith.mulf %255, %254 : vector<8x128xf32>
    %cst_93 = arith.constant 5.000000e-01 : f32
    %257 = vector.broadcast %cst_93 : f32 to vector<8x128xf32>
    %258 = arith.addf %256, %257 : vector<8x128xf32>
    %259 = vector.extract_strided_slice %250 {offsets = [0, 128], sizes = [8, 128], strides = [1, 1]} : vector<8x512xf32> to vector<8x128xf32>
    %cst_94 = arith.constant 5.000000e-01 : f32
    %260 = vector.broadcast %cst_94 : f32 to vector<8x128xf32>
    %261 = arith.mulf %260, %259 : vector<8x128xf32>
    %262 = math.tanh %261 : vector<8x128xf32>
    %cst_95 = arith.constant 5.000000e-01 : f32
    %263 = vector.broadcast %cst_95 : f32 to vector<8x128xf32>
    %264 = arith.mulf %263, %262 : vector<8x128xf32>
    %cst_96 = arith.constant 5.000000e-01 : f32
    %265 = vector.broadcast %cst_96 : f32 to vector<8x128xf32>
    %266 = arith.addf %264, %265 : vector<8x128xf32>
    %267 = vector.extract_strided_slice %250 {offsets = [0, 256], sizes = [8, 128], strides = [1, 1]} : vector<8x512xf32> to vector<8x128xf32>
    %268 = math.tanh %267 : vector<8x128xf32>
    %269 = vector.extract_strided_slice %250 {offsets = [0, 384], sizes = [8, 128], strides = [1, 1]} : vector<8x512xf32> to vector<8x128xf32>
    %cst_97 = arith.constant 5.000000e-01 : f32
    %270 = vector.broadcast %cst_97 : f32 to vector<8x128xf32>
    %271 = arith.mulf %270, %269 : vector<8x128xf32>
    %272 = math.tanh %271 : vector<8x128xf32>
    %cst_98 = arith.constant 5.000000e-01 : f32
    %273 = vector.broadcast %cst_98 : f32 to vector<8x128xf32>
    %274 = arith.mulf %273, %272 : vector<8x128xf32>
    %cst_99 = arith.constant 5.000000e-01 : f32
    %275 = vector.broadcast %cst_99 : f32 to vector<8x128xf32>
    %276 = arith.addf %274, %275 : vector<8x128xf32>
    %277 = arith.mulf %266, %240 : vector<8x128xf32>
    %278 = arith.mulf %258, %268 : vector<8x128xf32>
    %279 = arith.addf %277, %278 : vector<8x128xf32>
    %280 = math.tanh %279 : vector<8x128xf32>
    %281 = arith.mulf %276, %280 : vector<8x128xf32>
    %282 = arith.addi %0, %c5_i32 : i32
    %c8_i32_100 = arith.constant 8 : i32
    %283 = arith.cmpi slt, %282, %c8_i32_100 : i32
    %284 = arith.select %283, %281, %239 : vector<8x128xf32>
    %285 = arith.select %283, %279, %240 : vector<8x128xf32>
    %286 = arith.index_cast %244 : i32 to index
    %c0_101 = arith.constant 0 : index
    %287 = vector.load %arg14[%286, %c0_101] : memref<64x128xf32, #tpu.memory_space<vmem>>, vector<8x128xf32>
    tpu.vector_store %arg14[%286, %c0_101], %284 {strides = array<i32>} : memref<64x128xf32, #tpu.memory_space<vmem>>, vector<8x128xf32>,
    %c6_i32 = arith.constant 6 : i32
    %c8_i32_102 = arith.constant 8 : i32
    %288 = arith.muli %c6_i32, %c8_i32_102 : i32
    %289 = tpu.assume_multiple %288, 8 : i32
    %290 = arith.index_cast %289 : i32 to index
    %c0_103 = arith.constant 0 : index
    %291 = vector.load %arg15[%290, %c0_103] : memref<64x512xbf16, #tpu.memory_space<vmem>>, vector<8x512xbf16>
    %292 = arith.extf %291 : vector<8x512xbf16> to vector<8x512xf32>
    %293 = arith.truncf %284 : vector<8x128xf32> to vector<8x128xbf16>
    %cst_104 = arith.constant dense<0.000000e+00> : vector<8x512xf32>
    %294 = tpu.matmul %293, %5, %cst_104 {dimension_numbers = #tpu.dot_dimension_numbers<[1], [0], [0], [1], [0, 0, 1, 1], [], []>} : vector<8x128xbf16>, vector<128x512xbf16>, vector<8x512xf32> -> vector<8x512xf32>
    %295 = arith.addf %292, %294 : vector<8x512xf32>
    %296 = vector.extract_strided_slice %295 {offsets = [0, 0], sizes = [8, 128], strides = [1, 1]} : vector<8x512xf32> to vector<8x128xf32>
    %cst_105 = arith.constant 5.000000e-01 : f32
    %297 = vector.broadcast %cst_105 : f32 to vector<8x128xf32>
    %298 = arith.mulf %297, %296 : vector<8x128xf32>
    %299 = math.tanh %298 : vector<8x128xf32>
    %cst_106 = arith.constant 5.000000e-01 : f32
    %300 = vector.broadcast %cst_106 : f32 to vector<8x128xf32>
    %301 = arith.mulf %300, %299 : vector<8x128xf32>
    %cst_107 = arith.constant 5.000000e-01 : f32
    %302 = vector.broadcast %cst_107 : f32 to vector<8x128xf32>
    %303 = arith.addf %301, %302 : vector<8x128xf32>
    %304 = vector.extract_strided_slice %295 {offsets = [0, 128], sizes = [8, 128], strides = [1, 1]} : vector<8x512xf32> to vector<8x128xf32>
    %cst_108 = arith.constant 5.000000e-01 : f32
    %305 = vector.broadcast %cst_108 : f32 to vector<8x128xf32>
    %306 = arith.mulf %305, %304 : vector<8x128xf32>
    %307 = math.tanh %306 : vector<8x128xf32>
    %cst_109 = arith.constant 5.000000e-01 : f32
    %308 = vector.broadcast %cst_109 : f32 to vector<8x128xf32>
    %309 = arith.mulf %308, %307 : vector<8x128xf32>
    %cst_110 = arith.constant 5.000000e-01 : f32
    %310 = vector.broadcast %cst_110 : f32 to vector<8x128xf32>
    %311 = arith.addf %309, %310 : vector<8x128xf32>
    %312 = vector.extract_strided_slice %295 {offsets = [0, 256], sizes = [8, 128], strides = [1, 1]} : vector<8x512xf32> to vector<8x128xf32>
    %313 = math.tanh %312 : vector<8x128xf32>
    %314 = vector.extract_strided_slice %295 {offsets = [0, 384], sizes = [8, 128], strides = [1, 1]} : vector<8x512xf32> to vector<8x128xf32>
    %cst_111 = arith.constant 5.000000e-01 : f32
    %315 = vector.broadcast %cst_111 : f32 to vector<8x128xf32>
    %316 = arith.mulf %315, %314 : vector<8x128xf32>
    %317 = math.tanh %316 : vector<8x128xf32>
    %cst_112 = arith.constant 5.000000e-01 : f32
    %318 = vector.broadcast %cst_112 : f32 to vector<8x128xf32>
    %319 = arith.mulf %318, %317 : vector<8x128xf32>
    %cst_113 = arith.constant 5.000000e-01 : f32
    %320 = vector.broadcast %cst_113 : f32 to vector<8x128xf32>
    %321 = arith.addf %319, %320 : vector<8x128xf32>
    %322 = arith.mulf %311, %285 : vector<8x128xf32>
    %323 = arith.mulf %303, %313 : vector<8x128xf32>
    %324 = arith.addf %322, %323 : vector<8x128xf32>
    %325 = math.tanh %324 : vector<8x128xf32>
    %326 = arith.mulf %321, %325 : vector<8x128xf32>
    %327 = arith.addi %0, %c6_i32 : i32
    %c8_i32_114 = arith.constant 8 : i32
    %328 = arith.cmpi slt, %327, %c8_i32_114 : i32
    %329 = arith.select %328, %326, %284 : vector<8x128xf32>
    %330 = arith.select %328, %324, %285 : vector<8x128xf32>
    %331 = arith.index_cast %289 : i32 to index
    %c0_115 = arith.constant 0 : index
    %332 = vector.load %arg14[%331, %c0_115] : memref<64x128xf32, #tpu.memory_space<vmem>>, vector<8x128xf32>
    tpu.vector_store %arg14[%331, %c0_115], %329 {strides = array<i32>} : memref<64x128xf32, #tpu.memory_space<vmem>>, vector<8x128xf32>,
    %c7_i32 = arith.constant 7 : i32
    %c8_i32_116 = arith.constant 8 : i32
    %333 = arith.muli %c7_i32, %c8_i32_116 : i32
    %334 = tpu.assume_multiple %333, 8 : i32
    %335 = arith.index_cast %334 : i32 to index
    %c0_117 = arith.constant 0 : index
    %336 = vector.load %arg15[%335, %c0_117] : memref<64x512xbf16, #tpu.memory_space<vmem>>, vector<8x512xbf16>
    %337 = arith.extf %336 : vector<8x512xbf16> to vector<8x512xf32>
    %338 = arith.truncf %329 : vector<8x128xf32> to vector<8x128xbf16>
    %cst_118 = arith.constant dense<0.000000e+00> : vector<8x512xf32>
    %339 = tpu.matmul %338, %5, %cst_118 {dimension_numbers = #tpu.dot_dimension_numbers<[1], [0], [0], [1], [0, 0, 1, 1], [], []>} : vector<8x128xbf16>, vector<128x512xbf16>, vector<8x512xf32> -> vector<8x512xf32>
    %340 = arith.addf %337, %339 : vector<8x512xf32>
    %341 = vector.extract_strided_slice %340 {offsets = [0, 0], sizes = [8, 128], strides = [1, 1]} : vector<8x512xf32> to vector<8x128xf32>
    %cst_119 = arith.constant 5.000000e-01 : f32
    %342 = vector.broadcast %cst_119 : f32 to vector<8x128xf32>
    %343 = arith.mulf %342, %341 : vector<8x128xf32>
    %344 = math.tanh %343 : vector<8x128xf32>
    %cst_120 = arith.constant 5.000000e-01 : f32
    %345 = vector.broadcast %cst_120 : f32 to vector<8x128xf32>
    %346 = arith.mulf %345, %344 : vector<8x128xf32>
    %cst_121 = arith.constant 5.000000e-01 : f32
    %347 = vector.broadcast %cst_121 : f32 to vector<8x128xf32>
    %348 = arith.addf %346, %347 : vector<8x128xf32>
    %349 = vector.extract_strided_slice %340 {offsets = [0, 128], sizes = [8, 128], strides = [1, 1]} : vector<8x512xf32> to vector<8x128xf32>
    %cst_122 = arith.constant 5.000000e-01 : f32
    %350 = vector.broadcast %cst_122 : f32 to vector<8x128xf32>
    %351 = arith.mulf %350, %349 : vector<8x128xf32>
    %352 = math.tanh %351 : vector<8x128xf32>
    %cst_123 = arith.constant 5.000000e-01 : f32
    %353 = vector.broadcast %cst_123 : f32 to vector<8x128xf32>
    %354 = arith.mulf %353, %352 : vector<8x128xf32>
    %cst_124 = arith.constant 5.000000e-01 : f32
    %355 = vector.broadcast %cst_124 : f32 to vector<8x128xf32>
    %356 = arith.addf %354, %355 : vector<8x128xf32>
    %357 = vector.extract_strided_slice %340 {offsets = [0, 256], sizes = [8, 128], strides = [1, 1]} : vector<8x512xf32> to vector<8x128xf32>
    %358 = math.tanh %357 : vector<8x128xf32>
    %359 = vector.extract_strided_slice %340 {offsets = [0, 384], sizes = [8, 128], strides = [1, 1]} : vector<8x512xf32> to vector<8x128xf32>
    %cst_125 = arith.constant 5.000000e-01 : f32
    %360 = vector.broadcast %cst_125 : f32 to vector<8x128xf32>
    %361 = arith.mulf %360, %359 : vector<8x128xf32>
    %362 = math.tanh %361 : vector<8x128xf32>
    %cst_126 = arith.constant 5.000000e-01 : f32
    %363 = vector.broadcast %cst_126 : f32 to vector<8x128xf32>
    %364 = arith.mulf %363, %362 : vector<8x128xf32>
    %cst_127 = arith.constant 5.000000e-01 : f32
    %365 = vector.broadcast %cst_127 : f32 to vector<8x128xf32>
    %366 = arith.addf %364, %365 : vector<8x128xf32>
    %367 = arith.mulf %356, %330 : vector<8x128xf32>
    %368 = arith.mulf %348, %358 : vector<8x128xf32>
    %369 = arith.addf %367, %368 : vector<8x128xf32>
    %370 = math.tanh %369 : vector<8x128xf32>
    %371 = arith.mulf %366, %370 : vector<8x128xf32>
    %372 = arith.addi %0, %c7_i32 : i32
    %c8_i32_128 = arith.constant 8 : i32
    %373 = arith.cmpi slt, %372, %c8_i32_128 : i32
    %374 = arith.select %373, %371, %329 : vector<8x128xf32>
    %375 = arith.select %373, %369, %330 : vector<8x128xf32>
    %376 = arith.index_cast %334 : i32 to index
    %c0_129 = arith.constant 0 : index
    %377 = vector.load %arg14[%376, %c0_129] : memref<64x128xf32, #tpu.memory_space<vmem>>, vector<8x128xf32>
    tpu.vector_store %arg14[%376, %c0_129], %374 {strides = array<i32>} : memref<64x128xf32, #tpu.memory_space<vmem>>, vector<8x128xf32>,
    %c8_i32_130 = arith.constant 8 : i32
    %c0_131 = arith.constant 0 : index
    %c0_132 = arith.constant 0 : index
    %c0_133 = arith.constant 0 : index
    %378 = vector.load %arg12[%c0_131, %c0_132, %c0_133] : memref<2x8x128xf32, #tpu.memory_space<vmem>>, vector<1x8x128xf32>
    %379 = vector.shape_cast %378 : vector<1x8x128xf32> to vector<8x128xf32>
    %380 = vector.shape_cast %374 : vector<8x128xf32> to vector<1x8x128xf32>
    tpu.vector_store %arg12[%c0_131, %c0_132, %c0_133], %380 {strides = array<i32>} : memref<2x8x128xf32, #tpu.memory_space<vmem>>, vector<1x8x128xf32>,
    %c0_134 = arith.constant 0 : index
    %c0_135 = arith.constant 0 : index
    %c0_136 = arith.constant 0 : index
    %381 = vector.load %arg13[%c0_134, %c0_135, %c0_136] : memref<2x8x128xf32, #tpu.memory_space<vmem>>, vector<1x8x128xf32>
    %382 = vector.shape_cast %381 : vector<1x8x128xf32> to vector<8x128xf32>
    %383 = vector.shape_cast %375 : vector<8x128xf32> to vector<1x8x128xf32>
    tpu.vector_store %arg13[%c0_134, %c0_135, %c0_136], %383 {strides = array<i32>} : memref<2x8x128xf32, #tpu.memory_space<vmem>>, vector<1x8x128xf32>,
    %c0_137 = arith.constant 0 : index
    %c0_138 = arith.constant 0 : index
    %384 = vector.load %arg6[%c0_137, %c0_138] : memref<128x512xbf16, #tpu.memory_space<vmem>>, vector<128x512xbf16>
    %c0_139 = arith.constant 0 : index
    %c0_140 = arith.constant 0 : index
    %385 = vector.load %arg7[%c0_139, %c0_140] : memref<128x512xbf16, #tpu.memory_space<vmem>>, vector<128x512xbf16>
    %c0_141 = arith.constant 0 : index
    %c0_142 = arith.constant 0 : index
    %386 = vector.load %arg8[%c0_141, %c0_142] : memref<1x512xf32, #tpu.memory_space<vmem>>, vector<1x512xf32>
    %c0_143 = arith.constant 0 : index
    %c0_144 = arith.constant 0 : index
    %387 = vector.load %arg14[%c0_143, %c0_144] : memref<64x128xf32, #tpu.memory_space<vmem>>, vector<64x128xf32>
    %388 = arith.truncf %387 : vector<64x128xf32> to vector<64x128xbf16>
    %cst_145 = arith.constant dense<0.000000e+00> : vector<64x512xf32>
    %389 = tpu.matmul %388, %384, %cst_145 {dimension_numbers = #tpu.dot_dimension_numbers<[1], [0], [0], [1], [0, 0, 1, 1], [], []>} : vector<64x128xbf16>, vector<128x512xbf16>, vector<64x512xf32> -> vector<64x512xf32>
    %390 = vector.broadcast %386 : vector<1x512xf32> to vector<64x512xf32>
    %391 = arith.addf %389, %390 : vector<64x512xf32>
    %392 = arith.truncf %391 : vector<64x512xf32> to vector<64x512xbf16>
    %c0_146 = arith.constant 0 : index
    %c0_147 = arith.constant 0 : index
    %393 = vector.load %arg15[%c0_146, %c0_147] : memref<64x512xbf16, #tpu.memory_space<vmem>>, vector<64x512xbf16>
    tpu.vector_store %arg15[%c0_146, %c0_147], %392 {strides = array<i32>} : memref<64x512xbf16, #tpu.memory_space<vmem>>, vector<64x512xbf16>,
    %c1 = arith.constant 1 : index
    %c0_148 = arith.constant 0 : index
    %c0_149 = arith.constant 0 : index
    %394 = vector.load %arg12[%c1, %c0_148, %c0_149] : memref<2x8x128xf32, #tpu.memory_space<vmem>>, vector<1x8x128xf32>
    %395 = vector.shape_cast %394 : vector<1x8x128xf32> to vector<8x128xf32>
    %c1_150 = arith.constant 1 : index
    %c0_151 = arith.constant 0 : index
    %c0_152 = arith.constant 0 : index
    %396 = vector.load %arg13[%c1_150, %c0_151, %c0_152] : memref<2x8x128xf32, #tpu.memory_space<vmem>>, vector<1x8x128xf32>
    %397 = vector.shape_cast %396 : vector<1x8x128xf32> to vector<8x128xf32>
    %c0_i32_153 = arith.constant 0 : i32
    %c8_i32_154 = arith.constant 8 : i32
    %398 = arith.muli %c0_i32_153, %c8_i32_154 : i32
    %399 = tpu.assume_multiple %398, 8 : i32
    %400 = arith.index_cast %399 : i32 to index
    %c0_155 = arith.constant 0 : index
    %401 = vector.load %arg15[%400, %c0_155] : memref<64x512xbf16, #tpu.memory_space<vmem>>, vector<8x512xbf16>
    %402 = arith.extf %401 : vector<8x512xbf16> to vector<8x512xf32>
    %403 = arith.truncf %395 : vector<8x128xf32> to vector<8x128xbf16>
    %cst_156 = arith.constant dense<0.000000e+00> : vector<8x512xf32>
    %404 = tpu.matmul %403, %385, %cst_156 {dimension_numbers = #tpu.dot_dimension_numbers<[1], [0], [0], [1], [0, 0, 1, 1], [], []>} : vector<8x128xbf16>, vector<128x512xbf16>, vector<8x512xf32> -> vector<8x512xf32>
    %405 = arith.addf %402, %404 : vector<8x512xf32>
    %406 = vector.extract_strided_slice %405 {offsets = [0, 0], sizes = [8, 128], strides = [1, 1]} : vector<8x512xf32> to vector<8x128xf32>
    %cst_157 = arith.constant 5.000000e-01 : f32
    %407 = vector.broadcast %cst_157 : f32 to vector<8x128xf32>
    %408 = arith.mulf %407, %406 : vector<8x128xf32>
    %409 = math.tanh %408 : vector<8x128xf32>
    %cst_158 = arith.constant 5.000000e-01 : f32
    %410 = vector.broadcast %cst_158 : f32 to vector<8x128xf32>
    %411 = arith.mulf %410, %409 : vector<8x128xf32>
    %cst_159 = arith.constant 5.000000e-01 : f32
    %412 = vector.broadcast %cst_159 : f32 to vector<8x128xf32>
    %413 = arith.addf %411, %412 : vector<8x128xf32>
    %414 = vector.extract_strided_slice %405 {offsets = [0, 128], sizes = [8, 128], strides = [1, 1]} : vector<8x512xf32> to vector<8x128xf32>
    %cst_160 = arith.constant 5.000000e-01 : f32
    %415 = vector.broadcast %cst_160 : f32 to vector<8x128xf32>
    %416 = arith.mulf %415, %414 : vector<8x128xf32>
    %417 = math.tanh %416 : vector<8x128xf32>
    %cst_161 = arith.constant 5.000000e-01 : f32
    %418 = vector.broadcast %cst_161 : f32 to vector<8x128xf32>
    %419 = arith.mulf %418, %417 : vector<8x128xf32>
    %cst_162 = arith.constant 5.000000e-01 : f32
    %420 = vector.broadcast %cst_162 : f32 to vector<8x128xf32>
    %421 = arith.addf %419, %420 : vector<8x128xf32>
    %422 = vector.extract_strided_slice %405 {offsets = [0, 256], sizes = [8, 128], strides = [1, 1]} : vector<8x512xf32> to vector<8x128xf32>
    %423 = math.tanh %422 : vector<8x128xf32>
    %424 = vector.extract_strided_slice %405 {offsets = [0, 384], sizes = [8, 128], strides = [1, 1]} : vector<8x512xf32> to vector<8x128xf32>
    %cst_163 = arith.constant 5.000000e-01 : f32
    %425 = vector.broadcast %cst_163 : f32 to vector<8x128xf32>
    %426 = arith.mulf %425, %424 : vector<8x128xf32>
    %427 = math.tanh %426 : vector<8x128xf32>
    %cst_164 = arith.constant 5.000000e-01 : f32
    %428 = vector.broadcast %cst_164 : f32 to vector<8x128xf32>
    %429 = arith.mulf %428, %427 : vector<8x128xf32>
    %cst_165 = arith.constant 5.000000e-01 : f32
    %430 = vector.broadcast %cst_165 : f32 to vector<8x128xf32>
    %431 = arith.addf %429, %430 : vector<8x128xf32>
    %432 = arith.mulf %421, %397 : vector<8x128xf32>
    %433 = arith.mulf %413, %423 : vector<8x128xf32>
    %434 = arith.addf %432, %433 : vector<8x128xf32>
    %435 = math.tanh %434 : vector<8x128xf32>
    %436 = arith.mulf %431, %435 : vector<8x128xf32>
    %437 = arith.addi %0, %c0_i32_153 : i32
    %c8_i32_166 = arith.constant 8 : i32
    %438 = arith.cmpi slt, %437, %c8_i32_166 : i32
    %439 = arith.select %438, %436, %395 : vector<8x128xf32>
    %440 = arith.select %438, %434, %397 : vector<8x128xf32>
    %c1_i32_167 = arith.constant 1 : i32
    %c8_i32_168 = arith.constant 8 : i32
    %441 = arith.muli %c1_i32_167, %c8_i32_168 : i32
    %442 = tpu.assume_multiple %441, 8 : i32
    %443 = arith.index_cast %442 : i32 to index
    %c0_169 = arith.constant 0 : index
    %444 = vector.load %arg15[%443, %c0_169] : memref<64x512xbf16, #tpu.memory_space<vmem>>, vector<8x512xbf16>
    %445 = arith.extf %444 : vector<8x512xbf16> to vector<8x512xf32>
    %446 = arith.truncf %439 : vector<8x128xf32> to vector<8x128xbf16>
    %cst_170 = arith.constant dense<0.000000e+00> : vector<8x512xf32>
    %447 = tpu.matmul %446, %385, %cst_170 {dimension_numbers = #tpu.dot_dimension_numbers<[1], [0], [0], [1], [0, 0, 1, 1], [], []>} : vector<8x128xbf16>, vector<128x512xbf16>, vector<8x512xf32> -> vector<8x512xf32>
    %448 = arith.addf %445, %447 : vector<8x512xf32>
    %449 = vector.extract_strided_slice %448 {offsets = [0, 0], sizes = [8, 128], strides = [1, 1]} : vector<8x512xf32> to vector<8x128xf32>
    %cst_171 = arith.constant 5.000000e-01 : f32
    %450 = vector.broadcast %cst_171 : f32 to vector<8x128xf32>
    %451 = arith.mulf %450, %449 : vector<8x128xf32>
    %452 = math.tanh %451 : vector<8x128xf32>
    %cst_172 = arith.constant 5.000000e-01 : f32
    %453 = vector.broadcast %cst_172 : f32 to vector<8x128xf32>
    %454 = arith.mulf %453, %452 : vector<8x128xf32>
    %cst_173 = arith.constant 5.000000e-01 : f32
    %455 = vector.broadcast %cst_173 : f32 to vector<8x128xf32>
    %456 = arith.addf %454, %455 : vector<8x128xf32>
    %457 = vector.extract_strided_slice %448 {offsets = [0, 128], sizes = [8, 128], strides = [1, 1]} : vector<8x512xf32> to vector<8x128xf32>
    %cst_174 = arith.constant 5.000000e-01 : f32
    %458 = vector.broadcast %cst_174 : f32 to vector<8x128xf32>
    %459 = arith.mulf %458, %457 : vector<8x128xf32>
    %460 = math.tanh %459 : vector<8x128xf32>
    %cst_175 = arith.constant 5.000000e-01 : f32
    %461 = vector.broadcast %cst_175 : f32 to vector<8x128xf32>
    %462 = arith.mulf %461, %460 : vector<8x128xf32>
    %cst_176 = arith.constant 5.000000e-01 : f32
    %463 = vector.broadcast %cst_176 : f32 to vector<8x128xf32>
    %464 = arith.addf %462, %463 : vector<8x128xf32>
    %465 = vector.extract_strided_slice %448 {offsets = [0, 256], sizes = [8, 128], strides = [1, 1]} : vector<8x512xf32> to vector<8x128xf32>
    %466 = math.tanh %465 : vector<8x128xf32>
    %467 = vector.extract_strided_slice %448 {offsets = [0, 384], sizes = [8, 128], strides = [1, 1]} : vector<8x512xf32> to vector<8x128xf32>
    %cst_177 = arith.constant 5.000000e-01 : f32
    %468 = vector.broadcast %cst_177 : f32 to vector<8x128xf32>
    %469 = arith.mulf %468, %467 : vector<8x128xf32>
    %470 = math.tanh %469 : vector<8x128xf32>
    %cst_178 = arith.constant 5.000000e-01 : f32
    %471 = vector.broadcast %cst_178 : f32 to vector<8x128xf32>
    %472 = arith.mulf %471, %470 : vector<8x128xf32>
    %cst_179 = arith.constant 5.000000e-01 : f32
    %473 = vector.broadcast %cst_179 : f32 to vector<8x128xf32>
    %474 = arith.addf %472, %473 : vector<8x128xf32>
    %475 = arith.mulf %464, %440 : vector<8x128xf32>
    %476 = arith.mulf %456, %466 : vector<8x128xf32>
    %477 = arith.addf %475, %476 : vector<8x128xf32>
    %478 = math.tanh %477 : vector<8x128xf32>
    %479 = arith.mulf %474, %478 : vector<8x128xf32>
    %480 = arith.addi %0, %c1_i32_167 : i32
    %c8_i32_180 = arith.constant 8 : i32
    %481 = arith.cmpi slt, %480, %c8_i32_180 : i32
    %482 = arith.select %481, %479, %439 : vector<8x128xf32>
    %483 = arith.select %481, %477, %440 : vector<8x128xf32>
    %c2_i32_181 = arith.constant 2 : i32
    %c8_i32_182 = arith.constant 8 : i32
    %484 = arith.muli %c2_i32_181, %c8_i32_182 : i32
    %485 = tpu.assume_multiple %484, 8 : i32
    %486 = arith.index_cast %485 : i32 to index
    %c0_183 = arith.constant 0 : index
    %487 = vector.load %arg15[%486, %c0_183] : memref<64x512xbf16, #tpu.memory_space<vmem>>, vector<8x512xbf16>
    %488 = arith.extf %487 : vector<8x512xbf16> to vector<8x512xf32>
    %489 = arith.truncf %482 : vector<8x128xf32> to vector<8x128xbf16>
    %cst_184 = arith.constant dense<0.000000e+00> : vector<8x512xf32>
    %490 = tpu.matmul %489, %385, %cst_184 {dimension_numbers = #tpu.dot_dimension_numbers<[1], [0], [0], [1], [0, 0, 1, 1], [], []>} : vector<8x128xbf16>, vector<128x512xbf16>, vector<8x512xf32> -> vector<8x512xf32>
    %491 = arith.addf %488, %490 : vector<8x512xf32>
    %492 = vector.extract_strided_slice %491 {offsets = [0, 0], sizes = [8, 128], strides = [1, 1]} : vector<8x512xf32> to vector<8x128xf32>
    %cst_185 = arith.constant 5.000000e-01 : f32
    %493 = vector.broadcast %cst_185 : f32 to vector<8x128xf32>
    %494 = arith.mulf %493, %492 : vector<8x128xf32>
    %495 = math.tanh %494 : vector<8x128xf32>
    %cst_186 = arith.constant 5.000000e-01 : f32
    %496 = vector.broadcast %cst_186 : f32 to vector<8x128xf32>
    %497 = arith.mulf %496, %495 : vector<8x128xf32>
    %cst_187 = arith.constant 5.000000e-01 : f32
    %498 = vector.broadcast %cst_187 : f32 to vector<8x128xf32>
    %499 = arith.addf %497, %498 : vector<8x128xf32>
    %500 = vector.extract_strided_slice %491 {offsets = [0, 128], sizes = [8, 128], strides = [1, 1]} : vector<8x512xf32> to vector<8x128xf32>
    %cst_188 = arith.constant 5.000000e-01 : f32
    %501 = vector.broadcast %cst_188 : f32 to vector<8x128xf32>
    %502 = arith.mulf %501, %500 : vector<8x128xf32>
    %503 = math.tanh %502 : vector<8x128xf32>
    %cst_189 = arith.constant 5.000000e-01 : f32
    %504 = vector.broadcast %cst_189 : f32 to vector<8x128xf32>
    %505 = arith.mulf %504, %503 : vector<8x128xf32>
    %cst_190 = arith.constant 5.000000e-01 : f32
    %506 = vector.broadcast %cst_190 : f32 to vector<8x128xf32>
    %507 = arith.addf %505, %506 : vector<8x128xf32>
    %508 = vector.extract_strided_slice %491 {offsets = [0, 256], sizes = [8, 128], strides = [1, 1]} : vector<8x512xf32> to vector<8x128xf32>
    %509 = math.tanh %508 : vector<8x128xf32>
    %510 = vector.extract_strided_slice %491 {offsets = [0, 384], sizes = [8, 128], strides = [1, 1]} : vector<8x512xf32> to vector<8x128xf32>
    %cst_191 = arith.constant 5.000000e-01 : f32
    %511 = vector.broadcast %cst_191 : f32 to vector<8x128xf32>
    %512 = arith.mulf %511, %510 : vector<8x128xf32>
    %513 = math.tanh %512 : vector<8x128xf32>
    %cst_192 = arith.constant 5.000000e-01 : f32
    %514 = vector.broadcast %cst_192 : f32 to vector<8x128xf32>
    %515 = arith.mulf %514, %513 : vector<8x128xf32>
    %cst_193 = arith.constant 5.000000e-01 : f32
    %516 = vector.broadcast %cst_193 : f32 to vector<8x128xf32>
    %517 = arith.addf %515, %516 : vector<8x128xf32>
    %518 = arith.mulf %507, %483 : vector<8x128xf32>
    %519 = arith.mulf %499, %509 : vector<8x128xf32>
    %520 = arith.addf %518, %519 : vector<8x128xf32>
    %521 = math.tanh %520 : vector<8x128xf32>
    %522 = arith.mulf %517, %521 : vector<8x128xf32>
    %523 = arith.addi %0, %c2_i32_181 : i32
    %c8_i32_194 = arith.constant 8 : i32
    %524 = arith.cmpi slt, %523, %c8_i32_194 : i32
    %525 = arith.select %524, %522, %482 : vector<8x128xf32>
    %526 = arith.select %524, %520, %483 : vector<8x128xf32>
    %c3_i32_195 = arith.constant 3 : i32
    %c8_i32_196 = arith.constant 8 : i32
    %527 = arith.muli %c3_i32_195, %c8_i32_196 : i32
    %528 = tpu.assume_multiple %527, 8 : i32
    %529 = arith.index_cast %528 : i32 to index
    %c0_197 = arith.constant 0 : index
    %530 = vector.load %arg15[%529, %c0_197] : memref<64x512xbf16, #tpu.memory_space<vmem>>, vector<8x512xbf16>
    %531 = arith.extf %530 : vector<8x512xbf16> to vector<8x512xf32>
    %532 = arith.truncf %525 : vector<8x128xf32> to vector<8x128xbf16>
    %cst_198 = arith.constant dense<0.000000e+00> : vector<8x512xf32>
    %533 = tpu.matmul %532, %385, %cst_198 {dimension_numbers = #tpu.dot_dimension_numbers<[1], [0], [0], [1], [0, 0, 1, 1], [], []>} : vector<8x128xbf16>, vector<128x512xbf16>, vector<8x512xf32> -> vector<8x512xf32>
    %534 = arith.addf %531, %533 : vector<8x512xf32>
    %535 = vector.extract_strided_slice %534 {offsets = [0, 0], sizes = [8, 128], strides = [1, 1]} : vector<8x512xf32> to vector<8x128xf32>
    %cst_199 = arith.constant 5.000000e-01 : f32
    %536 = vector.broadcast %cst_199 : f32 to vector<8x128xf32>
    %537 = arith.mulf %536, %535 : vector<8x128xf32>
    %538 = math.tanh %537 : vector<8x128xf32>
    %cst_200 = arith.constant 5.000000e-01 : f32
    %539 = vector.broadcast %cst_200 : f32 to vector<8x128xf32>
    %540 = arith.mulf %539, %538 : vector<8x128xf32>
    %cst_201 = arith.constant 5.000000e-01 : f32
    %541 = vector.broadcast %cst_201 : f32 to vector<8x128xf32>
    %542 = arith.addf %540, %541 : vector<8x128xf32>
    %543 = vector.extract_strided_slice %534 {offsets = [0, 128], sizes = [8, 128], strides = [1, 1]} : vector<8x512xf32> to vector<8x128xf32>
    %cst_202 = arith.constant 5.000000e-01 : f32
    %544 = vector.broadcast %cst_202 : f32 to vector<8x128xf32>
    %545 = arith.mulf %544, %543 : vector<8x128xf32>
    %546 = math.tanh %545 : vector<8x128xf32>
    %cst_203 = arith.constant 5.000000e-01 : f32
    %547 = vector.broadcast %cst_203 : f32 to vector<8x128xf32>
    %548 = arith.mulf %547, %546 : vector<8x128xf32>
    %cst_204 = arith.constant 5.000000e-01 : f32
    %549 = vector.broadcast %cst_204 : f32 to vector<8x128xf32>
    %550 = arith.addf %548, %549 : vector<8x128xf32>
    %551 = vector.extract_strided_slice %534 {offsets = [0, 256], sizes = [8, 128], strides = [1, 1]} : vector<8x512xf32> to vector<8x128xf32>
    %552 = math.tanh %551 : vector<8x128xf32>
    %553 = vector.extract_strided_slice %534 {offsets = [0, 384], sizes = [8, 128], strides = [1, 1]} : vector<8x512xf32> to vector<8x128xf32>
    %cst_205 = arith.constant 5.000000e-01 : f32
    %554 = vector.broadcast %cst_205 : f32 to vector<8x128xf32>
    %555 = arith.mulf %554, %553 : vector<8x128xf32>
    %556 = math.tanh %555 : vector<8x128xf32>
    %cst_206 = arith.constant 5.000000e-01 : f32
    %557 = vector.broadcast %cst_206 : f32 to vector<8x128xf32>
    %558 = arith.mulf %557, %556 : vector<8x128xf32>
    %cst_207 = arith.constant 5.000000e-01 : f32
    %559 = vector.broadcast %cst_207 : f32 to vector<8x128xf32>
    %560 = arith.addf %558, %559 : vector<8x128xf32>
    %561 = arith.mulf %550, %526 : vector<8x128xf32>
    %562 = arith.mulf %542, %552 : vector<8x128xf32>
    %563 = arith.addf %561, %562 : vector<8x128xf32>
    %564 = math.tanh %563 : vector<8x128xf32>
    %565 = arith.mulf %560, %564 : vector<8x128xf32>
    %566 = arith.addi %0, %c3_i32_195 : i32
    %c8_i32_208 = arith.constant 8 : i32
    %567 = arith.cmpi slt, %566, %c8_i32_208 : i32
    %568 = arith.select %567, %565, %525 : vector<8x128xf32>
    %569 = arith.select %567, %563, %526 : vector<8x128xf32>
    %c4_i32_209 = arith.constant 4 : i32
    %c8_i32_210 = arith.constant 8 : i32
    %570 = arith.muli %c4_i32_209, %c8_i32_210 : i32
    %571 = tpu.assume_multiple %570, 8 : i32
    %572 = arith.index_cast %571 : i32 to index
    %c0_211 = arith.constant 0 : index
    %573 = vector.load %arg15[%572, %c0_211] : memref<64x512xbf16, #tpu.memory_space<vmem>>, vector<8x512xbf16>
    %574 = arith.extf %573 : vector<8x512xbf16> to vector<8x512xf32>
    %575 = arith.truncf %568 : vector<8x128xf32> to vector<8x128xbf16>
    %cst_212 = arith.constant dense<0.000000e+00> : vector<8x512xf32>
    %576 = tpu.matmul %575, %385, %cst_212 {dimension_numbers = #tpu.dot_dimension_numbers<[1], [0], [0], [1], [0, 0, 1, 1], [], []>} : vector<8x128xbf16>, vector<128x512xbf16>, vector<8x512xf32> -> vector<8x512xf32>
    %577 = arith.addf %574, %576 : vector<8x512xf32>
    %578 = vector.extract_strided_slice %577 {offsets = [0, 0], sizes = [8, 128], strides = [1, 1]} : vector<8x512xf32> to vector<8x128xf32>
    %cst_213 = arith.constant 5.000000e-01 : f32
    %579 = vector.broadcast %cst_213 : f32 to vector<8x128xf32>
    %580 = arith.mulf %579, %578 : vector<8x128xf32>
    %581 = math.tanh %580 : vector<8x128xf32>
    %cst_214 = arith.constant 5.000000e-01 : f32
    %582 = vector.broadcast %cst_214 : f32 to vector<8x128xf32>
    %583 = arith.mulf %582, %581 : vector<8x128xf32>
    %cst_215 = arith.constant 5.000000e-01 : f32
    %584 = vector.broadcast %cst_215 : f32 to vector<8x128xf32>
    %585 = arith.addf %583, %584 : vector<8x128xf32>
    %586 = vector.extract_strided_slice %577 {offsets = [0, 128], sizes = [8, 128], strides = [1, 1]} : vector<8x512xf32> to vector<8x128xf32>
    %cst_216 = arith.constant 5.000000e-01 : f32
    %587 = vector.broadcast %cst_216 : f32 to vector<8x128xf32>
    %588 = arith.mulf %587, %586 : vector<8x128xf32>
    %589 = math.tanh %588 : vector<8x128xf32>
    %cst_217 = arith.constant 5.000000e-01 : f32
    %590 = vector.broadcast %cst_217 : f32 to vector<8x128xf32>
    %591 = arith.mulf %590, %589 : vector<8x128xf32>
    %cst_218 = arith.constant 5.000000e-01 : f32
    %592 = vector.broadcast %cst_218 : f32 to vector<8x128xf32>
    %593 = arith.addf %591, %592 : vector<8x128xf32>
    %594 = vector.extract_strided_slice %577 {offsets = [0, 256], sizes = [8, 128], strides = [1, 1]} : vector<8x512xf32> to vector<8x128xf32>
    %595 = math.tanh %594 : vector<8x128xf32>
    %596 = vector.extract_strided_slice %577 {offsets = [0, 384], sizes = [8, 128], strides = [1, 1]} : vector<8x512xf32> to vector<8x128xf32>
    %cst_219 = arith.constant 5.000000e-01 : f32
    %597 = vector.broadcast %cst_219 : f32 to vector<8x128xf32>
    %598 = arith.mulf %597, %596 : vector<8x128xf32>
    %599 = math.tanh %598 : vector<8x128xf32>
    %cst_220 = arith.constant 5.000000e-01 : f32
    %600 = vector.broadcast %cst_220 : f32 to vector<8x128xf32>
    %601 = arith.mulf %600, %599 : vector<8x128xf32>
    %cst_221 = arith.constant 5.000000e-01 : f32
    %602 = vector.broadcast %cst_221 : f32 to vector<8x128xf32>
    %603 = arith.addf %601, %602 : vector<8x128xf32>
    %604 = arith.mulf %593, %569 : vector<8x128xf32>
    %605 = arith.mulf %585, %595 : vector<8x128xf32>
    %606 = arith.addf %604, %605 : vector<8x128xf32>
    %607 = math.tanh %606 : vector<8x128xf32>
    %608 = arith.mulf %603, %607 : vector<8x128xf32>
    %609 = arith.addi %0, %c4_i32_209 : i32
    %c8_i32_222 = arith.constant 8 : i32
    %610 = arith.cmpi slt, %609, %c8_i32_222 : i32
    %611 = arith.select %610, %608, %568 : vector<8x128xf32>
    %612 = arith.select %610, %606, %569 : vector<8x128xf32>
    %c5_i32_223 = arith.constant 5 : i32
    %c8_i32_224 = arith.constant 8 : i32
    %613 = arith.muli %c5_i32_223, %c8_i32_224 : i32
    %614 = tpu.assume_multiple %613, 8 : i32
    %615 = arith.index_cast %614 : i32 to index
    %c0_225 = arith.constant 0 : index
    %616 = vector.load %arg15[%615, %c0_225] : memref<64x512xbf16, #tpu.memory_space<vmem>>, vector<8x512xbf16>
    %617 = arith.extf %616 : vector<8x512xbf16> to vector<8x512xf32>
    %618 = arith.truncf %611 : vector<8x128xf32> to vector<8x128xbf16>
    %cst_226 = arith.constant dense<0.000000e+00> : vector<8x512xf32>
    %619 = tpu.matmul %618, %385, %cst_226 {dimension_numbers = #tpu.dot_dimension_numbers<[1], [0], [0], [1], [0, 0, 1, 1], [], []>} : vector<8x128xbf16>, vector<128x512xbf16>, vector<8x512xf32> -> vector<8x512xf32>
    %620 = arith.addf %617, %619 : vector<8x512xf32>
    %621 = vector.extract_strided_slice %620 {offsets = [0, 0], sizes = [8, 128], strides = [1, 1]} : vector<8x512xf32> to vector<8x128xf32>
    %cst_227 = arith.constant 5.000000e-01 : f32
    %622 = vector.broadcast %cst_227 : f32 to vector<8x128xf32>
    %623 = arith.mulf %622, %621 : vector<8x128xf32>
    %624 = math.tanh %623 : vector<8x128xf32>
    %cst_228 = arith.constant 5.000000e-01 : f32
    %625 = vector.broadcast %cst_228 : f32 to vector<8x128xf32>
    %626 = arith.mulf %625, %624 : vector<8x128xf32>
    %cst_229 = arith.constant 5.000000e-01 : f32
    %627 = vector.broadcast %cst_229 : f32 to vector<8x128xf32>
    %628 = arith.addf %626, %627 : vector<8x128xf32>
    %629 = vector.extract_strided_slice %620 {offsets = [0, 128], sizes = [8, 128], strides = [1, 1]} : vector<8x512xf32> to vector<8x128xf32>
    %cst_230 = arith.constant 5.000000e-01 : f32
    %630 = vector.broadcast %cst_230 : f32 to vector<8x128xf32>
    %631 = arith.mulf %630, %629 : vector<8x128xf32>
    %632 = math.tanh %631 : vector<8x128xf32>
    %cst_231 = arith.constant 5.000000e-01 : f32
    %633 = vector.broadcast %cst_231 : f32 to vector<8x128xf32>
    %634 = arith.mulf %633, %632 : vector<8x128xf32>
    %cst_232 = arith.constant 5.000000e-01 : f32
    %635 = vector.broadcast %cst_232 : f32 to vector<8x128xf32>
    %636 = arith.addf %634, %635 : vector<8x128xf32>
    %637 = vector.extract_strided_slice %620 {offsets = [0, 256], sizes = [8, 128], strides = [1, 1]} : vector<8x512xf32> to vector<8x128xf32>
    %638 = math.tanh %637 : vector<8x128xf32>
    %639 = vector.extract_strided_slice %620 {offsets = [0, 384], sizes = [8, 128], strides = [1, 1]} : vector<8x512xf32> to vector<8x128xf32>
    %cst_233 = arith.constant 5.000000e-01 : f32
    %640 = vector.broadcast %cst_233 : f32 to vector<8x128xf32>
    %641 = arith.mulf %640, %639 : vector<8x128xf32>
    %642 = math.tanh %641 : vector<8x128xf32>
    %cst_234 = arith.constant 5.000000e-01 : f32
    %643 = vector.broadcast %cst_234 : f32 to vector<8x128xf32>
    %644 = arith.mulf %643, %642 : vector<8x128xf32>
    %cst_235 = arith.constant 5.000000e-01 : f32
    %645 = vector.broadcast %cst_235 : f32 to vector<8x128xf32>
    %646 = arith.addf %644, %645 : vector<8x128xf32>
    %647 = arith.mulf %636, %612 : vector<8x128xf32>
    %648 = arith.mulf %628, %638 : vector<8x128xf32>
    %649 = arith.addf %647, %648 : vector<8x128xf32>
    %650 = math.tanh %649 : vector<8x128xf32>
    %651 = arith.mulf %646, %650 : vector<8x128xf32>
    %652 = arith.addi %0, %c5_i32_223 : i32
    %c8_i32_236 = arith.constant 8 : i32
    %653 = arith.cmpi slt, %652, %c8_i32_236 : i32
    %654 = arith.select %653, %651, %611 : vector<8x128xf32>
    %655 = arith.select %653, %649, %612 : vector<8x128xf32>
    %c6_i32_237 = arith.constant 6 : i32
    %c8_i32_238 = arith.constant 8 : i32
    %656 = arith.muli %c6_i32_237, %c8_i32_238 : i32
    %657 = tpu.assume_multiple %656, 8 : i32
    %658 = arith.index_cast %657 : i32 to index
    %c0_239 = arith.constant 0 : index
    %659 = vector.load %arg15[%658, %c0_239] : memref<64x512xbf16, #tpu.memory_space<vmem>>, vector<8x512xbf16>
    %660 = arith.extf %659 : vector<8x512xbf16> to vector<8x512xf32>
    %661 = arith.truncf %654 : vector<8x128xf32> to vector<8x128xbf16>
    %cst_240 = arith.constant dense<0.000000e+00> : vector<8x512xf32>
    %662 = tpu.matmul %661, %385, %cst_240 {dimension_numbers = #tpu.dot_dimension_numbers<[1], [0], [0], [1], [0, 0, 1, 1], [], []>} : vector<8x128xbf16>, vector<128x512xbf16>, vector<8x512xf32> -> vector<8x512xf32>
    %663 = arith.addf %660, %662 : vector<8x512xf32>
    %664 = vector.extract_strided_slice %663 {offsets = [0, 0], sizes = [8, 128], strides = [1, 1]} : vector<8x512xf32> to vector<8x128xf32>
    %cst_241 = arith.constant 5.000000e-01 : f32
    %665 = vector.broadcast %cst_241 : f32 to vector<8x128xf32>
    %666 = arith.mulf %665, %664 : vector<8x128xf32>
    %667 = math.tanh %666 : vector<8x128xf32>
    %cst_242 = arith.constant 5.000000e-01 : f32
    %668 = vector.broadcast %cst_242 : f32 to vector<8x128xf32>
    %669 = arith.mulf %668, %667 : vector<8x128xf32>
    %cst_243 = arith.constant 5.000000e-01 : f32
    %670 = vector.broadcast %cst_243 : f32 to vector<8x128xf32>
    %671 = arith.addf %669, %670 : vector<8x128xf32>
    %672 = vector.extract_strided_slice %663 {offsets = [0, 128], sizes = [8, 128], strides = [1, 1]} : vector<8x512xf32> to vector<8x128xf32>
    %cst_244 = arith.constant 5.000000e-01 : f32
    %673 = vector.broadcast %cst_244 : f32 to vector<8x128xf32>
    %674 = arith.mulf %673, %672 : vector<8x128xf32>
    %675 = math.tanh %674 : vector<8x128xf32>
    %cst_245 = arith.constant 5.000000e-01 : f32
    %676 = vector.broadcast %cst_245 : f32 to vector<8x128xf32>
    %677 = arith.mulf %676, %675 : vector<8x128xf32>
    %cst_246 = arith.constant 5.000000e-01 : f32
    %678 = vector.broadcast %cst_246 : f32 to vector<8x128xf32>
    %679 = arith.addf %677, %678 : vector<8x128xf32>
    %680 = vector.extract_strided_slice %663 {offsets = [0, 256], sizes = [8, 128], strides = [1, 1]} : vector<8x512xf32> to vector<8x128xf32>
    %681 = math.tanh %680 : vector<8x128xf32>
    %682 = vector.extract_strided_slice %663 {offsets = [0, 384], sizes = [8, 128], strides = [1, 1]} : vector<8x512xf32> to vector<8x128xf32>
    %cst_247 = arith.constant 5.000000e-01 : f32
    %683 = vector.broadcast %cst_247 : f32 to vector<8x128xf32>
    %684 = arith.mulf %683, %682 : vector<8x128xf32>
    %685 = math.tanh %684 : vector<8x128xf32>
    %cst_248 = arith.constant 5.000000e-01 : f32
    %686 = vector.broadcast %cst_248 : f32 to vector<8x128xf32>
    %687 = arith.mulf %686, %685 : vector<8x128xf32>
    %cst_249 = arith.constant 5.000000e-01 : f32
    %688 = vector.broadcast %cst_249 : f32 to vector<8x128xf32>
    %689 = arith.addf %687, %688 : vector<8x128xf32>
    %690 = arith.mulf %679, %655 : vector<8x128xf32>
    %691 = arith.mulf %671, %681 : vector<8x128xf32>
    %692 = arith.addf %690, %691 : vector<8x128xf32>
    %693 = math.tanh %692 : vector<8x128xf32>
    %694 = arith.mulf %689, %693 : vector<8x128xf32>
    %695 = arith.addi %0, %c6_i32_237 : i32
    %c8_i32_250 = arith.constant 8 : i32
    %696 = arith.cmpi slt, %695, %c8_i32_250 : i32
    %697 = arith.select %696, %694, %654 : vector<8x128xf32>
    %698 = arith.select %696, %692, %655 : vector<8x128xf32>
    %c7_i32_251 = arith.constant 7 : i32
    %c8_i32_252 = arith.constant 8 : i32
    %699 = arith.muli %c7_i32_251, %c8_i32_252 : i32
    %700 = tpu.assume_multiple %699, 8 : i32
    %701 = arith.index_cast %700 : i32 to index
    %c0_253 = arith.constant 0 : index
    %702 = vector.load %arg15[%701, %c0_253] : memref<64x512xbf16, #tpu.memory_space<vmem>>, vector<8x512xbf16>
    %703 = arith.extf %702 : vector<8x512xbf16> to vector<8x512xf32>
    %704 = arith.truncf %697 : vector<8x128xf32> to vector<8x128xbf16>
    %cst_254 = arith.constant dense<0.000000e+00> : vector<8x512xf32>
    %705 = tpu.matmul %704, %385, %cst_254 {dimension_numbers = #tpu.dot_dimension_numbers<[1], [0], [0], [1], [0, 0, 1, 1], [], []>} : vector<8x128xbf16>, vector<128x512xbf16>, vector<8x512xf32> -> vector<8x512xf32>
    %706 = arith.addf %703, %705 : vector<8x512xf32>
    %707 = vector.extract_strided_slice %706 {offsets = [0, 0], sizes = [8, 128], strides = [1, 1]} : vector<8x512xf32> to vector<8x128xf32>
    %cst_255 = arith.constant 5.000000e-01 : f32
    %708 = vector.broadcast %cst_255 : f32 to vector<8x128xf32>
    %709 = arith.mulf %708, %707 : vector<8x128xf32>
    %710 = math.tanh %709 : vector<8x128xf32>
    %cst_256 = arith.constant 5.000000e-01 : f32
    %711 = vector.broadcast %cst_256 : f32 to vector<8x128xf32>
    %712 = arith.mulf %711, %710 : vector<8x128xf32>
    %cst_257 = arith.constant 5.000000e-01 : f32
    %713 = vector.broadcast %cst_257 : f32 to vector<8x128xf32>
    %714 = arith.addf %712, %713 : vector<8x128xf32>
    %715 = vector.extract_strided_slice %706 {offsets = [0, 128], sizes = [8, 128], strides = [1, 1]} : vector<8x512xf32> to vector<8x128xf32>
    %cst_258 = arith.constant 5.000000e-01 : f32
    %716 = vector.broadcast %cst_258 : f32 to vector<8x128xf32>
    %717 = arith.mulf %716, %715 : vector<8x128xf32>
    %718 = math.tanh %717 : vector<8x128xf32>
    %cst_259 = arith.constant 5.000000e-01 : f32
    %719 = vector.broadcast %cst_259 : f32 to vector<8x128xf32>
    %720 = arith.mulf %719, %718 : vector<8x128xf32>
    %cst_260 = arith.constant 5.000000e-01 : f32
    %721 = vector.broadcast %cst_260 : f32 to vector<8x128xf32>
    %722 = arith.addf %720, %721 : vector<8x128xf32>
    %723 = vector.extract_strided_slice %706 {offsets = [0, 256], sizes = [8, 128], strides = [1, 1]} : vector<8x512xf32> to vector<8x128xf32>
    %724 = math.tanh %723 : vector<8x128xf32>
    %725 = vector.extract_strided_slice %706 {offsets = [0, 384], sizes = [8, 128], strides = [1, 1]} : vector<8x512xf32> to vector<8x128xf32>
    %cst_261 = arith.constant 5.000000e-01 : f32
    %726 = vector.broadcast %cst_261 : f32 to vector<8x128xf32>
    %727 = arith.mulf %726, %725 : vector<8x128xf32>
    %728 = math.tanh %727 : vector<8x128xf32>
    %cst_262 = arith.constant 5.000000e-01 : f32
    %729 = vector.broadcast %cst_262 : f32 to vector<8x128xf32>
    %730 = arith.mulf %729, %728 : vector<8x128xf32>
    %cst_263 = arith.constant 5.000000e-01 : f32
    %731 = vector.broadcast %cst_263 : f32 to vector<8x128xf32>
    %732 = arith.addf %730, %731 : vector<8x128xf32>
    %733 = arith.mulf %722, %698 : vector<8x128xf32>
    %734 = arith.mulf %714, %724 : vector<8x128xf32>
    %735 = arith.addf %733, %734 : vector<8x128xf32>
    %736 = math.tanh %735 : vector<8x128xf32>
    %737 = arith.mulf %732, %736 : vector<8x128xf32>
    %738 = arith.addi %0, %c7_i32_251 : i32
    %c8_i32_264 = arith.constant 8 : i32
    %739 = arith.cmpi slt, %738, %c8_i32_264 : i32
    %740 = arith.select %739, %737, %697 : vector<8x128xf32>
    %741 = arith.select %739, %735, %698 : vector<8x128xf32>
    %c8_i32_265 = arith.constant 8 : i32
    %c1_266 = arith.constant 1 : index
    %c0_267 = arith.constant 0 : index
    %c0_268 = arith.constant 0 : index
    %742 = vector.load %arg12[%c1_266, %c0_267, %c0_268] : memref<2x8x128xf32, #tpu.memory_space<vmem>>, vector<1x8x128xf32>
    %743 = vector.shape_cast %742 : vector<1x8x128xf32> to vector<8x128xf32>
    %744 = vector.shape_cast %740 : vector<8x128xf32> to vector<1x8x128xf32>
    tpu.vector_store %arg12[%c1_266, %c0_267, %c0_268], %744 {strides = array<i32>} : memref<2x8x128xf32, #tpu.memory_space<vmem>>, vector<1x8x128xf32>,
    %c1_269 = arith.constant 1 : index
    %c0_270 = arith.constant 0 : index
    %c0_271 = arith.constant 0 : index
    %745 = vector.load %arg13[%c1_269, %c0_270, %c0_271] : memref<2x8x128xf32, #tpu.memory_space<vmem>>, vector<1x8x128xf32>
    %746 = vector.shape_cast %745 : vector<1x8x128xf32> to vector<8x128xf32>
    %747 = vector.shape_cast %741 : vector<8x128xf32> to vector<1x8x128xf32>
    tpu.vector_store %arg13[%c1_269, %c0_270, %c0_271], %747 {strides = array<i32>} : memref<2x8x128xf32, #tpu.memory_space<vmem>>, vector<1x8x128xf32>,
    %c0_i32_272 = arith.constant 0 : i32
    %748 = arith.cmpi eq, %arg1, %c0_i32_272 : i32
    %749 = arith.extui %748 : i1 to i32
    %c0_i32_273 = arith.constant 0 : i32
    %750 = arith.cmpi ne, %749, %c0_i32_273 : i32
    scf.if %750 {
      %c1_274 = arith.constant 1 : index
      %c0_275 = arith.constant 0 : index
      %c0_276 = arith.constant 0 : index
      %751 = vector.load %arg12[%c1_274, %c0_275, %c0_276] : memref<2x8x128xf32, #tpu.memory_space<vmem>>, vector<1x8x128xf32>
      %752 = vector.shape_cast %751 : vector<1x8x128xf32> to vector<8x128xf32>
      %753 = arith.truncf %752 : vector<8x128xf32> to vector<8x128xbf16>
      %c0_277 = arith.constant 0 : index
      %c0_278 = arith.constant 0 : index
      %754 = vector.load %arg9[%c0_277, %c0_278] : memref<128x128xbf16, #tpu.memory_space<vmem>>, vector<128x128xbf16>
      %cst_279 = arith.constant dense<0.000000e+00> : vector<8x128xf32>
      %755 = tpu.matmul %753, %754, %cst_279 {dimension_numbers = #tpu.dot_dimension_numbers<[1], [0], [0], [1], [0, 0, 1, 1], [], []>} : vector<8x128xbf16>, vector<128x128xbf16>, vector<8x128xf32> -> vector<8x128xf32>
      %c0_280 = arith.constant 0 : index
      %c0_281 = arith.constant 0 : index
      %756 = vector.load %arg10[%c0_280, %c0_281] : memref<1x128xf32, #tpu.memory_space<vmem>>, vector<1x128xf32>
      %757 = vector.broadcast %756 : vector<1x128xf32> to vector<8x128xf32>
      %758 = arith.addf %755, %757 : vector<8x128xf32>
      %c0_282 = arith.constant 0 : index
      %c0_283 = arith.constant 0 : index
      %759 = vector.load %arg11[%c0_282, %c0_283] : memref<8x128xf32, #tpu.memory_space<vmem>>, vector<8x128xf32>
      tpu.vector_store %arg11[%c0_282, %c0_283], %758 {strides = array<i32>} : memref<8x128xf32, #tpu.memory_space<vmem>>, vector<8x128xf32>,
    } else {
    }
    return
  }
  func.func @transform_0(%arg0: i32, %arg1: i32) -> (i32, i32, i32) {
    %c0_i32 = arith.constant 0 : i32
    %c0_i32_0 = arith.constant 0 : i32
    return %arg1, %arg0, %c0_i32 : i32, i32, i32
  }
  func.func @transform_1(%arg0: i32, %arg1: i32) -> (i32, i32) {
    %c0_i32 = arith.constant 0 : i32
    %c0_i32_0 = arith.constant 0 : i32
    %c0_i32_1 = arith.constant 0 : i32
    return %c0_i32, %c0_i32_0 : i32, i32
  }
  func.func @transform_2(%arg0: i32, %arg1: i32) -> (i32, i32) {
    %c0_i32 = arith.constant 0 : i32
    %c0_i32_0 = arith.constant 0 : i32
    %c0_i32_1 = arith.constant 0 : i32
    return %c0_i32, %c0_i32_0 : i32, i32
  }
  func.func @transform_3(%arg0: i32, %arg1: i32) -> (i32, i32) {
    %c0_i32 = arith.constant 0 : i32
    %c0_i32_0 = arith.constant 0 : i32
    %c0_i32_1 = arith.constant 0 : i32
    return %c0_i32, %c0_i32_0 : i32, i32
  }
  func.func @transform_4(%arg0: i32, %arg1: i32) -> (i32, i32) {
    %c0_i32 = arith.constant 0 : i32
    %c0_i32_0 = arith.constant 0 : i32
    %c0_i32_1 = arith.constant 0 : i32
    return %c0_i32, %c0_i32_0 : i32, i32
  }
  func.func @transform_5(%arg0: i32, %arg1: i32) -> (i32, i32) {
    %c0_i32 = arith.constant 0 : i32
    %c0_i32_0 = arith.constant 0 : i32
    %c0_i32_1 = arith.constant 0 : i32
    return %c0_i32, %c0_i32_0 : i32, i32
  }
  func.func @transform_6(%arg0: i32, %arg1: i32) -> (i32, i32) {
    %c0_i32 = arith.constant 0 : i32
    %c0_i32_0 = arith.constant 0 : i32
    %c0_i32_1 = arith.constant 0 : i32
    return %c0_i32, %c0_i32_0 : i32, i32
  }
  func.func @transform_7(%arg0: i32, %arg1: i32) -> (i32, i32) {
    %c0_i32 = arith.constant 0 : i32
    %c0_i32_0 = arith.constant 0 : i32
    %c0_i32_1 = arith.constant 0 : i32
    return %c0_i32, %c0_i32_0 : i32, i32
  }
  func.func @transform_8(%arg0: i32, %arg1: i32) -> (i32, i32) {
    %c0_i32 = arith.constant 0 : i32
    %c0_i32_0 = arith.constant 0 : i32
    %c0_i32_1 = arith.constant 0 : i32
    return %c0_i32, %c0_i32_0 : i32, i32
  }
  func.func @transform_9(%arg0: i32, %arg1: i32) -> (i32, i32) {
    %c0_i32 = arith.constant 0 : i32
    %c0_i32_0 = arith.constant 0 : i32
    return %arg0, %c0_i32 : i32, i32
  }
}

</mosaic_0001>

<bundles_post_ra>
// kernel: lstm_classifier_forward.1
= control target key start
LH: loop header
LB: loop body
LE: loop exit
PB: predicated region body
PF: predicated region fallthrough
CT: control target
= control target key end

     0   :  { %14 = vsyncpa [#allocation7], 0  ;;  %s5533_s0 = inlined_call_operand.vmem [shape: bf16[8,8,128], index: 0, kind: input, shape index: {}]   ;;  %s5534_s1 = inlined_call_operand.hbm [shape: bf16[128,512], index: 1, kind: input, shape index: {}]   ;;  %s5535_s2 = inlined_call_operand.hbm [shape: bf16[128,512], index: 2, kind: input, shape index: {}]   ;;  %s5536_s3 = inlined_call_operand.vmem [shape: f32[1,512], index: 3, kind: input, shape index: {}]   ;;  %s5537_s4 = inlined_call_operand.hbm [shape: bf16[128,512], index: 4, kind: input, shape index: {}]   ;;  %s5538_s5 = inlined_call_operand.hbm [shape: bf16[128,512], index: 5, kind: input, shape index: {}]   ;;  %s5539_s6 = inlined_call_operand.vmem [shape: f32[1,512], index: 6, kind: input, shape index: {}]   ;;  %s5540_s7 = inlined_call_operand.vmem [shape: bf16[128,128], index: 7, kind: input, shape index: {}]   ;;  %s5541_s8 = inlined_call_operand.vmem [shape: f32[1,128], index: 8, kind: input, shape index: {}]   ;;  %s5542_s9 = inlined_call_operand.vmem [shape: f32[8,128], index: 9, kind: output, shape index: {}]  }
   0x1   :  { %15 = vsyncpa [#allocation9], 0 }
   0x2   :  { %16 = vsyncpa [#allocation12], 0  ;;  %s4254_s30 = smov [#allocation8]   ;;  %s4255_s11 = smov [#allocation6]  }
   0x3   :  { %s36_s10 = sshll.u32 %s4254_s30, 4  ;;  %s24_s12 = sshll.u32 %s4255_s11, 4  ;;  %s37_s10 = int_to_ptr.vmem [resolvable:$true] %s36_s10  ;;  %s25_s12 = int_to_ptr.vmem [resolvable:$true] %s24_s12 }
   0x4   :  { %s4176_s13 = scalar_lea.vmem %s37_s10, 4096  ;;  %p4181_p1 = scmp.lt.s32.totalorder %s37_s10, %s37_s10 }
   0x5   :  { %p4177_p0 = scmp.ne.s32.totalorder %s37_s10, %s4176_s13  ;;  %p4182_p2 = scmp.lt.s32.totalorder %s4176_s13, %s4176_s13 }
   0x7   :  { %p4183_p3 = por %p4182_p2, %p4181_p1 }
   0x9   :  { %p4184_p4 = pnand %p4183_p3, %p4177_p0 }
   0xb   :  { %4187 = shalt.err (!%p4184_p4)
}
   0xc   :  { %s4256_s14 = smov 256   ;;  %s4257_s15 = smov 16  }
   0xd   :  { %42 = dma.hbm_to_vmem [thread:$0]  %s5535_s2, 4096, %s37_s10, [#allocation9], %s4256_s14, %s4256_s14, %s4257_s15  }
   0xe   :  { %s4196_s18 = scalar_lea.vmem %s25_s12, 4096  ;;  %p4201_p6 = scmp.lt.s32.totalorder %s25_s12, %s25_s12 }
   0xf   :  { %p4197_p5 = scmp.ne.s32.totalorder %s25_s12, %s4196_s18  ;;  %p4202_p7 = scmp.lt.s32.totalorder %s4196_s18, %s4196_s18 }
  0x11   :  { %p4203_p8 = por %p4202_p7, %p4201_p6 }
  0x13   :  { %p4204_p9 = pnand %p4203_p8, %p4197_p5 }
  0x15   :  { %4207 = shalt.err (!%p4204_p9)
}
  0x16   :  { %30 = dma.hbm_to_vmem [thread:$0]  %s5534_s1, 4096, %s25_s12, [#allocation7], %s4256_s14, %s4256_s14, %s4257_s15  }
  0x17   :  { %s4258_s21 = smov [#allocation10]   ;;  %s4259_s23 = smov [#allocation11]  }
  0x18   :  { %s50_s22 = sshll.u32 %s4258_s21, 4  ;;  %s62_s24 = sshll.u32 %s4259_s23, 4  ;;  %s51_s22 = int_to_ptr.vmem [resolvable:$true] %s50_s22  ;;  %s63_s24 = int_to_ptr.vmem [resolvable:$true] %s62_s24 }
  0x19   :  { %s4216_s2 = scalar_lea.vmem %s51_s22, 4096  ;;  %p4221_p11 = scmp.lt.s32.totalorder %s51_s22, %s51_s22 }
  0x1a   :  { %p4217_p10 = scmp.ne.s32.totalorder %s51_s22, %s4216_s2  ;;  %p4222_p12 = scmp.lt.s32.totalorder %s4216_s2, %s4216_s2 }
  0x1c   :  { %p4223_p13 = por %p4222_p12, %p4221_p11 }
  0x1e   :  { %p4224_p0 = pnand %p4223_p13, %p4217_p10 }
  0x20   :  { %4227 = shalt.err (!%p4224_p0)
}
  0x21   :  { %56 = dma.hbm_to_vmem [thread:$0]  %s5537_s4, 4096, %s51_s22, [#allocation9], %s4256_s14, %s4256_s14, %s4257_s15  }
  0x22   :  { %s4236_s1 = scalar_lea.vmem %s63_s24, 4096  ;;  %p4241_p2 = scmp.lt.s32.totalorder %s63_s24, %s63_s24 }
  0x23   :  { %p4237_p1 = scmp.ne.s32.totalorder %s63_s24, %s4236_s1  ;;  %p4242_p3 = scmp.lt.s32.totalorder %s4236_s1, %s4236_s1 }
  0x25   :  { %p4243_p4 = por %p4242_p3, %p4241_p2 }
  0x27   :  { %p4244_p5 = pnand %p4243_p4, %p4237_p1 }
  0x29   :  { %4247 = shalt.err (!%p4244_p5)
}
  0x2a   :  { %68 = dma.hbm_to_vmem [thread:$0]  %s5538_s5, 4096, %s63_s24, [#allocation12], %s4256_s14, %s4256_s14, %s4257_s15  }
  0x2b   :  { %4248 = dma.done.wait [#allocation7], 4096  }
  0x2c   :  { %4249 = vsyncadd [#allocation7], 4294963200 }
  0x2d   :  { %4250 = dma.done.wait [#allocation9], 8192  }
  0x2e   :  { %4251 = vsyncadd [#allocation9], 4294959104 }
  0x2f   :  { %4252 = dma.done.wait [#allocation12], 4096  }
  0x30   :  { %4253 = vsyncadd [#allocation12], 4294963200  ;;  %v5549_v0 = vmov 0   ;;  %v3740_v1 = vld [vmem:[#allocation6 + $0xe4] ss:$16 sps:$4 sm:$0xff]   ;;  %v3801_v44 = vld [vmem:[%s5533_s0 + $0x8] sm:$0xff]  }
  0x31   :  { %407 = vmatprep.mubr.bf16.mxu0 %v5549_v0  ;;  %480 = vmatprep.mubr.bf16.mxu1 %v5549_v0  ;;  %v3742_v2 = vld [vmem:[#allocation6 + $0xec] ss:$16 sps:$4 sm:$0xff]   ;;  %v3744_v3 = vld [vmem:[#allocation6 + $0xe0] ss:$16 sps:$4 sm:$0xff]   ;;  %v3745_v4 = vld [vmem:[#allocation6 + $0xe8] ss:$16 sps:$4 sm:$0xff]  }
  0x32   :  { %375 = vmatprep.subr.bf16.mxu0 %v3740_v1  ;;  %448 = vmatprep.subr.bf16.mxu1 %v3742_v2  ;;  %v3746_v5 = vld [vmem:[#allocation6 + $0xc4] ss:$16 sps:$4 sm:$0xff]   ;;  %v3748_v6 = vld [vmem:[#allocation6 + $0xcc] ss:$16 sps:$4 sm:$0xff]   ;;  %v3750_v7 = vld [vmem:[#allocation6 + $0xc0] ss:$16 sps:$4 sm:$0xff]  }
  0x33   :  { %376 = vmatpush1.bf16.msra.mxu0 %v3744_v3  ;;  %449 = vmatpush1.bf16.msra.mxu1 %v3745_v4  ;;  %v3751_v8 = vld [vmem:[#allocation6 + $0xc8] ss:$16 sps:$4 sm:$0xff]   ;;  %v3752_v9 = vld [vmem:[#allocation6 + $0xa4] ss:$16 sps:$4 sm:$0xff]   ;;  %v3754_v10 = vld [vmem:[#allocation6 + $0xac] ss:$16 sps:$4 sm:$0xff]  }
  0x34   :  { %377 = vmatprep.subr.bf16.mxu0 %v3746_v5  ;;  %450 = vmatprep.subr.bf16.mxu1 %v3748_v6  ;;  %v3756_v11 = vld [vmem:[#allocation6 + $0xa0] ss:$16 sps:$4 sm:$0xff]   ;;  %v3757_v12 = vld [vmem:[#allocation6 + $0xa8] ss:$16 sps:$4 sm:$0xff]   ;;  %v3758_v13 = vld [vmem:[#allocation6 + $0x84] ss:$16 sps:$4 sm:$0xff]  }
  0x35   :  { %v3760_v14 = vld [vmem:[#allocation6 + $0x8c] ss:$16 sps:$4 sm:$0xff]   ;;  %v3762_v15 = vld [vmem:[#allocation6 + $0x80] ss:$16 sps:$4 sm:$0xff]   ;;  %v3763_v16 = vld [vmem:[#allocation6 + $0x88] ss:$16 sps:$4 sm:$0xff]  }
  0x36   :  { %v3764_v17 = vld [vmem:[#allocation6 + $0x64] ss:$16 sps:$4 sm:$0xff]   ;;  %v3766_v18 = vld [vmem:[#allocation6 + $0x6c] ss:$16 sps:$4 sm:$0xff]   ;;  %v3768_v19 = vld [vmem:[#allocation6 + $0x60] ss:$16 sps:$4 sm:$0xff]  }
  0x37   :  { %378 = vmatpush1.bf16.msra.mxu0 %v3750_v7  ;;  %451 = vmatpush1.bf16.msra.mxu1 %v3751_v8  ;;  %v3769_v20 = vld [vmem:[#allocation6 + $0x68] ss:$16 sps:$4 sm:$0xff]   ;;  %v3770_v21 = vld [vmem:[#allocation6 + $0x44] ss:$16 sps:$4 sm:$0xff]   ;;  %v3772_v22 = vld [vmem:[#allocation6 + $0x4c] ss:$16 sps:$4 sm:$0xff]   ;;  %v171_v7 = vlaneseq }
  0x38   :  { %379 = vmatprep.subr.bf16.mxu0 %v3752_v9  ;;  %452 = vmatprep.subr.bf16.mxu1 %v3754_v10  ;;  %v3774_v23 = vld [vmem:[#allocation6 + $0x40] ss:$16 sps:$4 sm:$0xff]   ;;  %v3775_v24 = vld [vmem:[#allocation6 + $0x48] ss:$16 sps:$4 sm:$0xff]   ;;  %v3776_v25 = vld [vmem:[#allocation6 + $0x24] ss:$16 sps:$4 sm:$0xff]  }
  0x39   :  { %v3778_v26 = vld [vmem:[#allocation6 + $0x2c] ss:$16 sps:$4 sm:$0xff]   ;;  %v3780_v27 = vld [vmem:[#allocation6 + $0x20] ss:$16 sps:$4 sm:$0xff]   ;;  %v3781_v28 = vld [vmem:[#allocation6 + $0x28] ss:$16 sps:$4 sm:$0xff]  }
  0x3a   :  { %v3782_v29 = vld [vmem:[#allocation6 + $0x4] ss:$16 sps:$4 sm:$0xff]   ;;  %v3784_v30 = vld [vmem:[#allocation6 + $0xc] ss:$16 sps:$4 sm:$0xff]   ;;  %v3786_v31 = vld [vmem:[#allocation6] ss:$16 sps:$4 sm:$0xff]  }
  0x3b   :  { %380 = vmatpush1.bf16.msra.mxu0 %v3756_v11  ;;  %453 = vmatpush1.bf16.msra.mxu1 %v3757_v12  ;;  %v3787_v32 = vld [vmem:[#allocation6 + $0x8] ss:$16 sps:$4 sm:$0xff]   ;;  %v4340_v33 = vld [vmem:[#allocation8 + $0xe4] ss:$16 sps:$4 sm:$0xff]   ;;  %v4342_v34 = vld [vmem:[#allocation8 + $0xec] ss:$16 sps:$4 sm:$0xff]  }
  0x3c   :  { %381 = vmatprep.subr.bf16.mxu0 %v3758_v13  ;;  %454 = vmatprep.subr.bf16.mxu1 %v3760_v14  ;;  %v3788_v35 = vld [vmem:[%s5533_s0] sm:$0xff]   ;;  %v4349_v37 = vld [vmem:[#allocation8 + $0xe8] ss:$16 sps:$4 sm:$0xff]   ;;  %v4355_v39 = vld [vmem:[#allocation8 + $0xcc] ss:$16 sps:$4 sm:$0xff]   ;;  %v5543_v6 = vmov 0.0|0.0  }
  0x3d   :  { %v4347_v36 = vld [vmem:[#allocation8 + $0xe0] ss:$16 sps:$4 sm:$0xff]   ;;  %v4353_v38 = vld [vmem:[#allocation8 + $0xc4] ss:$16 sps:$4 sm:$0xff]   ;;  %v4361_v41 = vld [vmem:[#allocation8 + $0xc8] ss:$16 sps:$4 sm:$0xff]  }
  0x3e   :  { %v4357_v40 = vld [vmem:[#allocation8 + $0xc0] ss:$16 sps:$4 sm:$0xff]   ;;  %v4365_v42 = vld [vmem:[#allocation8 + $0xa4] ss:$16 sps:$4 sm:$0xff]   ;;  %v4367_v43 = vld [vmem:[#allocation8 + $0xac] ss:$16 sps:$4 sm:$0xff]  }
  0x3f   :  { %382 = vmatpush1.bf16.msra.mxu0 %v3762_v15  ;;  %455 = vmatpush1.bf16.msra.mxu1 %v3763_v16  ;;  %v4374_v45 = vld [vmem:[#allocation8 + $0xa0] ss:$16 sps:$4 sm:$0xff]   ;;  %v4376_v46 = vld [vmem:[#allocation8 + $0xa8] ss:$16 sps:$4 sm:$0xff]   ;;  %v4380_v47 = vld [vmem:[#allocation8 + $0x84] ss:$16 sps:$4 sm:$0xff]  }
  0x40   :  { %383 = vmatprep.subr.bf16.mxu0 %v3764_v17  ;;  %456 = vmatprep.subr.bf16.mxu1 %v3766_v18  ;;  %v4384_v48 = vld [vmem:[#allocation8 + $0x8c] ss:$16 sps:$4 sm:$0xff]   ;;  %v4386_v49 = vld [vmem:[#allocation8 + $0x80] ss:$16 sps:$4 sm:$0xff]   ;;  %v4388_v50 = vld [vmem:[#allocation8 + $0x88] ss:$16 sps:$4 sm:$0xff]  }
  0x41   :  { %v4392_v51 = vld [vmem:[#allocation8 + $0x64] ss:$16 sps:$4 sm:$0xff]   ;;  %v4396_v52 = vld [vmem:[#allocation8 + $0x6c] ss:$16 sps:$4 sm:$0xff]   ;;  %v4403_v54 = vld [vmem:[#allocation8 + $0x60] ss:$16 sps:$4 sm:$0xff]  }
  0x42   :  { %v3814_v53 = vld [vmem:[%s5533_s0 + $0x10] sm:$0xff]   ;;  %v4405_v55 = vld [vmem:[#allocation8 + $0x68] ss:$16 sps:$4 sm:$0xff]   ;;  %v4409_v57 = vld [vmem:[#allocation8 + $0x4c] ss:$16 sps:$4 sm:$0xff]   ;;  %v4494_v8 = vshrl.u32 %v171_v7, 7 }
  0x43   :  { %384 = vmatpush1.bf16.msra.mxu0 %v3768_v19  ;;  %457 = vmatpush1.bf16.msra.mxu1 %v3769_v20  ;;  %v4407_v56 = vld [vmem:[#allocation8 + $0x44] ss:$16 sps:$4 sm:$0xff]   ;;  %v4415_v58 = vld [vmem:[#allocation8 + $0x40] ss:$16 sps:$4 sm:$0xff]   ;;  %v4417_v59 = vld [vmem:[#allocation8 + $0x48] ss:$16 sps:$4 sm:$0xff]  }
  0x44   :  { %385 = vmatprep.subr.bf16.mxu0 %v3770_v21  ;;  %458 = vmatprep.subr.bf16.mxu1 %v3772_v22  ;;  %v4419_v60 = vld [vmem:[#allocation8 + $0x24] ss:$16 sps:$4 sm:$0xff]   ;;  %v4421_v61 = vld [vmem:[#allocation8 + $0x2c] ss:$16 sps:$4 sm:$0xff]   ;;  %v4432_v63 = vld [vmem:[#allocation8 + $0x20] ss:$16 sps:$4 sm:$0xff]  }
  0x45   :  { %v3827_v62 = vld [vmem:[%s5533_s0 + $0x18] sm:$0xff]   ;;  %v4436_v2 = vld [vmem:[#allocation8 + $0x4] ss:$16 sps:$4 sm:$0xff]   ;;  %v4444_v4 = vld [vmem:[#allocation8] ss:$16 sps:$4 sm:$0xff]   ;;  %5566 = vst [vmem:[#allocation16_spill] sm:$0xff] %v4494_v8 }
  0x46   :  { %v4434_v1 = vld [vmem:[#allocation8 + $0x28] ss:$16 sps:$4 sm:$0xff]   ;;  %v4438_v3 = vld [vmem:[#allocation8 + $0xc] ss:$16 sps:$4 sm:$0xff]   ;;  %v5547_v9 = vsub.s32 2, %v4494_v8  ;;  %v5548_v10 = vsub.s32 0, %v4494_v8 }
  0x47   :  { %386 = vmatpush1.bf16.msra.mxu0 %v3774_v23  ;;  %459 = vmatpush1.bf16.msra.mxu1 %v3775_v24  ;;  %v4446_v5 = vld [vmem:[#allocation8 + $0x8] ss:$16 sps:$4 sm:$0xff]   ;;  %v5545_v11 = vsub.s32 3, %v4494_v8  ;;  %v161_v12 = vld [vmem:[%s5536_s3] sm:$0xf]  ;;  %v5546_v16 = vsub.s32 1, %v4494_v8 }
  0x48   :  { %387 = vmatprep.subr.bf16.mxu0 %v3776_v25  ;;  %460 = vmatprep.subr.bf16.mxu1 %v3778_v26  ;;  %v4506_v15 = vrot.slane %v161_v12, %v5547_v9  ;;  %v4513_v19 = vrot.slane %v161_v12, %v5548_v10  ;;  %vm4263_vm0 = vmmov 0  }
  0x49   :  { %v4517_v20 = vrot.slane %v161_v12, %v5545_v11  ;;  %v4521_v23 = vrot.slane %v161_v12, %v5546_v16 }
  0x4b   :  { %388 = vmatpush1.bf16.msra.mxu0 %v3780_v27  ;;  %461 = vmatpush1.bf16.msra.mxu1 %v3781_v28 }
  0x4c   :  { %389 = vmatprep.subr.bf16.mxu0 %v3782_v29  ;;  %462 = vmatprep.subr.bf16.mxu1 %v3784_v30 }
  0x4f   :  { %390 = vmatpush1.bf16.msra.mxu0 %v3786_v31  ;;  %463 = vmatpush1.bf16.msra.mxu1 %v3787_v32 }
  0x50   :  { %805 = vmatprep.subr.bf16.mxu0 %v4340_v33  ;;  %846 = vmatprep.subr.bf16.mxu1 %v4342_v34 }
  0x52   :  { %408 = vmatmul.mubr.bf16.vlgmr.msra.gmra.mxu0 %v3788_v35  ;;  %481 = vmatmul.mubr.bf16.vlgmr.msra.gmra.mxu1 %v3788_v35 }
  0x53   :  { %806 = vmatpush1.bf16.msra.mxu0 %v4347_v36  ;;  %847 = vmatpush1.bf16.msra.mxu1 %v4349_v37 }
  0x54   :  { %807 = vmatprep.subr.bf16.mxu0 %v4353_v38  ;;  %848 = vmatprep.subr.bf16.mxu1 %v4355_v39 }
  0x55   :  { %417 = vmatprep.mubr.bf16.mxu0 %v5549_v0  ;;  %490 = vmatprep.mubr.bf16.mxu1 %v5549_v0 }
  0x57   :  { %808 = vmatpush1.bf16.msra.mxu0 %v4357_v40  ;;  %849 = vmatpush1.bf16.msra.mxu1 %v4361_v41 }
  0x58   :  { %809 = vmatprep.subr.bf16.mxu0 %v4365_v42  ;;  %850 = vmatprep.subr.bf16.mxu1 %v4367_v43 }
  0x5a   :  { %418 = vmatmul.mubr.bf16.gmra.mxu0 %v3801_v44  ;;  %491 = vmatmul.mubr.bf16.gmra.mxu1 %v3801_v44 }
  0x5b   :  { %810 = vmatpush1.bf16.msra.mxu0 %v4374_v45  ;;  %851 = vmatpush1.bf16.msra.mxu1 %v4376_v46 }
  0x5c   :  { %811 = vmatprep.subr.bf16.mxu0 %v4380_v47  ;;  %852 = vmatprep.subr.bf16.mxu1 %v4384_v48 }
  0x5d   :  { %427 = vmatprep.mubr.bf16.mxu0 %v5549_v0  ;;  %500 = vmatprep.mubr.bf16.mxu1 %v5549_v0 }
  0x5f   :  { %812 = vmatpush1.bf16.msra.mxu0 %v4386_v49  ;;  %853 = vmatpush1.bf16.msra.mxu1 %v4388_v50 }
  0x60   :  { %813 = vmatprep.subr.bf16.mxu0 %v4392_v51  ;;  %854 = vmatprep.subr.bf16.mxu1 %v4396_v52 }
  0x62   :  { %428 = vmatmul.mubr.bf16.gmra.mxu0 %v3814_v53  ;;  %501 = vmatmul.mubr.bf16.gmra.mxu1 %v3814_v53 }
  0x63   :  { %814 = vmatpush1.bf16.msra.mxu0 %v4403_v54  ;;  %855 = vmatpush1.bf16.msra.mxu1 %v4405_v55 }
  0x64   :  { %815 = vmatprep.subr.bf16.mxu0 %v4407_v56  ;;  %856 = vmatprep.subr.bf16.mxu1 %v4409_v57 }
  0x65   :  { %437 = vmatprep.mubr.bf16.mxu0 %v5549_v0  ;;  %510 = vmatprep.mubr.bf16.mxu1 %v5549_v0 }
  0x67   :  { %816 = vmatpush1.bf16.msra.mxu0 %v4415_v58  ;;  %857 = vmatpush1.bf16.msra.mxu1 %v4417_v59 }
  0x68   :  { %817 = vmatprep.subr.bf16.mxu0 %v4419_v60  ;;  %858 = vmatprep.subr.bf16.mxu1 %v4421_v61 }
  0x6a   :  { %438 = vmatmul.mubr.bf16.gmra.mxu0 %v3827_v62  ;;  %511 = vmatmul.mubr.bf16.gmra.mxu1 %v3827_v62 }
  0x6b   :  { %818 = vmatpush1.bf16.msra.mxu0 %v4432_v63  ;;  %859 = vmatpush1.bf16.msra.mxu1 %v4434_v1 }
  0x6c   :  { %819 = vmatprep.subr.bf16.mxu0 %v4436_v2  ;;  %860 = vmatprep.subr.bf16.mxu1 %v4438_v3 }
  0x6d   :  { %837 = vmatprep.mubr.bf16.mxu0 %v5549_v0  ;;  %878 = vmatprep.mubr.bf16.mxu1 %v5549_v0 }
  0x6f   :  { %820 = vmatpush1.bf16.msra.mxu0 %v4444_v4  ;;  %861 = vmatpush1.bf16.msra.mxu1 %v4446_v5 }
  0x70   :  { %926 = vmatprep.subr.bf16.mxu0 %v4340_v33  ;;  %967 = vmatprep.subr.bf16.mxu1 %v4342_v34 }
  0x72   :  { %838 = vmatmul.mubr.bf16.vlgmr.msra.gmra.mxu0 %v5543_v6  ;;  %879 = vmatmul.mubr.bf16.vlgmr.msra.gmra.mxu1 %v5543_v6 }
  0x73   :  { %927 = vmatpush1.bf16.msra.mxu0 %v4347_v36  ;;  %968 = vmatpush1.bf16.msra.mxu1 %v4349_v37 }
  0x74   :  { %928 = vmatprep.subr.bf16.mxu0 %v4353_v38  ;;  %969 = vmatprep.subr.bf16.mxu1 %v4355_v39 }
  0x75   :  { %958 = vmatprep.mubr.bf16.mxu0 %v5549_v0  ;;  %999 = vmatprep.mubr.bf16.mxu1 %v5549_v0 }
  0x77   :  { %929 = vmatpush1.bf16.msra.mxu0 %v4357_v40  ;;  %970 = vmatpush1.bf16.msra.mxu1 %v4361_v41 }
  0x78   :  { %930 = vmatprep.subr.bf16.mxu0 %v4365_v42  ;;  %971 = vmatprep.subr.bf16.mxu1 %v4367_v43 }
  0x7b   :  { %931 = vmatpush1.bf16.msra.mxu0 %v4374_v45  ;;  %972 = vmatpush1.bf16.msra.mxu1 %v4376_v46 }
  0x7c   :  { %932 = vmatprep.subr.bf16.mxu0 %v4380_v47  ;;  %973 = vmatprep.subr.bf16.mxu1 %v4384_v48 }
  0x7f   :  { %933 = vmatpush1.bf16.msra.mxu0 %v4386_v49  ;;  %974 = vmatpush1.bf16.msra.mxu1 %v4388_v50 }
  0x80   :  { %934 = vmatprep.subr.bf16.mxu0 %v4392_v51  ;;  %975 = vmatprep.subr.bf16.mxu1 %v4396_v52 }
  0x83   :  { %935 = vmatpush1.bf16.msra.mxu0 %v4403_v54  ;;  %976 = vmatpush1.bf16.msra.mxu1 %v4405_v55 }
  0x84   :  { %936 = vmatprep.subr.bf16.mxu0 %v4407_v56  ;;  %977 = vmatprep.subr.bf16.mxu1 %v4409_v57 }
  0x87   :  { %937 = vmatpush1.bf16.msra.mxu0 %v4415_v58  ;;  %978 = vmatpush1.bf16.msra.mxu1 %v4417_v59 }
  0x88   :  { %938 = vmatprep.subr.bf16.mxu0 %v4419_v60  ;;  %979 = vmatprep.subr.bf16.mxu1 %v4421_v61 }
  0x8b   :  { %939 = vmatpush1.bf16.msra.mxu0 %v4432_v63  ;;  %980 = vmatpush1.bf16.msra.mxu1 %v4434_v1 }
  0x8c   :  { %940 = vmatprep.subr.bf16.mxu0 %v4436_v2  ;;  %981 = vmatprep.subr.bf16.mxu1 %v4438_v3 }
  0x8f   :  { %941 = vmatpush1.bf16.msra.mxu0 %v4444_v4  ;;  %982 = vmatpush1.bf16.msra.mxu1 %v4446_v5 }
  0x90   :  { %1049 = vmatprep.subr.bf16.mxu0 %v4340_v33  ;;  %1090 = vmatprep.subr.bf16.mxu1 %v4342_v34 }
 0x112   :  { %v409_v13 = vpop.f32.mrf.mxu0  ;;  %v4502_v14 = vpop.f32.mrf.mxu1 }
 0x114   :  { %v411_v17 = vpop.f32.mrf.mxu0  ;;  %v4509_v18 = vpop.f32.mrf.mxu1 }
 0x116   :  { %v413_v21 = vpop.f32.mrf.mxu0  ;;  %v486_v22 = vpop.f32.mrf.mxu1 }
 0x117   :  { %v414_v24 = vadd.f32 %v413_v21, %v4513_v19  ;;  %v487_v25 = vadd.f32 %v486_v22, %v4506_v15 }
 0x118   :  { %v415_v26 = vpop.f32.mrf.mxu0  ;;  %v488_v27 = vpop.f32.mrf.mxu1 }
 0x119   :  { %v416_v28 = vadd.f32 %v415_v26, %v4521_v23  ;;  %v489_v29 = vadd.f32 %v488_v27, %v4517_v20 }
 0x11a   :  { %v419_v30 = vpop.f32.mrf.mxu0  ;;  %v492_v31 = vpop.f32.mrf.mxu1 }
 0x11b   :  { %v4527_v32 = vpack.c.bf16 %v416_v28, %v414_v24  ;;  %v4529_v35 = vpack.c.bf16 %v489_v29, %v487_v25  ;;  %v420_v44 = vadd.f32 %v419_v30, %v4513_v19  ;;  %v493_v53 = vadd.f32 %v492_v31, %v4506_v15 }
 0x11c   :  { %v421_v62 = vpop.f32.mrf.mxu0  ;;  %v494_v7 = vpop.f32.mrf.mxu1 }
 0x11d   :  { %v422_v12 = vadd.f32 %v421_v62, %v4521_v23  ;;  %v495_v21 = vadd.f32 %v494_v7, %v4517_v20 }
 0x11e   :  { %v423_v22 = vpop.f32.mrf.mxu0  ;;  %v496_v26 = vpop.f32.mrf.mxu1 }
 0x11f   :  { %v4535_v6 = vpack.c.bf16 %v422_v12, %v420_v44  ;;  %v4537_v27 = vpack.c.bf16 %v495_v21, %v493_v53  ;;  %v424_v24 = vadd.f32 %v423_v22, %v4513_v19  ;;  %v497_v25 = vadd.f32 %v496_v26, %v4506_v15 }
 0x120   :  { %v425_v28 = vpop.f32.mrf.mxu0  ;;  %v498_v29 = vpop.f32.mrf.mxu1 }
 0x121   :  { %v426_v30 = vadd.f32 %v425_v28, %v4521_v23  ;;  %v499_v31 = vadd.f32 %v498_v29, %v4517_v20 }
 0x122   :  { %v429_v11 = vpop.f32.mrf.mxu0  ;;  %v502_v62 = vpop.f32.mrf.mxu1 }
 0x123   :  { %v4543_v16 = vpack.c.bf16 %v426_v30, %v424_v24  ;;  %v4545_v7 = vpack.c.bf16 %v499_v31, %v497_v25  ;;  %v430_v44 = vadd.f32 %v429_v11, %v4513_v19  ;;  %v503_v53 = vadd.f32 %v502_v62, %v4506_v15 }
 0x124   :  { %v431_v12 = vpop.f32.mrf.mxu0  ;;  %v504_v21 = vpop.f32.mrf.mxu1  ;;  %v412_v31 = vadd.f32 %v411_v17, %v4521_v23 }
 0x125   :  { %v432_v22 = vadd.f32 %v431_v12, %v4521_v23  ;;  %v505_v26 = vadd.f32 %v504_v21, %v4517_v20  ;;  %v410_v21 = vadd.f32 %v409_v13, %v4513_v19  ;;  %v483_v13 = vadd.f32 %v4502_v14, %v4506_v15 }
 0x126   :  { %v433_v9 = vpop.f32.mrf.mxu0  ;;  %v506_v28 = vpop.f32.mrf.mxu1 }
 0x127   :  { %v4551_v10 = vpack.c.bf16 %v432_v22, %v430_v44  ;;  %v4553_v29 = vpack.c.bf16 %v505_v26, %v503_v53  ;;  %v434_v24 = vadd.f32 %v433_v9, %v4513_v19  ;;  %v507_v25 = vadd.f32 %v506_v28, %v4506_v15 }
 0x128   :  { %v435_v30 = vpop.f32.mrf.mxu0  ;;  %v508_v11 = vpop.f32.mrf.mxu1 }
 0x129   :  { %5567 = vst [vmem:[#allocation17_spill] sm:$0xff] %v4551_v10  ;;  %5568 = vst [vmem:[#allocation18_spill] sm:$0xff] %v4553_v29  ;;  %v436_v62 = vadd.f32 %v435_v30, %v4521_v23  ;;  %v509_v12 = vadd.f32 %v508_v11, %v4517_v20  ;;  %v3669_v29 = vpack.c.bf16 %v412_v31, %v410_v21 }
 0x12a   :  { %v439_v0 = vpop.f32.mrf.mxu0  ;;  %v512_v8 = vpop.f32.mrf.mxu1 }
 0x12b   :  { %v4561_v44 = vpack.c.bf16 %v436_v62, %v434_v24  ;;  %v4563_v53 = vpack.c.bf16 %v509_v12, %v507_v25  ;;  %v440_v9 = vadd.f32 %v439_v0, %v4513_v19  ;;  %v513_v22 = vadd.f32 %v512_v8, %v4506_v15 }
 0x12c   :  { %v441_v26 = vpop.f32.mrf.mxu0  ;;  %v514_v28 = vpop.f32.mrf.mxu1  ;;  %v485_v24 = vadd.f32 %v4509_v18, %v4517_v20  ;;  %v640_v14 = vunpack.c.l.bf16 %v3669_v29 }
 0x12d   :  { %5569 = vst [vmem:[#allocation19_spill] sm:$0xff] %v4561_v44  ;;  %5570 = vst [vmem:[#allocation20_spill] sm:$0xff] %v4563_v53  ;;  %v442_v17 = vadd.f32 %v441_v26, %v4521_v23  ;;  %v515_v30 = vadd.f32 %v514_v28, %v4517_v20 }
 0x12e   :  { %v443_v11 = vpop.f32.mrf.mxu0  ;;  %v516_v25 = vpop.f32.mrf.mxu1  ;;  %v3670_v53 = vpack.c.bf16 %v485_v24, %v483_v13 }
 0x12f   :  { %v4573_v62 = vpack.c.bf16 %v442_v17, %v440_v9  ;;  %v4575_v0 = vpack.c.bf16 %v515_v30, %v513_v22  ;;  %v444_v8 = vadd.f32 %v443_v11, %v4513_v19  ;;  %v517_v31 = vadd.f32 %v516_v25, %v4506_v15 }
 0x130   :  { %v445_v12 = vpop.f32.mrf.mxu0  ;;  %v518_v21 = vpop.f32.mrf.mxu1  ;;  %v641_v17 = vunpack.c.h.bf16 %v3669_v29  ;;  %v643_v24 = vunpack.c.h.bf16 %v3670_v53 }
 0x131   :  { %5571 = vst [vmem:[#allocation21_spill] sm:$0xff] %v4575_v0  ;;  %v446_v26 = vadd.f32 %v445_v12, %v4521_v23  ;;  %v519_v28 = vadd.f32 %v518_v21, %v4517_v20  ;;  %v642_v23 = vunpack.c.l.bf16 %v3670_v53 }
 0x132   :  { %v839_v44 = vpop.f32.mrf.mxu0  ;;  %v880_v18 = vpop.f32.mrf.mxu1 }
 0x133   :  { %v4581_v10 = vpack.c.bf16 %v446_v26, %v444_v8  ;;  %v4583_v9 = vpack.c.bf16 %v519_v28, %v517_v31  ;;  %v887_v22 = vadd.f32 %v839_v44, %v640_v14  ;;  %v889_v13 = vadd.f32 %v880_v18, %v642_v23 }
 0x134   :  { %v841_v30 = vpop.f32.mrf.mxu0  ;;  %v882_v19 = vpop.f32.mrf.mxu1 }
 0x135   :  { %v891_v11 = vmul.f32 0.5, %v887_v22  ;;  %v888_v15 = vadd.f32 %v841_v30, %v641_v17  ;;  %v890_v8 = vadd.f32 %v882_v19, %v643_v24 }
 0x136   :  { %v843_v25 = vpop.f32.mrf.mxu0  ;;  %v884_v0 = vpop.f32.mrf.mxu1 }
 0x137   :  { %3944 = vtanh.f32 %v891_v11  ;;  %v895_v12 = vmul.f32 0.5, %v888_v15  ;;  %v900_v31 = vmul.f32 0.5, %v890_v8  ;;  %v922_v8 = vunpack.c.h.bf16 %v4527_v32 }
 0x138   :  { %v844_v20 = vpop.f32.mrf.mxu0  ;;  %v885_v21 = vpop.f32.mrf.mxu1 }
 0x139   :  { %3946 = vtanh.f32 %v895_v12  ;;  %v5572_v12 = vmov 0   ;;  %v921_v20 = vunpack.c.l.bf16 %v4527_v32 }
 0x13a   :  { %3948 = vtanh.f32 %v889_v13 }
 0x13b   :  { %3950 = vtanh.f32 %v900_v31 }
 0x144   :  { %v3945_v26 = vpop.eup %3944 }
 0x145   :  { %v893_v44 = vmul.f32 0.5, %v3945_v26 }
 0x146   :  { %v3947_v29 = vpop.eup %3946 }
 0x147   :  { %v894_v28 = vadd.f32 0.5, %v893_v44  ;;  %v897_v14 = vmul.f32 0.5, %v3947_v29  ;;  %v3949_v17 = vpop.eup %3948  ;;  %v923_v29 = vunpack.c.l.bf16 %v4529_v35 }
 0x148   :  { %v3951_v18 = vpop.eup %3950 }
 0x149   :  { %v898_v22 = vadd.f32 0.5, %v897_v14  ;;  %v905_v30 = vmul.f32 %v3949_v17, %v894_v28  ;;  %v902_v15 = vmul.f32 0.5, %v3951_v18 }
 0x14b   :  { %v904_v0 = vmul.f32 0.0, %v898_v22  ;;  %v903_v25 = vadd.f32 0.5, %v902_v15  ;;  %v924_v15 = vunpack.c.h.bf16 %v4529_v35 }
 0x14d   :  { %v4585_v11 = vadd.f32 %v905_v30, %v904_v0 }
 0x14f   :  { %3952 = vtanh.f32 %v4585_v11 }
 0x15c   :  { %v3953_v53 = vpop.eup %3952 }
 0x15d   :  { %v4588_v19 = vmul.f32 %v3953_v53, %v903_v25 }
 0x15f   :  { %v925_v23 = vpack.c.bf16 %v4588_v19, %v4588_v19 }
 0x161   :  { %959 = vmatmul.mubr.bf16.vlgmr.msra.gmra.mxu0 %v925_v23  ;;  %1000 = vmatmul.mubr.bf16.vlgmr.msra.gmra.mxu1 %v925_v23 }
 0x162   :  { %1050 = vmatpush1.bf16.msra.mxu0 %v4347_v36  ;;  %1091 = vmatpush1.bf16.msra.mxu1 %v4349_v37 }
 0x163   :  { %1051 = vmatprep.subr.bf16.mxu0 %v4353_v38  ;;  %1092 = vmatprep.subr.bf16.mxu1 %v4355_v39 }
 0x164   :  { %1081 = vmatprep.mubr.bf16.mxu0 %v5572_v12  ;;  %1122 = vmatprep.mubr.bf16.mxu1 %v5572_v12 }
 0x166   :  { %1052 = vmatpush1.bf16.msra.mxu0 %v4357_v40  ;;  %1093 = vmatpush1.bf16.msra.mxu1 %v4361_v41 }
 0x167   :  { %1053 = vmatprep.subr.bf16.mxu0 %v4365_v42  ;;  %1094 = vmatprep.subr.bf16.mxu1 %v4367_v43 }
 0x16a   :  { %1054 = vmatpush1.bf16.msra.mxu0 %v4374_v45  ;;  %1095 = vmatpush1.bf16.msra.mxu1 %v4376_v46 }
 0x16b   :  { %1055 = vmatprep.subr.bf16.mxu0 %v4380_v47  ;;  %1096 = vmatprep.subr.bf16.mxu1 %v4384_v48 }
 0x16e   :  { %1056 = vmatpush1.bf16.msra.mxu0 %v4386_v49  ;;  %1097 = vmatpush1.bf16.msra.mxu1 %v4388_v50 }
 0x16f   :  { %1057 = vmatprep.subr.bf16.mxu0 %v4392_v51  ;;  %1098 = vmatprep.subr.bf16.mxu1 %v4396_v52 }
 0x172   :  { %1058 = vmatpush1.bf16.msra.mxu0 %v4403_v54  ;;  %1099 = vmatpush1.bf16.msra.mxu1 %v4405_v55 }
 0x173   :  { %1059 = vmatprep.subr.bf16.mxu0 %v4407_v56  ;;  %1100 = vmatprep.subr.bf16.mxu1 %v4409_v57 }
 0x176   :  { %1060 = vmatpush1.bf16.msra.mxu0 %v4415_v58  ;;  %1101 = vmatpush1.bf16.msra.mxu1 %v4417_v59 }
 0x177   :  { %1061 = vmatprep.subr.bf16.mxu0 %v4419_v60  ;;  %1102 = vmatprep.subr.bf16.mxu1 %v4421_v61 }
 0x17a   :  { %1062 = vmatpush1.bf16.msra.mxu0 %v4432_v63  ;;  %1103 = vmatpush1.bf16.msra.mxu1 %v4434_v1 }
 0x17b   :  { %1063 = vmatprep.subr.bf16.mxu0 %v4436_v2  ;;  %1104 = vmatprep.subr.bf16.mxu1 %v4438_v3 }
 0x17e   :  { %1064 = vmatpush1.bf16.msra.mxu0 %v4444_v4  ;;  %1105 = vmatpush1.bf16.msra.mxu1 %v4446_v5 }
 0x17f   :  { %1172 = vmatprep.subr.bf16.mxu0 %v4340_v33  ;;  %1213 = vmatprep.subr.bf16.mxu1 %v4342_v34 }
 0x221   :  { %v960_v21 = vpop.f32.mrf.mxu0  ;;  %v1001_v13 = vpop.f32.mrf.mxu1 }
 0x222   :  { %v1008_v24 = vadd.f32 %v960_v21, %v921_v20  ;;  %v1010_v17 = vadd.f32 %v1001_v13, %v923_v29 }
 0x223   :  { %v962_v31 = vpop.f32.mrf.mxu0  ;;  %v1003_v26 = vpop.f32.mrf.mxu1 }
 0x224   :  { %v1012_v44 = vmul.f32 0.5, %v1008_v24  ;;  %v1009_v28 = vadd.f32 %v962_v31, %v922_v8  ;;  %v1011_v25 = vadd.f32 %v1003_v26, %v924_v15  ;;  %v1045_v15 = vunpack.c.h.bf16 %v4535_v6 }
 0x225   :  { %v964_v14 = vpop.f32.mrf.mxu0  ;;  %v1005_v22 = vpop.f32.mrf.mxu1 }
 0x226   :  { %3954 = vtanh.f32 %v1012_v44  ;;  %v1016_v0 = vmul.f32 0.5, %v1009_v28  ;;  %v1021_v53 = vmul.f32 0.5, %v1011_v25 }
 0x227   :  { %v965_v30 = vpop.f32.mrf.mxu0  ;;  %v1006_v18 = vpop.f32.mrf.mxu1 }
 0x228   :  { %3956 = vtanh.f32 %v1016_v0 }
 0x229   :  { %3958 = vtanh.f32 %v1010_v17 }
 0x22a   :  { %3960 = vtanh.f32 %v1021_v53 }
 0x233   :  { %v3955_v32 = vpop.eup %3954 }
 0x234   :  { %v1014_v23 = vmul.f32 0.5, %v3955_v32 }
 0x235   :  { %v3957_v20 = vpop.eup %3956 }
 0x236   :  { %v1015_v21 = vadd.f32 0.5, %v1014_v23  ;;  %v1018_v24 = vmul.f32 0.5, %v3957_v20  ;;  %v3959_v8 = vpop.eup %3958  ;;  %v1046_v23 = vunpack.c.l.bf16 %v4537_v27 }
 0x237   :  { %v3961_v29 = vpop.eup %3960 }
 0x238   :  { %v1019_v31 = vadd.f32 0.5, %v1018_v24  ;;  %v1026_v14 = vmul.f32 %v3959_v8, %v1015_v21  ;;  %v1023_v28 = vmul.f32 0.5, %v3961_v29 }
 0x23a   :  { %v1025_v13 = vmul.f32 %v1019_v31, %v4585_v11  ;;  %v1024_v35 = vadd.f32 0.5, %v1023_v28  ;;  %v1044_v11 = vunpack.c.l.bf16 %v4535_v6 }
 0x23c   :  { %v4631_v44 = vadd.f32 %v1026_v14, %v1025_v13  ;;  %v1047_v14 = vunpack.c.h.bf16 %v4537_v27 }
 0x23e   :  { %3962 = vtanh.f32 %v4631_v44 }
 0x24b   :  { %v3963_v26 = vpop.eup %3962 }
 0x24c   :  { %v4634_v22 = vmul.f32 %v3963_v26, %v1024_v35 }
 0x24e   :  { %v1048_v17 = vpack.c.bf16 %v4634_v22, %v4634_v22 }
 0x250   :  { %1082 = vmatmul.mubr.bf16.vlgmr.msra.gmra.mxu0 %v1048_v17  ;;  %1123 = vmatmul.mubr.bf16.vlgmr.msra.gmra.mxu1 %v1048_v17 }
 0x251   :  { %1173 = vmatpush1.bf16.msra.mxu0 %v4347_v36  ;;  %1214 = vmatpush1.bf16.msra.mxu1 %v4349_v37 }
 0x252   :  { %1174 = vmatprep.subr.bf16.mxu0 %v4353_v38  ;;  %1215 = vmatprep.subr.bf16.mxu1 %v4355_v39 }
 0x253   :  { %1204 = vmatprep.mubr.bf16.mxu0 %v5572_v12  ;;  %1245 = vmatprep.mubr.bf16.mxu1 %v5572_v12 }
 0x255   :  { %1175 = vmatpush1.bf16.msra.mxu0 %v4357_v40  ;;  %1216 = vmatpush1.bf16.msra.mxu1 %v4361_v41 }
 0x256   :  { %1176 = vmatprep.subr.bf16.mxu0 %v4365_v42  ;;  %1217 = vmatprep.subr.bf16.mxu1 %v4367_v43 }
 0x259   :  { %1177 = vmatpush1.bf16.msra.mxu0 %v4374_v45  ;;  %1218 = vmatpush1.bf16.msra.mxu1 %v4376_v46 }
 0x25a   :  { %1178 = vmatprep.subr.bf16.mxu0 %v4380_v47  ;;  %1219 = vmatprep.subr.bf16.mxu1 %v4384_v48 }
 0x25d   :  { %1179 = vmatpush1.bf16.msra.mxu0 %v4386_v49  ;;  %1220 = vmatpush1.bf16.msra.mxu1 %v4388_v50 }
 0x25e   :  { %1180 = vmatprep.subr.bf16.mxu0 %v4392_v51  ;;  %1221 = vmatprep.subr.bf16.mxu1 %v4396_v52 }
 0x261   :  { %1181 = vmatpush1.bf16.msra.mxu0 %v4403_v54  ;;  %1222 = vmatpush1.bf16.msra.mxu1 %v4405_v55 }
 0x262   :  { %1182 = vmatprep.subr.bf16.mxu0 %v4407_v56  ;;  %1223 = vmatprep.subr.bf16.mxu1 %v4409_v57 }
 0x265   :  { %1183 = vmatpush1.bf16.msra.mxu0 %v4415_v58  ;;  %1224 = vmatpush1.bf16.msra.mxu1 %v4417_v59 }
 0x266   :  { %1184 = vmatprep.subr.bf16.mxu0 %v4419_v60  ;;  %1225 = vmatprep.subr.bf16.mxu1 %v4421_v61 }
 0x269   :  { %1185 = vmatpush1.bf16.msra.mxu0 %v4432_v63  ;;  %1226 = vmatpush1.bf16.msra.mxu1 %v4434_v1 }
 0x26a   :  { %1186 = vmatprep.subr.bf16.mxu0 %v4436_v2  ;;  %1227 = vmatprep.subr.bf16.mxu1 %v4438_v3 }
 0x26d   :  { %1187 = vmatpush1.bf16.msra.mxu0 %v4444_v4  ;;  %1228 = vmatpush1.bf16.msra.mxu1 %v4446_v5 }
 0x26e   :  { %1295 = vmatprep.subr.bf16.mxu0 %v4340_v33  ;;  %1336 = vmatprep.subr.bf16.mxu1 %v4342_v34 }
 0x310   :  { %v1083_v0 = vpop.f32.mrf.mxu0  ;;  %v1124_v30 = vpop.f32.mrf.mxu1 }
 0x311   :  { %v1131_v18 = vadd.f32 %v1083_v0, %v1044_v11  ;;  %v1133_v8 = vadd.f32 %v1124_v30, %v1046_v23 }
 0x312   :  { %v1085_v25 = vpop.f32.mrf.mxu0  ;;  %v1126_v53 = vpop.f32.mrf.mxu1 }
 0x313   :  { %v1135_v32 = vmul.f32 0.5, %v1131_v18  ;;  %v1132_v20 = vadd.f32 %v1085_v25, %v1045_v15  ;;  %v1134_v13 = vadd.f32 %v1126_v53, %v1047_v14 }
 0x314   :  { %v1087_v21 = vpop.f32.mrf.mxu0  ;;  %v1128_v24 = vpop.f32.mrf.mxu1 }
 0x315   :  { %3964 = vtanh.f32 %v1135_v32  ;;  %v1139_v33 = vmul.f32 0.5, %v1132_v20  ;;  %v1144_v29 = vmul.f32 0.5, %v1134_v13 }
 0x316   :  { %v1088_v31 = vpop.f32.mrf.mxu0  ;;  %v1129_v34 = vpop.f32.mrf.mxu1 }
 0x317   :  { %3966 = vtanh.f32 %v1139_v33 }
 0x318   :  { %3968 = vtanh.f32 %v1133_v8 }
 0x319   :  { %3970 = vtanh.f32 %v1144_v29 }
 0x322   :  { %v3965_v6 = vpop.eup %3964 }
 0x323   :  { %v1137_v28 = vmul.f32 0.5, %v3965_v6 }
 0x324   :  { %v3967_v35 = vpop.eup %3966 }
 0x325   :  { %v1138_v26 = vadd.f32 0.5, %v1137_v28  ;;  %v1141_v17 = vmul.f32 0.5, %v3967_v35  ;;  %v3969_v11 = vpop.eup %3968  ;;  %v4734_v28 = vld [vmem:[#allocation8 + $0xe0] ss:$16 sps:$4 sm:$0xff]   ;;  %v4737_v35 = vld [vmem:[#allocation8 + $0xe8] ss:$16 sps:$4 sm:$0xff]  }
 0x326   :  { %v3971_v25 = vpop.eup %3970 }
 0x327   :  { %v1142_v0 = vadd.f32 0.5, %v1141_v17  ;;  %v1149_v18 = vmul.f32 %v3969_v11, %v1138_v26  ;;  %v1146_v32 = vmul.f32 0.5, %v3971_v25  ;;  %v4740_v26 = vld [vmem:[#allocation8 + $0xc4] ss:$16 sps:$4 sm:$0xff]   ;;  %v4743_v17 = vld [vmem:[#allocation8 + $0xcc] ss:$16 sps:$4 sm:$0xff]  }
 0x328   :  { %v4748_v11 = vld [vmem:[#allocation8 + $0xc0] ss:$16 sps:$4 sm:$0xff]   ;;  %v4763_v25 = vld [vmem:[#allocation8 + $0xa8] ss:$16 sps:$4 sm:$0xff]  }
 0x329   :  { %v1148_v30 = vmul.f32 %v1142_v0, %v4631_v44  ;;  %v1147_v27 = vadd.f32 0.5, %v1146_v32  ;;  %v4751_v0 = vld [vmem:[#allocation8 + $0xc8] ss:$16 sps:$4 sm:$0xff]   ;;  %v4766_v32 = vld [vmem:[#allocation8 + $0x84] ss:$16 sps:$4 sm:$0xff]  }
 0x32b   :  { %v4677_v15 = vadd.f32 %v1149_v18, %v1148_v30  ;;  %v4754_v18 = vld [vmem:[#allocation8 + $0xa4] ss:$16 sps:$4 sm:$0xff]   ;;  %v4757_v30 = vld [vmem:[#allocation8 + $0xac] ss:$16 sps:$4 sm:$0xff]  }
 0x32d   :  { %3972 = vtanh.f32 %v4677_v15 }
 0x33a   :  { %v3973_v53 = vpop.eup %3972 }
 0x33b   :  { %v4680_v23 = vmul.f32 %v3973_v53, %v1147_v27  ;;  %v4769_v27 = vld [vmem:[#allocation8 + $0x8c] ss:$16 sps:$4 sm:$0xff]   ;;  %v4772_v53 = vld [vmem:[#allocation8 + $0x80] ss:$16 sps:$4 sm:$0xff]  }
 0x33d   :  { %v1171_v20 = vpack.c.bf16 %v4680_v23, %v4680_v23 }
 0x33f   :  { %1205 = vmatmul.mubr.bf16.vlgmr.msra.gmra.mxu0 %v1171_v20  ;;  %1246 = vmatmul.mubr.bf16.vlgmr.msra.gmra.mxu1 %v1171_v20  ;;  %v4775_v20 = vld [vmem:[#allocation8 + $0x88] ss:$16 sps:$4 sm:$0xff]  }
 0x340   :  { %1296 = vmatpush1.bf16.msra.mxu0 %v4347_v36  ;;  %1337 = vmatpush1.bf16.msra.mxu1 %v4349_v37  ;;  %v4716_v36 = vld [vmem:[#allocation8 + $0xe4] ss:$16 sps:$4 sm:$0xff]   ;;  %v4719_v37 = vld [vmem:[#allocation8 + $0xec] ss:$16 sps:$4 sm:$0xff]  }
 0x341   :  { %1297 = vmatprep.subr.bf16.mxu0 %v4353_v38  ;;  %1338 = vmatprep.subr.bf16.mxu1 %v4355_v39  ;;  %v1167_v38 = vunpack.c.l.bf16 %v4543_v16 }
 0x342   :  { %1327 = vmatprep.mubr.bf16.mxu0 %v5572_v12  ;;  %1368 = vmatprep.mubr.bf16.mxu1 %v5572_v12 }
 0x344   :  { %1298 = vmatpush1.bf16.msra.mxu0 %v4357_v40  ;;  %1339 = vmatpush1.bf16.msra.mxu1 %v4361_v41 }
 0x345   :  { %1299 = vmatprep.subr.bf16.mxu0 %v4365_v42  ;;  %1340 = vmatprep.subr.bf16.mxu1 %v4367_v43  ;;  %v1168_v42 = vunpack.c.h.bf16 %v4543_v16 }
 0x348   :  { %1300 = vmatpush1.bf16.msra.mxu0 %v4374_v45  ;;  %1341 = vmatpush1.bf16.msra.mxu1 %v4376_v46 }
 0x349   :  { %1301 = vmatprep.subr.bf16.mxu0 %v4380_v47  ;;  %1342 = vmatprep.subr.bf16.mxu1 %v4384_v48  ;;  %v1169_v47 = vunpack.c.l.bf16 %v4545_v7 }
 0x34c   :  { %1302 = vmatpush1.bf16.msra.mxu0 %v4386_v49  ;;  %1343 = vmatpush1.bf16.msra.mxu1 %v4388_v50 }
 0x34d   :  { %1303 = vmatprep.subr.bf16.mxu0 %v4392_v51  ;;  %1344 = vmatprep.subr.bf16.mxu1 %v4396_v52 }
 0x350   :  { %1304 = vmatpush1.bf16.msra.mxu0 %v4403_v54  ;;  %1345 = vmatpush1.bf16.msra.mxu1 %v4405_v55 }
 0x351   :  { %1305 = vmatprep.subr.bf16.mxu0 %v4407_v56  ;;  %1346 = vmatprep.subr.bf16.mxu1 %v4409_v57  ;;  %v1170_v56 = vunpack.c.h.bf16 %v4545_v7 }
 0x354   :  { %1306 = vmatpush1.bf16.msra.mxu0 %v4415_v58  ;;  %1347 = vmatpush1.bf16.msra.mxu1 %v4417_v59 }
 0x355   :  { %1307 = vmatprep.subr.bf16.mxu0 %v4419_v60  ;;  %1348 = vmatprep.subr.bf16.mxu1 %v4421_v61 }
 0x358   :  { %1308 = vmatpush1.bf16.msra.mxu0 %v4432_v63  ;;  %1349 = vmatpush1.bf16.msra.mxu1 %v4434_v1 }
 0x359   :  { %1309 = vmatprep.subr.bf16.mxu0 %v4436_v2  ;;  %1350 = vmatprep.subr.bf16.mxu1 %v4438_v3 }
 0x35c   :  { %1310 = vmatpush1.bf16.msra.mxu0 %v4444_v4  ;;  %1351 = vmatpush1.bf16.msra.mxu1 %v4446_v5 }
 0x35d   :  { %1418 = vmatprep.subr.bf16.mxu0 %v4716_v36  ;;  %1459 = vmatprep.subr.bf16.mxu1 %v4719_v37 }
 0x3ff   :  { %v1206_v39 = vpop.f32.mrf.mxu0  ;;  %v1247_v40 = vpop.f32.mrf.mxu1 }
 0x400   :  { %v1254_v41 = vadd.f32 %v1206_v39, %v1167_v38  ;;  %v1256_v51 = vadd.f32 %v1247_v40, %v1169_v47  ;;  %v4778_v38 = vld [vmem:[#allocation8 + $0x64] ss:$16 sps:$4 sm:$0xff]   ;;  %v4781_v39 = vld [vmem:[#allocation8 + $0x6c] ss:$16 sps:$4 sm:$0xff]   ;;  %v4784_v40 = vld [vmem:[#allocation8 + $0x60] ss:$16 sps:$4 sm:$0xff]  }
 0x401   :  { %v1208_v43 = vpop.f32.mrf.mxu0  ;;  %v1249_v45 = vpop.f32.mrf.mxu1  ;;  %v4802_v47 = vld [vmem:[#allocation8 + $0x24] ss:$16 sps:$4 sm:$0xff]  }
 0x402   :  { %v1258_v46 = vmul.f32 0.5, %v1254_v41  ;;  %v1255_v48 = vadd.f32 %v1208_v43, %v1168_v42  ;;  %v1257_v57 = vadd.f32 %v1249_v45, %v1170_v56  ;;  %v4787_v41 = vld [vmem:[#allocation8 + $0x68] ss:$16 sps:$4 sm:$0xff]   ;;  %v4790_v42 = vld [vmem:[#allocation8 + $0x44] ss:$16 sps:$4 sm:$0xff]  }
 0x403   :  { %v1210_v49 = vpop.f32.mrf.mxu0  ;;  %v1251_v50 = vpop.f32.mrf.mxu1  ;;  %v4793_v43 = vld [vmem:[#allocation8 + $0x4c] ss:$16 sps:$4 sm:$0xff]   ;;  %v4796_v45 = vld [vmem:[#allocation8 + $0x40] ss:$16 sps:$4 sm:$0xff]  }
 0x404   :  { %3974 = vtanh.f32 %v1258_v46  ;;  %v1262_v52 = vmul.f32 0.5, %v1255_v48  ;;  %v1267_v58 = vmul.f32 0.5, %v1257_v57  ;;  %v4799_v46 = vld [vmem:[#allocation8 + $0x48] ss:$16 sps:$4 sm:$0xff]   ;;  %v4805_v48 = vld [vmem:[#allocation8 + $0x2c] ss:$16 sps:$4 sm:$0xff]  }
 0x405   :  { %v1211_v54 = vpop.f32.mrf.mxu0  ;;  %v1252_v55 = vpop.f32.mrf.mxu1  ;;  %v5573_v49 = vld [vmem:[#allocation17_spill] sm:$0xff]  ;;  %v5574_v56 = vld [vmem:[#allocation18_spill] sm:$0xff] }
 0x406   :  { %3976 = vtanh.f32 %v1262_v52  ;;  %v1290_v50 = vunpack.c.l.bf16 %v5573_v49 }
 0x407   :  { %3978 = vtanh.f32 %v1256_v51 }
 0x408   :  { %3980 = vtanh.f32 %v1267_v58 }
 0x411   :  { %v3975_v59 = vpop.eup %3974 }
 0x412   :  { %v1260_v60 = vmul.f32 0.5, %v3975_v59 }
 0x413   :  { %v3977_v61 = vpop.eup %3976 }
 0x414   :  { %v1261_v16 = vadd.f32 0.5, %v1260_v60  ;;  %v1264_v44 = vmul.f32 0.5, %v3977_v61  ;;  %v3979_v21 = vpop.eup %3978 }
 0x415   :  { %v3981_v34 = vpop.eup %3980 }
 0x416   :  { %v1265_v24 = vadd.f32 0.5, %v1264_v44  ;;  %v1272_v8 = vmul.f32 %v3979_v21, %v1261_v16  ;;  %v1269_v14 = vmul.f32 0.5, %v3981_v34  ;;  %v1293_v16 = vunpack.c.h.bf16 %v5574_v56 }
 0x418   :  { %v1271_v33 = vmul.f32 %v1265_v24, %v4677_v15  ;;  %v1270_v7 = vadd.f32 0.5, %v1269_v14  ;;  %v4760_v15 = vld [vmem:[#allocation8 + $0xa0] ss:$16 sps:$4 sm:$0xff]  }
 0x41a   :  { %v4727_v31 = vadd.f32 %v1272_v8, %v1271_v33 }
 0x41c   :  { %3982 = vtanh.f32 %v4727_v31 }
 0x429   :  { %v3983_v13 = vpop.eup %3982 }
 0x42a   :  { %v4730_v29 = vmul.f32 %v3983_v13, %v1270_v7 }
 0x42c   :  { %v1294_v6 = vpack.c.bf16 %v4730_v29, %v4730_v29 }
 0x42e   :  { %1328 = vmatmul.mubr.bf16.vlgmr.msra.gmra.mxu0 %v1294_v6  ;;  %1369 = vmatmul.mubr.bf16.vlgmr.msra.gmra.mxu1 %v1294_v6 }
 0x42f   :  { %1419 = vmatpush1.bf16.msra.mxu0 %v4734_v28  ;;  %1460 = vmatpush1.bf16.msra.mxu1 %v4737_v35 }
 0x430   :  { %1420 = vmatprep.subr.bf16.mxu0 %v4740_v26  ;;  %1461 = vmatprep.subr.bf16.mxu1 %v4743_v17 }
 0x431   :  { %1450 = vmatprep.mubr.bf16.mxu0 %v5572_v12  ;;  %1491 = vmatprep.mubr.bf16.mxu1 %v5572_v12 }
 0x433   :  { %1421 = vmatpush1.bf16.msra.mxu0 %v4748_v11  ;;  %1462 = vmatpush1.bf16.msra.mxu1 %v4751_v0 }
 0x434   :  { %1422 = vmatprep.subr.bf16.mxu0 %v4754_v18  ;;  %1463 = vmatprep.subr.bf16.mxu1 %v4757_v30 }
 0x437   :  { %1423 = vmatpush1.bf16.msra.mxu0 %v4760_v15  ;;  %1464 = vmatpush1.bf16.msra.mxu1 %v4763_v25 }
 0x438   :  { %1424 = vmatprep.subr.bf16.mxu0 %v4766_v32  ;;  %1465 = vmatprep.subr.bf16.mxu1 %v4769_v27 }
 0x43b   :  { %1425 = vmatpush1.bf16.msra.mxu0 %v4772_v53  ;;  %1466 = vmatpush1.bf16.msra.mxu1 %v4775_v20 }
 0x43c   :  { %1426 = vmatprep.subr.bf16.mxu0 %v4778_v38  ;;  %1467 = vmatprep.subr.bf16.mxu1 %v4781_v39 }
 0x43f   :  { %1427 = vmatpush1.bf16.msra.mxu0 %v4784_v40  ;;  %1468 = vmatpush1.bf16.msra.mxu1 %v4787_v41 }
 0x440   :  { %1428 = vmatprep.subr.bf16.mxu0 %v4790_v42  ;;  %1469 = vmatprep.subr.bf16.mxu1 %v4793_v43 }
 0x443   :  { %1429 = vmatpush1.bf16.msra.mxu0 %v4796_v45  ;;  %1470 = vmatpush1.bf16.msra.mxu1 %v4799_v46 }
 0x444   :  { %1430 = vmatprep.subr.bf16.mxu0 %v4802_v47  ;;  %1471 = vmatprep.subr.bf16.mxu1 %v4805_v48 }
 0x447   :  { %1431 = vmatpush1.bf16.msra.mxu0 %v4432_v63  ;;  %1472 = vmatpush1.bf16.msra.mxu1 %v4434_v1  ;;  %v1291_v63 = vunpack.c.h.bf16 %v5573_v49 }
 0x448   :  { %1432 = vmatprep.subr.bf16.mxu0 %v4436_v2  ;;  %1473 = vmatprep.subr.bf16.mxu1 %v4438_v3  ;;  %v1292_v3 = vunpack.c.l.bf16 %v5574_v56  ;;  %v4860_v56 = vld [vmem:[#allocation8 + $0x4] ss:$16 sps:$4 sm:$0xff]  }
 0x44b   :  { %1433 = vmatpush1.bf16.msra.mxu0 %v4444_v4  ;;  %1474 = vmatpush1.bf16.msra.mxu1 %v4446_v5 }
 0x44c   :  { %1541 = vmatprep.subr.bf16.mxu0 %v4716_v36  ;;  %1582 = vmatprep.subr.bf16.mxu1 %v4719_v37 }
 0x4ee   :  { %v1329_v51 = vpop.f32.mrf.mxu0  ;;  %v1370_v52 = vpop.f32.mrf.mxu1 }
 0x4ef   :  { %v1377_v54 = vadd.f32 %v1329_v51, %v1290_v50  ;;  %v1379_v5 = vadd.f32 %v1370_v52, %v1292_v3  ;;  %v4863_v3 = vld [vmem:[#allocation8 + $0xc] ss:$16 sps:$4 sm:$0xff]  }
 0x4f0   :  { %v1331_v1 = vpop.f32.mrf.mxu0  ;;  %v1372_v55 = vpop.f32.mrf.mxu1 }
 0x4f1   :  { %v1381_v2 = vmul.f32 0.5, %v1377_v54  ;;  %v1378_v57 = vadd.f32 %v1331_v1, %v1291_v63  ;;  %v1380_v44 = vadd.f32 %v1372_v55, %v1293_v16 }
 0x4f2   :  { %v1333_v4 = vpop.f32.mrf.mxu0  ;;  %v1374_v58 = vpop.f32.mrf.mxu1 }
 0x4f3   :  { %3984 = vtanh.f32 %v1381_v2  ;;  %v1385_v59 = vmul.f32 0.5, %v1378_v57  ;;  %v1390_v21 = vmul.f32 0.5, %v1380_v44  ;;  %v4857_v2 = vld [vmem:[#allocation8 + $0x28] ss:$16 sps:$4 sm:$0xff]   ;;  %v4866_v57 = vld [vmem:[#allocation8] ss:$16 sps:$4 sm:$0xff]  }
 0x4f4   :  { %v1334_v60 = vpop.f32.mrf.mxu0  ;;  %v1375_v61 = vpop.f32.mrf.mxu1  ;;  %v4869_v4 = vld [vmem:[#allocation8 + $0x8] ss:$16 sps:$4 sm:$0xff]  }
 0x4f5   :  { %3986 = vtanh.f32 %v1385_v59  ;;  %v5575_v58 = vld [vmem:[#allocation19_spill] sm:$0xff] }
 0x4f6   :  { %3988 = vtanh.f32 %v1379_v5  ;;  %v1413_v5 = vunpack.c.l.bf16 %v5575_v58  ;;  %v1414_v16 = vunpack.c.h.bf16 %v5575_v58 }
 0x4f7   :  { %3990 = vtanh.f32 %v1390_v21 }
 0x500   :  { %v3985_v24 = vpop.eup %3984 }
 0x501   :  { %v1383_v8 = vmul.f32 0.5, %v3985_v24 }
 0x502   :  { %v3987_v33 = vpop.eup %3986 }
 0x503   :  { %v1384_v34 = vadd.f32 0.5, %v1383_v8  ;;  %v1387_v14 = vmul.f32 0.5, %v3987_v33  ;;  %v3989_v7 = vpop.eup %3988  ;;  %v5576_v8 = vld [vmem:[#allocation20_spill] sm:$0xff] }
 0x504   :  { %v3991_v51 = vpop.eup %3990  ;;  %v1415_v33 = vunpack.c.l.bf16 %v5576_v8 }
 0x505   :  { %v1388_v13 = vadd.f32 0.5, %v1387_v14  ;;  %v1395_v6 = vmul.f32 %v3989_v7, %v1384_v34  ;;  %v1392_v52 = vmul.f32 0.5, %v3991_v51 }
 0x507   :  { %v1394_v49 = vmul.f32 %v1388_v13, %v4727_v31  ;;  %v1393_v54 = vadd.f32 0.5, %v1392_v52  ;;  %v4854_v31 = vld [vmem:[#allocation8 + $0x20] ss:$16 sps:$4 sm:$0xff]  }
 0x509   :  { %v4821_v50 = vadd.f32 %v1395_v6, %v1394_v49  ;;  %v1416_v49 = vunpack.c.h.bf16 %v5576_v8 }
 0x50b   :  { %3992 = vtanh.f32 %v4821_v50 }
 0x518   :  { %v3993_v63 = vpop.eup %3992 }
 0x519   :  { %v4824_v1 = vmul.f32 %v3993_v63, %v1393_v54 }
 0x51b   :  { %v1417_v55 = vpack.c.bf16 %v4824_v1, %v4824_v1 }
 0x51d   :  { %1451 = vmatmul.mubr.bf16.vlgmr.msra.gmra.mxu0 %v1417_v55  ;;  %1492 = vmatmul.mubr.bf16.vlgmr.msra.gmra.mxu1 %v1417_v55 }
 0x51e   :  { %1542 = vmatpush1.bf16.msra.mxu0 %v4734_v28  ;;  %1583 = vmatpush1.bf16.msra.mxu1 %v4737_v35 }
 0x51f   :  { %1543 = vmatprep.subr.bf16.mxu0 %v4740_v26  ;;  %1584 = vmatprep.subr.bf16.mxu1 %v4743_v17 }
 0x520   :  { %1573 = vmatprep.mubr.bf16.mxu0 %v5572_v12  ;;  %1614 = vmatprep.mubr.bf16.mxu1 %v5572_v12 }
 0x522   :  { %1544 = vmatpush1.bf16.msra.mxu0 %v4748_v11  ;;  %1585 = vmatpush1.bf16.msra.mxu1 %v4751_v0 }
 0x523   :  { %1545 = vmatprep.subr.bf16.mxu0 %v4754_v18  ;;  %1586 = vmatprep.subr.bf16.mxu1 %v4757_v30 }
 0x526   :  { %1546 = vmatpush1.bf16.msra.mxu0 %v4760_v15  ;;  %1587 = vmatpush1.bf16.msra.mxu1 %v4763_v25 }
 0x527   :  { %1547 = vmatprep.subr.bf16.mxu0 %v4766_v32  ;;  %1588 = vmatprep.subr.bf16.mxu1 %v4769_v27 }
 0x52a   :  { %1548 = vmatpush1.bf16.msra.mxu0 %v4772_v53  ;;  %1589 = vmatpush1.bf16.msra.mxu1 %v4775_v20 }
 0x52b   :  { %1549 = vmatprep.subr.bf16.mxu0 %v4778_v38  ;;  %1590 = vmatprep.subr.bf16.mxu1 %v4781_v39 }
 0x52e   :  { %1550 = vmatpush1.bf16.msra.mxu0 %v4784_v40  ;;  %1591 = vmatpush1.bf16.msra.mxu1 %v4787_v41 }
 0x52f   :  { %1551 = vmatprep.subr.bf16.mxu0 %v4790_v42  ;;  %1592 = vmatprep.subr.bf16.mxu1 %v4793_v43 }
 0x532   :  { %1552 = vmatpush1.bf16.msra.mxu0 %v4796_v45  ;;  %1593 = vmatpush1.bf16.msra.mxu1 %v4799_v46 }
 0x533   :  { %1553 = vmatprep.subr.bf16.mxu0 %v4802_v47  ;;  %1594 = vmatprep.subr.bf16.mxu1 %v4805_v48 }
 0x536   :  { %1554 = vmatpush1.bf16.msra.mxu0 %v4854_v31  ;;  %1595 = vmatpush1.bf16.msra.mxu1 %v4857_v2 }
 0x537   :  { %1555 = vmatprep.subr.bf16.mxu0 %v4860_v56  ;;  %1596 = vmatprep.subr.bf16.mxu1 %v4863_v3 }
 0x53a   :  { %1556 = vmatpush1.bf16.msra.mxu0 %v4866_v57  ;;  %1597 = vmatpush1.bf16.msra.mxu1 %v4869_v4 }
 0x53b   :  { %1664 = vmatprep.subr.bf16.mxu0 %v4716_v36  ;;  %1705 = vmatprep.subr.bf16.mxu1 %v4719_v37 }
 0x5dd   :  { %v1452_v59 = vpop.f32.mrf.mxu0  ;;  %v1493_v60 = vpop.f32.mrf.mxu1 }
 0x5de   :  { %v1500_v61 = vadd.f32 %v1452_v59, %v1413_v5  ;;  %v1502_v13 = vadd.f32 %v1493_v60, %v1415_v33 }
 0x5df   :  { %v1454_v44 = vpop.f32.mrf.mxu0  ;;  %v1495_v21 = vpop.f32.mrf.mxu1 }
 0x5e0   :  { %v1504_v24 = vmul.f32 0.5, %v1500_v61  ;;  %v1501_v34 = vadd.f32 %v1454_v44, %v1414_v16  ;;  %v1503_v51 = vadd.f32 %v1495_v21, %v1416_v49  ;;  %v3840_v49 = vld [vmem:[#allocation10 + $0xe0] ss:$16 sps:$4 sm:$0xff]  }
 0x5e1   :  { %v1456_v14 = vpop.f32.mrf.mxu0  ;;  %v1497_v7 = vpop.f32.mrf.mxu1 }
 0x5e2   :  { %3994 = vtanh.f32 %v1504_v24  ;;  %v1508_v36 = vmul.f32 0.5, %v1501_v34  ;;  %v1513_v52 = vmul.f32 0.5, %v1503_v51  ;;  %v3843_v51 = vld [vmem:[#allocation10 + $0xe8] ss:$16 sps:$4 sm:$0xff]  }
 0x5e3   :  { %v1457_v6 = vpop.f32.mrf.mxu0  ;;  %v1498_v37 = vpop.f32.mrf.mxu1 }
 0x5e4   :  { %3996 = vtanh.f32 %v1508_v36 }
 0x5e5   :  { %3998 = vtanh.f32 %v1502_v13 }
 0x5e6   :  { %4000 = vtanh.f32 %v1513_v52 }
 0x5ef   :  { %v3995_v54 = vpop.eup %3994 }
 0x5f0   :  { %v1506_v63 = vmul.f32 0.5, %v3995_v54  ;;  %v3848_v54 = vld [vmem:[#allocation10 + $0xc4] ss:$16 sps:$4 sm:$0xff]  }
 0x5f1   :  { %v3997_v55 = vpop.eup %3996 }
 0x5f2   :  { %v1507_v58 = vadd.f32 0.5, %v1506_v63  ;;  %v1510_v5 = vmul.f32 0.5, %v3997_v55  ;;  %v3999_v59 = vpop.eup %3998  ;;  %v3851_v63 = vld [vmem:[#allocation10 + $0xcc] ss:$16 sps:$4 sm:$0xff]   ;;  %v3846_v55 = vld [vmem:[#allocation10 + $0xc0] ss:$16 sps:$4 sm:$0xff]  }
 0x5f3   :  { %v4001_v24 = vpop.eup %4000 }
 0x5f4   :  { %v1511_v61 = vadd.f32 0.5, %v1510_v5  ;;  %v1518_v16 = vmul.f32 %v3999_v59, %v1507_v58  ;;  %v1515_v33 = vmul.f32 0.5, %v4001_v24  ;;  %v3849_v58 = vld [vmem:[#allocation10 + $0xc8] ss:$16 sps:$4 sm:$0xff]   ;;  %v3854_v5 = vld [vmem:[#allocation10 + $0xa4] ss:$16 sps:$4 sm:$0xff]  }
 0x5f5   :  { %v3857_v59 = vld [vmem:[#allocation10 + $0xac] ss:$16 sps:$4 sm:$0xff]   ;;  %v3858_v24 = vld [vmem:[#allocation10 + $0x80] ss:$16 sps:$4 sm:$0xff]  }
 0x5f6   :  { %v1517_v60 = vmul.f32 %v1511_v61, %v4821_v50  ;;  %v1516_v8 = vadd.f32 0.5, %v1515_v33  ;;  %v3852_v61 = vld [vmem:[#allocation10 + $0xa0] ss:$16 sps:$4 sm:$0xff]   ;;  %v3861_v33 = vld [vmem:[#allocation10 + $0x88] ss:$16 sps:$4 sm:$0xff]  }
 0x5f8   :  { %v4879_v44 = vadd.f32 %v1518_v16, %v1517_v60  ;;  %v3855_v16 = vld [vmem:[#allocation10 + $0xa8] ss:$16 sps:$4 sm:$0xff]   ;;  %v3860_v60 = vld [vmem:[#allocation10 + $0x84] ss:$16 sps:$4 sm:$0xff]  }
 0x5fa   :  { %4002 = vtanh.f32 %v4879_v44 }
 0x607   :  { %v4003_v21 = vpop.eup %4002 }
 0x608   :  { %v4882_v34 = vmul.f32 %v4003_v21, %v1516_v8  ;;  %v3866_v8 = vld [vmem:[#allocation10 + $0x64] ss:$16 sps:$4 sm:$0xff]   ;;  %v3869_v21 = vld [vmem:[#allocation10 + $0x6c] ss:$16 sps:$4 sm:$0xff]  }
 0x60a   :  { %v1540_v14 = vpack.c.bf16 %v4882_v34, %v4882_v34 }
 0x60c   :  { %1574 = vmatmul.mubr.bf16.vlgmr.msra.gmra.mxu0 %v1540_v14  ;;  %1615 = vmatmul.mubr.bf16.vlgmr.msra.gmra.mxu1 %v1540_v14  ;;  %v3864_v14 = vld [vmem:[#allocation10 + $0x60] ss:$16 sps:$4 sm:$0xff]  }
 0x60d   :  { %1665 = vmatpush1.bf16.msra.mxu0 %v4734_v28  ;;  %1706 = vmatpush1.bf16.msra.mxu1 %v4737_v35  ;;  %v3842_v28 = vld [vmem:[#allocation10 + $0xe4] ss:$16 sps:$4 sm:$0xff]   ;;  %v3845_v35 = vld [vmem:[#allocation10 + $0xec] ss:$16 sps:$4 sm:$0xff]  }
 0x60e   :  { %1666 = vmatprep.subr.bf16.mxu0 %v4740_v26  ;;  %1707 = vmatprep.subr.bf16.mxu1 %v4743_v17  ;;  %v1536_v26 = vunpack.c.l.bf16 %v4573_v62 }
 0x60f   :  { %1696 = vmatprep.mubr.bf16.mxu0 %v5572_v12  ;;  %1737 = vmatprep.mubr.bf16.mxu1 %v5572_v12 }
 0x611   :  { %1667 = vmatpush1.bf16.msra.mxu0 %v4748_v11  ;;  %1708 = vmatpush1.bf16.msra.mxu1 %v4751_v0 }
 0x612   :  { %1668 = vmatprep.subr.bf16.mxu0 %v4754_v18  ;;  %1709 = vmatprep.subr.bf16.mxu1 %v4757_v30  ;;  %v1537_v18 = vunpack.c.h.bf16 %v4573_v62 }
 0x615   :  { %1669 = vmatpush1.bf16.msra.mxu0 %v4760_v15  ;;  %1710 = vmatpush1.bf16.msra.mxu1 %v4763_v25 }
 0x616   :  { %1670 = vmatprep.subr.bf16.mxu0 %v4766_v32  ;;  %1711 = vmatprep.subr.bf16.mxu1 %v4769_v27  ;;  %v5577_v32 = vld [vmem:[#allocation21_spill] sm:$0xff] }
 0x617   :  { %v1538_v27 = vunpack.c.l.bf16 %v5577_v32 }
 0x619   :  { %1671 = vmatpush1.bf16.msra.mxu0 %v4772_v53  ;;  %1712 = vmatpush1.bf16.msra.mxu1 %v4775_v20 }
 0x61a   :  { %1672 = vmatprep.subr.bf16.mxu0 %v4778_v38  ;;  %1713 = vmatprep.subr.bf16.mxu1 %v4781_v39 }
 0x61d   :  { %1673 = vmatpush1.bf16.msra.mxu0 %v4784_v40  ;;  %1714 = vmatpush1.bf16.msra.mxu1 %v4787_v41 }
 0x61e   :  { %1674 = vmatprep.subr.bf16.mxu0 %v4790_v42  ;;  %1715 = vmatprep.subr.bf16.mxu1 %v4793_v43  ;;  %v1539_v43 = vunpack.c.h.bf16 %v5577_v32  ;;  %v3887_v32 = vld [vmem:[#allocation10 + $0xc] ss:$16 sps:$4 sm:$0xff]  }
 0x621   :  { %1675 = vmatpush1.bf16.msra.mxu0 %v4796_v45  ;;  %1716 = vmatpush1.bf16.msra.mxu1 %v4799_v46 }
 0x622   :  { %1676 = vmatprep.subr.bf16.mxu0 %v4802_v47  ;;  %1717 = vmatprep.subr.bf16.mxu1 %v4805_v48 }
 0x625   :  { %1677 = vmatpush1.bf16.msra.mxu0 %v4854_v31  ;;  %1718 = vmatpush1.bf16.msra.mxu1 %v4857_v2 }
 0x626   :  { %1678 = vmatprep.subr.bf16.mxu0 %v4860_v56  ;;  %1719 = vmatprep.subr.bf16.mxu1 %v4863_v3 }
 0x629   :  { %1679 = vmatpush1.bf16.msra.mxu0 %v4866_v57  ;;  %1720 = vmatpush1.bf16.msra.mxu1 %v4869_v4 }
 0x62a   :  { %2037 = vmatprep.subr.bf16.mxu0 %v3842_v28  ;;  %2110 = vmatprep.subr.bf16.mxu1 %v3845_v35  ;;  %v3867_v28 = vld [vmem:[#allocation10 + $0x68] ss:$16 sps:$4 sm:$0xff]   ;;  %v3872_v35 = vld [vmem:[#allocation10 + $0x44] ss:$16 sps:$4 sm:$0xff]  }
 0x6cc   :  { %v1575_v17 = vpop.f32.mrf.mxu0  ;;  %v1616_v11 = vpop.f32.mrf.mxu1 }
 0x6cd   :  { %v1623_v0 = vadd.f32 %v1575_v17, %v1536_v26  ;;  %v1625_v39 = vadd.f32 %v1616_v11, %v1538_v27  ;;  %v3875_v26 = vld [vmem:[#allocation10 + $0x4c] ss:$16 sps:$4 sm:$0xff]   ;;  %v3870_v17 = vld [vmem:[#allocation10 + $0x40] ss:$16 sps:$4 sm:$0xff]   ;;  %v3873_v11 = vld [vmem:[#allocation10 + $0x48] ss:$16 sps:$4 sm:$0xff]  }
 0x6ce   :  { %v1577_v30 = vpop.f32.mrf.mxu0  ;;  %v1618_v15 = vpop.f32.mrf.mxu1  ;;  %v3882_v27 = vld [vmem:[#allocation10] ss:$16 sps:$4 sm:$0xff]  }
 0x6cf   :  { %v1627_v25 = vmul.f32 0.5, %v1623_v0  ;;  %v1624_v53 = vadd.f32 %v1577_v30, %v1537_v18  ;;  %v1626_v45 = vadd.f32 %v1618_v15, %v1539_v43  ;;  %v3878_v0 = vld [vmem:[#allocation10 + $0x24] ss:$16 sps:$4 sm:$0xff]   ;;  %v3881_v18 = vld [vmem:[#allocation10 + $0x2c] ss:$16 sps:$4 sm:$0xff]  }
 0x6d0   :  { %v1579_v20 = vpop.f32.mrf.mxu0  ;;  %v1620_v38 = vpop.f32.mrf.mxu1  ;;  %v3876_v30 = vld [vmem:[#allocation10 + $0x20] ss:$16 sps:$4 sm:$0xff]   ;;  %v3879_v15 = vld [vmem:[#allocation10 + $0x28] ss:$16 sps:$4 sm:$0xff]   ;;  %v4970_v43 = vld [vmem:[#allocation11 + $0xac] ss:$16 sps:$4 sm:$0xff]  }
 0x6d1   :  { %4004 = vtanh.f32 %v1627_v25  ;;  %v1631_v40 = vmul.f32 0.5, %v1624_v53  ;;  %v1636_v46 = vmul.f32 0.5, %v1626_v45  ;;  %v3884_v25 = vld [vmem:[#allocation10 + $0x4] ss:$16 sps:$4 sm:$0xff]   ;;  %v3885_v53 = vld [vmem:[#allocation10 + $0x8] ss:$16 sps:$4 sm:$0xff]   ;;  %v1852_v20 = vpack.c.bf16 %v4634_v22, %v4588_v19 }
 0x6d2   :  { %v1580_v41 = vpop.f32.mrf.mxu0  ;;  %v1621_v42 = vpop.f32.mrf.mxu1  ;;  %v1853_v38 = vpack.c.bf16 %v4730_v29, %v4680_v23  ;;  %v4944_v19 = vld [vmem:[#allocation11 + $0xe4] ss:$16 sps:$4 sm:$0xff]   ;;  %v4946_v22 = vld [vmem:[#allocation11 + $0xec] ss:$16 sps:$4 sm:$0xff]   ;;  %v4948_v23 = vld [vmem:[#allocation11 + $0xe0] ss:$16 sps:$4 sm:$0xff]  }
 0x6d3   :  { %4006 = vtanh.f32 %v1631_v40  ;;  %v4950_v29 = vld [vmem:[#allocation11 + $0xe8] ss:$16 sps:$4 sm:$0xff]   ;;  %v4960_v40 = vld [vmem:[#allocation11 + $0xc0] ss:$16 sps:$4 sm:$0xff]   ;;  %v4968_v42 = vld [vmem:[#allocation11 + $0xa4] ss:$16 sps:$4 sm:$0xff]  }
 0x6d4   :  { %4008 = vtanh.f32 %v1625_v39  ;;  %v1854_v39 = vpack.c.bf16 %v4882_v34, %v4824_v1  ;;  %v4956_v1 = vld [vmem:[#allocation11 + $0xc4] ss:$16 sps:$4 sm:$0xff]   ;;  %v4958_v34 = vld [vmem:[#allocation11 + $0xcc] ss:$16 sps:$4 sm:$0xff]   ;;  %v4962_v41 = vld [vmem:[#allocation11 + $0xc8] ss:$16 sps:$4 sm:$0xff]  }
 0x6d5   :  { %4010 = vtanh.f32 %v1636_v46  ;;  %v4972_v45 = vld [vmem:[#allocation11 + $0xa0] ss:$16 sps:$4 sm:$0xff]   ;;  %v4974_v46 = vld [vmem:[#allocation11 + $0xa8] ss:$16 sps:$4 sm:$0xff]  }
 0x6de   :  { %v4005_v62 = vpop.eup %4004 }
 0x6df   :  { %v1629_v47 = vmul.f32 0.5, %v4005_v62  ;;  %v4980_v62 = vld [vmem:[#allocation11 + $0x84] ss:$16 sps:$4 sm:$0xff]  }
 0x6e0   :  { %v4007_v48 = vpop.eup %4006 }
 0x6e1   :  { %v1630_v50 = vadd.f32 0.5, %v1629_v47  ;;  %v1633_v31 = vmul.f32 0.5, %v4007_v48  ;;  %v4009_v2 = vpop.eup %4008  ;;  %v4982_v47 = vld [vmem:[#allocation11 + $0x8c] ss:$16 sps:$4 sm:$0xff]   ;;  %v4984_v48 = vld [vmem:[#allocation11 + $0x80] ss:$16 sps:$4 sm:$0xff]  }
 0x6e2   :  { %v4011_v7 = vpop.eup %4010 }
 0x6e3   :  { %v1634_v56 = vadd.f32 0.5, %v1633_v31  ;;  %v1641_v3 = vmul.f32 %v4009_v2, %v1630_v50  ;;  %v1638_v13 = vmul.f32 0.5, %v4011_v7  ;;  %v4986_v50 = vld [vmem:[#allocation11 + $0x88] ss:$16 sps:$4 sm:$0xff]   ;;  %v4992_v31 = vld [vmem:[#allocation11 + $0x64] ss:$16 sps:$4 sm:$0xff]  }
 0x6e4   :  { %v4994_v2 = vld [vmem:[#allocation11 + $0x6c] ss:$16 sps:$4 sm:$0xff]  }
 0x6e5   :  { %v1640_v57 = vmul.f32 %v1634_v56, %v4879_v44  ;;  %v1639_v36 = vadd.f32 0.5, %v1638_v13  ;;  %v3863_v44 = vld [vmem:[#allocation10 + $0x8c] ss:$16 sps:$4 sm:$0xff]   ;;  %v4996_v56 = vld [vmem:[#allocation11 + $0x60] ss:$16 sps:$4 sm:$0xff]  }
 0x6e6   :  { %v5006_v7 = vld [vmem:[#allocation11 + $0x4c] ss:$16 sps:$4 sm:$0xff]   ;;  %v5008_v13 = vld [vmem:[#allocation11 + $0x40] ss:$16 sps:$4 sm:$0xff]  }
 0x6e7   :  { %v4923_v4 = vadd.f32 %v1641_v3, %v1640_v57  ;;  %v4998_v3 = vld [vmem:[#allocation11 + $0x68] ss:$16 sps:$4 sm:$0xff]   ;;  %v5004_v57 = vld [vmem:[#allocation11 + $0x44] ss:$16 sps:$4 sm:$0xff]  }
 0x6e9   :  { %4012 = vtanh.f32 %v4923_v4 }
 0x6f6   :  { %v4013_v6 = vpop.eup %4012 }
 0x6f7   :  { %v4926_v37 = vmul.f32 %v4013_v6, %v1639_v36  ;;  %v5010_v36 = vld [vmem:[#allocation11 + $0x48] ss:$16 sps:$4 sm:$0xff]   ;;  %v5016_v6 = vld [vmem:[#allocation11 + $0x24] ss:$16 sps:$4 sm:$0xff]  }
 0x6f9   :  { %v1663_v52 = vpack.c.bf16 %v4926_v37, %v4926_v37 }
 0x6fb   :  { %1697 = vmatmul.mubr.bf16.vlgmr.msra.gmra.mxu0 %v1663_v52  ;;  %1738 = vmatmul.mubr.bf16.vlgmr.msra.gmra.mxu1 %v1663_v52  ;;  %v5022_v52 = vld [vmem:[#allocation11 + $0x28] ss:$16 sps:$4 sm:$0xff]  }
 0x6fc   :  { %2038 = vmatpush1.bf16.msra.mxu0 %v3840_v49  ;;  %2111 = vmatpush1.bf16.msra.mxu1 %v3843_v51  ;;  %v5018_v49 = vld [vmem:[#allocation11 + $0x2c] ss:$16 sps:$4 sm:$0xff]   ;;  %v5020_v51 = vld [vmem:[#allocation11 + $0x20] ss:$16 sps:$4 sm:$0xff]  }
 0x6fd   :  { %2039 = vmatprep.subr.bf16.mxu0 %v3848_v54  ;;  %2112 = vmatprep.subr.bf16.mxu1 %v3851_v63  ;;  %v5028_v54 = vld [vmem:[#allocation11 + $0x4] ss:$16 sps:$4 sm:$0xff]   ;;  %v5030_v63 = vld [vmem:[#allocation11 + $0xc] ss:$16 sps:$4 sm:$0xff]  }
 0x6fe   :  { %2069 = vmatprep.mubr.bf16.mxu0 %v5572_v12  ;;  %2142 = vmatprep.mubr.bf16.mxu1 %v5572_v12 }
 0x700   :  { %2040 = vmatpush1.bf16.msra.mxu0 %v3846_v55  ;;  %2113 = vmatpush1.bf16.msra.mxu1 %v3849_v58  ;;  %v5032_v55 = vld [vmem:[#allocation11] ss:$16 sps:$4 sm:$0xff]   ;;  %v5034_v58 = vld [vmem:[#allocation11 + $0x8] ss:$16 sps:$4 sm:$0xff]  }
 0x701   :  { %2041 = vmatprep.subr.bf16.mxu0 %v3854_v5  ;;  %2114 = vmatprep.subr.bf16.mxu1 %v3857_v59  ;;  %v1659_v5 = vunpack.c.l.bf16 %v4581_v10 }
 0x704   :  { %2042 = vmatpush1.bf16.msra.mxu0 %v3852_v61  ;;  %2115 = vmatpush1.bf16.msra.mxu1 %v3855_v16 }
 0x705   :  { %2043 = vmatprep.subr.bf16.mxu0 %v3860_v60  ;;  %2116 = vmatprep.subr.bf16.mxu1 %v3863_v44  ;;  %v1660_v60 = vunpack.c.h.bf16 %v4581_v10 }
 0x708   :  { %2044 = vmatpush1.bf16.msra.mxu0 %v3858_v24  ;;  %2117 = vmatpush1.bf16.msra.mxu1 %v3861_v33 }
 0x709   :  { %2045 = vmatprep.subr.bf16.mxu0 %v3866_v8  ;;  %2118 = vmatprep.subr.bf16.mxu1 %v3869_v21  ;;  %v1661_v8 = vunpack.c.l.bf16 %v4583_v9 }
 0x70c   :  { %2046 = vmatpush1.bf16.msra.mxu0 %v3864_v14  ;;  %2119 = vmatpush1.bf16.msra.mxu1 %v3867_v28 }
 0x70d   :  { %2047 = vmatprep.subr.bf16.mxu0 %v3872_v35  ;;  %2120 = vmatprep.subr.bf16.mxu1 %v3875_v26 }
 0x710   :  { %2048 = vmatpush1.bf16.msra.mxu0 %v3870_v17  ;;  %2121 = vmatpush1.bf16.msra.mxu1 %v3873_v11 }
 0x711   :  { %2049 = vmatprep.subr.bf16.mxu0 %v3878_v0  ;;  %2122 = vmatprep.subr.bf16.mxu1 %v3881_v18  ;;  %v1662_v0 = vunpack.c.h.bf16 %v4583_v9  ;;  %v1843_v9 = vld [vmem:[%s5539_s6] sm:$0xf] }
 0x714   :  { %2050 = vmatpush1.bf16.msra.mxu0 %v3876_v30  ;;  %2123 = vmatpush1.bf16.msra.mxu1 %v3879_v15 }
 0x715   :  { %2051 = vmatprep.subr.bf16.mxu0 %v3884_v25  ;;  %2124 = vmatprep.subr.bf16.mxu1 %v3887_v32 }
 0x718   :  { %2052 = vmatpush1.bf16.msra.mxu0 %v3882_v27  ;;  %2125 = vmatpush1.bf16.msra.mxu1 %v3885_v53 }
 0x719   :  { %2466 = vmatprep.subr.bf16.mxu0 %v4944_v19  ;;  %2507 = vmatprep.subr.bf16.mxu1 %v4946_v22 }
 0x71b   :  { %2070 = vmatmul.mubr.bf16.vlgmr.msra.gmra.mxu0 %v1852_v20  ;;  %2143 = vmatmul.mubr.bf16.vlgmr.msra.gmra.mxu1 %v1852_v20 }
 0x71c   :  { %2079 = vmatprep.mubr.bf16.mxu0 %v5572_v12  ;;  %2152 = vmatprep.mubr.bf16.mxu1 %v5572_v12 }
 0x71d   :  { %2467 = vmatpush1.bf16.msra.mxu0 %v4948_v23  ;;  %2508 = vmatpush1.bf16.msra.mxu1 %v4950_v29 }
 0x71e   :  { %2468 = vmatprep.subr.bf16.mxu0 %v4956_v1  ;;  %2509 = vmatprep.subr.bf16.mxu1 %v4958_v34 }
 0x721   :  { %2469 = vmatpush1.bf16.msra.mxu0 %v4960_v40  ;;  %2510 = vmatpush1.bf16.msra.mxu1 %v4962_v41 }
 0x722   :  { %2470 = vmatprep.subr.bf16.mxu0 %v4968_v42  ;;  %2511 = vmatprep.subr.bf16.mxu1 %v4970_v43 }
 0x723   :  { %2080 = vmatmul.mubr.bf16.gmra.mxu0 %v1853_v38  ;;  %2153 = vmatmul.mubr.bf16.gmra.mxu1 %v1853_v38 }
 0x724   :  { %2089 = vmatprep.mubr.bf16.mxu0 %v5572_v12  ;;  %2162 = vmatprep.mubr.bf16.mxu1 %v5572_v12 }
 0x725   :  { %2471 = vmatpush1.bf16.msra.mxu0 %v4972_v45  ;;  %2512 = vmatpush1.bf16.msra.mxu1 %v4974_v46 }
 0x726   :  { %2472 = vmatprep.subr.bf16.mxu0 %v4980_v62  ;;  %2513 = vmatprep.subr.bf16.mxu1 %v4982_v47 }
 0x729   :  { %2473 = vmatpush1.bf16.msra.mxu0 %v4984_v48  ;;  %2514 = vmatpush1.bf16.msra.mxu1 %v4986_v50 }
 0x72a   :  { %2474 = vmatprep.subr.bf16.mxu0 %v4992_v31  ;;  %2515 = vmatprep.subr.bf16.mxu1 %v4994_v2 }
 0x72b   :  { %2090 = vmatmul.mubr.bf16.gmra.mxu0 %v1854_v39  ;;  %2163 = vmatmul.mubr.bf16.gmra.mxu1 %v1854_v39 }
 0x72c   :  { %2099 = vmatprep.mubr.bf16.mxu0 %v5572_v12  ;;  %2172 = vmatprep.mubr.bf16.mxu1 %v5572_v12 }
 0x72d   :  { %2475 = vmatpush1.bf16.msra.mxu0 %v4996_v56  ;;  %2516 = vmatpush1.bf16.msra.mxu1 %v4998_v3 }
 0x72e   :  { %2476 = vmatprep.subr.bf16.mxu0 %v5004_v57  ;;  %2517 = vmatprep.subr.bf16.mxu1 %v5006_v7 }
 0x731   :  { %2477 = vmatpush1.bf16.msra.mxu0 %v5008_v13  ;;  %2518 = vmatpush1.bf16.msra.mxu1 %v5010_v36 }
 0x732   :  { %2478 = vmatprep.subr.bf16.mxu0 %v5016_v6  ;;  %2519 = vmatprep.subr.bf16.mxu1 %v5018_v49 }
 0x735   :  { %2479 = vmatpush1.bf16.msra.mxu0 %v5020_v51  ;;  %2520 = vmatpush1.bf16.msra.mxu1 %v5022_v52 }
 0x736   :  { %2480 = vmatprep.subr.bf16.mxu0 %v5028_v54  ;;  %2521 = vmatprep.subr.bf16.mxu1 %v5030_v63 }
 0x739   :  { %2481 = vmatpush1.bf16.msra.mxu0 %v5032_v55  ;;  %2522 = vmatpush1.bf16.msra.mxu1 %v5034_v58 }
 0x73a   :  { %2579 = vmatprep.subr.bf16.mxu0 %v4944_v19  ;;  %2620 = vmatprep.subr.bf16.mxu1 %v4946_v22 }
 0x7bb   :  { %v1698_v59 = vpop.f32.mrf.mxu0  ;;  %v1739_v61 = vpop.f32.mrf.mxu1 }
 0x7bc   :  { %v1746_v16 = vadd.f32 %v1698_v59, %v1659_v5  ;;  %v1748_v35 = vadd.f32 %v1739_v61, %v1661_v8 }
 0x7bd   :  { %v1700_v44 = vpop.f32.mrf.mxu0  ;;  %v1741_v24 = vpop.f32.mrf.mxu1 }
 0x7be   :  { %v1750_v33 = vmul.f32 0.5, %v1746_v16  ;;  %v1747_v21 = vadd.f32 %v1700_v44, %v1660_v60  ;;  %v1749_v18 = vadd.f32 %v1741_v24, %v1662_v0  ;;  %v5578_v24 = vld [vmem:[#allocation16_spill] sm:$0xff] }
 0x7bf   :  { %v1702_v14 = vpop.f32.mrf.mxu0  ;;  %v1743_v28 = vpop.f32.mrf.mxu1 }
 0x7c0   :  { %4014 = vtanh.f32 %v1750_v33  ;;  %v1754_v26 = vmul.f32 0.5, %v1747_v21  ;;  %v1759_v30 = vmul.f32 0.5, %v1749_v18  ;;  %v5579_v33 = vsub.s32 0, %v5578_v24 }
 0x7c1   :  { %v1703_v17 = vpop.f32.mrf.mxu0  ;;  %v1744_v11 = vpop.f32.mrf.mxu1  ;;  %v5581_v28 = vsub.s32 2, %v5578_v24 }
 0x7c2   :  { %4016 = vtanh.f32 %v1754_v26  ;;  %v5060_v8 = vrot.slane %v1843_v9, %v5579_v33  ;;  %v5583_v26 = vsub.s32 1, %v5578_v24  ;;  %v5584_v11 = vsub.s32 3, %v5578_v24 }
 0x7c3   :  { %4018 = vtanh.f32 %v1748_v35  ;;  %v5064_v35 = vrot.slane %v1843_v9, %v5581_v28 }
 0x7c4   :  { %4020 = vtanh.f32 %v1759_v30  ;;  %5580 = vst [vmem:[#allocation17_spill] sm:$0xff] %v5060_v8  ;;  %v5068_v17 = vrot.slane %v1843_v9, %v5583_v26  ;;  %v5072_v0 = vrot.slane %v1843_v9, %v5584_v11 }
 0x7c5   :  { %5582 = vst [vmem:[#allocation18_spill] sm:$0xff] %v5064_v35 }
 0x7cd   :  { %v4015_v10 = vpop.eup %4014 }
 0x7ce   :  { %v1752_v15 = vmul.f32 0.5, %v4015_v10 }
 0x7cf   :  { %v4017_v25 = vpop.eup %4016 }
 0x7d0   :  { %v1753_v32 = vadd.f32 0.5, %v1752_v15  ;;  %v1756_v27 = vmul.f32 0.5, %v4017_v25  ;;  %v4019_v53 = vpop.eup %4018 }
 0x7d1   :  { %v4021_v16 = vpop.eup %4020 }
 0x7d2   :  { %v1757_v20 = vadd.f32 0.5, %v1756_v27  ;;  %v1764_v38 = vmul.f32 %v4019_v53, %v1753_v32  ;;  %v1761_v14 = vmul.f32 0.5, %v4021_v16 }
 0x7d4   :  { %v1763_v39 = vmul.f32 %v1757_v20, %v4923_v4  ;;  %v1762_v20 = vadd.f32 0.5, %v1761_v14 }
 0x7d6   :  { %v1765_v5 = vadd.f32 %v1764_v38, %v1763_v39 }
 0x7d8   :  { %4022 = vtanh.f32 %v1765_v5 }
 0x7db   :  { %v5047_v59 = vpop.f32.mrf.mxu0  ;;  %v5049_v61 = vpop.f32.mrf.mxu1 }
 0x7dd   :  { %v5054_v60 = vpop.f32.mrf.mxu0  ;;  %v5056_v44 = vpop.f32.mrf.mxu1 }
 0x7df   :  { %v2075_v4 = vpop.f32.mrf.mxu0  ;;  %v2148_v21 = vpop.f32.mrf.mxu1 }
 0x7e0   :  { %v2076_v10 = vadd.f32 %v2075_v4, %v5060_v8  ;;  %v2149_v15 = vadd.f32 %v2148_v21, %v5064_v35 }
 0x7e1   :  { %v2077_v18 = vpop.f32.mrf.mxu0  ;;  %v2150_v30 = vpop.f32.mrf.mxu1 }
 0x7e2   :  { %v2078_v25 = vadd.f32 %v2077_v18, %v5068_v17  ;;  %v2151_v32 = vadd.f32 %v2150_v30, %v5072_v0 }
 0x7e3   :  { %v2081_v27 = vpop.f32.mrf.mxu0  ;;  %v2154_v53 = vpop.f32.mrf.mxu1 }
 0x7e4   :  { %v5078_v38 = vpack.c.bf16 %v2078_v25, %v2076_v10  ;;  %v5080_v39 = vpack.c.bf16 %v2151_v32, %v2149_v15  ;;  %v2082_v9 = vadd.f32 %v2081_v27, %v5060_v8  ;;  %v2155_v33 = vadd.f32 %v2154_v53, %v5064_v35 }
 0x7e5   :  { %v4023_v5 = vpop.eup %4022  ;;  %v2083_v16 = vpop.f32.mrf.mxu0 }
 0x7e6   :  { %v2156_v24 = vpop.f32.mrf.mxu1  ;;  %v2084_v4 = vadd.f32 %v2083_v16, %v5068_v17  ;;  %v1767_v28 = vmul.f32 %v4023_v5, %v1762_v20 }
 0x7e7   :  { %v2157_v21 = vadd.f32 %v2156_v24, %v5072_v0  ;;  %v2085_v26 = vpop.f32.mrf.mxu0 }
 0x7e8   :  { %v2158_v11 = vpop.f32.mrf.mxu1  ;;  %v5086_v18 = vpack.c.bf16 %v2084_v4, %v2082_v9  ;;  %v1855_v15 = vpack.c.bf16 %v1767_v28, %v4926_v37  ;;  %v2086_v25 = vadd.f32 %v2085_v26, %v5060_v8 }
 0x7e9   :  { %v5088_v14 = vpack.c.bf16 %v2157_v21, %v2155_v33  ;;  %v2087_v30 = vpop.f32.mrf.mxu0  ;;  %v2159_v32 = vadd.f32 %v2158_v11, %v5064_v35 }
 0x7ea   :  { %v2160_v10 = vpop.f32.mrf.mxu1  ;;  %v2088_v27 = vadd.f32 %v2087_v30, %v5068_v17  ;;  %2100 = vmatmul.mubr.bf16.gmra.mxu0 %v1855_v15  ;;  %2173 = vmatmul.mubr.bf16.gmra.mxu1 %v1855_v15  ;;  %v5589_v30 = vmov 0.0|0.0  }
 0x7eb   :  { %v2161_v53 = vadd.f32 %v2160_v10, %v5072_v0  ;;  %v2091_v16 = vpop.f32.mrf.mxu0  ;;  %2498 = vmatprep.mubr.bf16.mxu0 %v5572_v12  ;;  %2539 = vmatprep.mubr.bf16.mxu1 %v5572_v12 }
 0x7ec   :  { %v2164_v20 = vpop.f32.mrf.mxu1  ;;  %v5095_v5 = vpack.c.bf16 %v2088_v27, %v2086_v25  ;;  %v2092_v33 = vadd.f32 %v2091_v16, %v5060_v8  ;;  %v2074_v25 = vadd.f32 %v5054_v60, %v5068_v17 }
 0x7ed   :  { %v5097_v9 = vpack.c.bf16 %v2161_v53, %v2159_v32  ;;  %v2093_v24 = vpop.f32.mrf.mxu0  ;;  %v2165_v4 = vadd.f32 %v2164_v20, %v5064_v35  ;;  %v2072_v53 = vadd.f32 %v5047_v59, %v5060_v8 }
 0x7ee   :  { %5585 = vst [vmem:[#allocation19_spill] sm:$0xff] %v5095_v5  ;;  %v2166_v37 = vpop.f32.mrf.mxu1  ;;  %v2094_v21 = vadd.f32 %v2093_v24, %v5068_v17 }
 0x7ef   :  { %5586 = vst [vmem:[#allocation20_spill] sm:$0xff] %v5097_v9  ;;  %v2167_v28 = vadd.f32 %v2166_v37, %v5072_v0  ;;  %v5145_v10 = vpop.f32.mrf.mxu0  ;;  %v3685_v24 = vpack.c.bf16 %v2074_v25, %v2072_v53  ;;  %v2145_v25 = vadd.f32 %v5049_v61, %v5064_v35 }
 0x7f0   :  { %v5105_v26 = vpack.c.bf16 %v2094_v21, %v2092_v33  ;;  %5590 = vst [vmem:[#allocation22_spill] sm:$0xff] %v5145_v10  ;;  %v5147_v15 = vpop.f32.mrf.mxu1 }
 0x7f1   :  { %v5107_v11 = vpack.c.bf16 %v2167_v28, %v2165_v4  ;;  %5591 = vst [vmem:[#allocation23_spill] sm:$0xff] %v5147_v15  ;;  %v5151_v32 = vpop.f32.mrf.mxu0  ;;  %v2302_v61 = vunpack.c.h.bf16 %v3685_v24 }
 0x7f2   :  { %5587 = vst [vmem:[#allocation21_spill] sm:$0xff] %v5105_v26  ;;  %2499 = vmatmul.mubr.bf16.vlgmr.msra.gmra.mxu0 %v5589_v30  ;;  %2540 = vmatmul.mubr.bf16.vlgmr.msra.gmra.mxu1 %v5589_v30  ;;  %5592 = vst [vmem:[#allocation24_spill] sm:$0xff] %v5151_v32  ;;  %v5153_v27 = vpop.f32.mrf.mxu1  ;;  %v2147_v30 = vadd.f32 %v5056_v44, %v5072_v0  ;;  %v2301_v32 = vunpack.c.l.bf16 %v3685_v24 }
 0x7f3   :  { %5588 = vst [vmem:[#allocation16_spill] sm:$0xff] %v5107_v11  ;;  %2580 = vmatpush1.bf16.msra.mxu0 %v4948_v23  ;;  %2621 = vmatpush1.bf16.msra.mxu1 %v4950_v29  ;;  %5593 = vst [vmem:[#allocation25_spill] sm:$0xff] %v5153_v27 }
 0x7f4   :  { %2581 = vmatprep.subr.bf16.mxu0 %v4956_v1  ;;  %2622 = vmatprep.subr.bf16.mxu1 %v4958_v34  ;;  %v3686_v11 = vpack.c.bf16 %v2147_v30, %v2145_v25 }
 0x7f5   :  { %2611 = vmatprep.mubr.bf16.mxu0 %v5572_v12  ;;  %2652 = vmatprep.mubr.bf16.mxu1 %v5572_v12 }
 0x7f6   :  { %v2304_v25 = vunpack.c.h.bf16 %v3686_v11 }
 0x7f7   :  { %2582 = vmatpush1.bf16.msra.mxu0 %v4960_v40  ;;  %2623 = vmatpush1.bf16.msra.mxu1 %v4962_v41 }
 0x7f8   :  { %2583 = vmatprep.subr.bf16.mxu0 %v4968_v42  ;;  %2624 = vmatprep.subr.bf16.mxu1 %v4970_v43 }
 0x7fb   :  { %2584 = vmatpush1.bf16.msra.mxu0 %v4972_v45  ;;  %2625 = vmatpush1.bf16.msra.mxu1 %v4974_v46 }
 0x7fc   :  { %2585 = vmatprep.subr.bf16.mxu0 %v4980_v62  ;;  %2626 = vmatprep.subr.bf16.mxu1 %v4982_v47 }
 0x7ff   :  { %2586 = vmatpush1.bf16.msra.mxu0 %v4984_v48  ;;  %2627 = vmatpush1.bf16.msra.mxu1 %v4986_v50 }
 0x800   :  { %2587 = vmatprep.subr.bf16.mxu0 %v4992_v31  ;;  %2628 = vmatprep.subr.bf16.mxu1 %v4994_v2 }
 0x803   :  { %2588 = vmatpush1.bf16.msra.mxu0 %v4996_v56  ;;  %2629 = vmatpush1.bf16.msra.mxu1 %v4998_v3 }
 0x804   :  { %2589 = vmatprep.subr.bf16.mxu0 %v5004_v57  ;;  %2630 = vmatprep.subr.bf16.mxu1 %v5006_v7 }
 0x807   :  { %2590 = vmatpush1.bf16.msra.mxu0 %v5008_v13  ;;  %2631 = vmatpush1.bf16.msra.mxu1 %v5010_v36 }
 0x808   :  { %2591 = vmatprep.subr.bf16.mxu0 %v5016_v6  ;;  %2632 = vmatprep.subr.bf16.mxu1 %v5018_v49 }
 0x80b   :  { %2592 = vmatpush1.bf16.msra.mxu0 %v5020_v51  ;;  %2633 = vmatpush1.bf16.msra.mxu1 %v5022_v52 }
 0x80c   :  { %2593 = vmatprep.subr.bf16.mxu0 %v5028_v54  ;;  %2634 = vmatprep.subr.bf16.mxu1 %v5030_v63 }
 0x80f   :  { %2594 = vmatpush1.bf16.msra.mxu0 %v5032_v55  ;;  %2635 = vmatpush1.bf16.msra.mxu1 %v5034_v58 }
 0x810   :  { %2692 = vmatprep.subr.bf16.mxu0 %v4944_v19  ;;  %2733 = vmatprep.subr.bf16.mxu1 %v4946_v22 }
 0x8aa   :  { %v2101_v16 = vpop.f32.mrf.mxu0  ;;  %v2174_v20 = vpop.f32.mrf.mxu1 }
 0x8ab   :  { %v2102_v4 = vadd.f32 %v2101_v16, %v5060_v8  ;;  %v2175_v21 = vadd.f32 %v2174_v20, %v5064_v35 }
 0x8ac   :  { %v2103_v37 = vpop.f32.mrf.mxu0  ;;  %v2176_v33 = vpop.f32.mrf.mxu1 }
 0x8ad   :  { %v2104_v28 = vadd.f32 %v2103_v37, %v5068_v17  ;;  %v2177_v60 = vadd.f32 %v2176_v33, %v5072_v0 }
 0x8ae   :  { %v2105_v15 = vpop.f32.mrf.mxu0  ;;  %v2178_v27 = vpop.f32.mrf.mxu1 }
 0x8af   :  { %v5163_v10 = vpack.c.bf16 %v2104_v28, %v2102_v4  ;;  %v5165_v59 = vpack.c.bf16 %v2177_v60, %v2175_v21  ;;  %v2106_v20 = vadd.f32 %v2105_v15, %v5060_v8  ;;  %v2179_v37 = vadd.f32 %v2178_v27, %v5064_v35 }
 0x8b0   :  { %v2107_v53 = vpop.f32.mrf.mxu0  ;;  %v2180_v16 = vpop.f32.mrf.mxu1  ;;  %v2303_v27 = vunpack.c.l.bf16 %v3686_v11 }
 0x8b1   :  { %5594 = vst [vmem:[#allocation26_spill] sm:$0xff] %v5163_v10  ;;  %5595 = vst [vmem:[#allocation27_spill] sm:$0xff] %v5165_v59  ;;  %v2108_v33 = vadd.f32 %v2107_v53, %v5068_v17  ;;  %v2181_v44 = vadd.f32 %v2180_v16, %v5072_v0 }
 0x8b2   :  { %v2500_v26 = vpop.f32.mrf.mxu0  ;;  %v2541_v4 = vpop.f32.mrf.mxu1 }
 0x8b3   :  { %v5173_v28 = vpack.c.bf16 %v2108_v33, %v2106_v20  ;;  %v5175_v21 = vpack.c.bf16 %v2181_v44, %v2179_v37  ;;  %v2548_v60 = vadd.f32 %v2500_v26, %v2301_v32  ;;  %v2550_v30 = vadd.f32 %v2541_v4, %v2303_v27 }
 0x8b4   :  { %v2502_v59 = vpop.f32.mrf.mxu0  ;;  %v2543_v10 = vpop.f32.mrf.mxu1  ;;  %v2574_v27 = vunpack.c.l.bf16 %v5078_v38 }
 0x8b5   :  { %v2552_v9 = vmul.f32 0.5, %v2548_v60  ;;  %v2549_v5 = vadd.f32 %v2502_v59, %v2302_v61  ;;  %v2551_v20 = vadd.f32 %v2543_v10, %v2304_v25  ;;  %v2575_v25 = vunpack.c.h.bf16 %v5078_v38 }
 0x8b6   :  { %v2504_v15 = vpop.f32.mrf.mxu0  ;;  %v2545_v8 = vpop.f32.mrf.mxu1 }
 0x8b7   :  { %4024 = vtanh.f32 %v2552_v9  ;;  %v2556_v53 = vmul.f32 0.5, %v2549_v5  ;;  %v2561_v37 = vmul.f32 0.5, %v2551_v20 }
 0x8b8   :  { %v2505_v35 = vpop.f32.mrf.mxu0  ;;  %v2546_v16 = vpop.f32.mrf.mxu1 }
 0x8b9   :  { %4026 = vtanh.f32 %v2556_v53 }
 0x8ba   :  { %4028 = vtanh.f32 %v2550_v30 }
 0x8bb   :  { %4030 = vtanh.f32 %v2561_v37 }
 0x8c4   :  { %v4025_v33 = vpop.eup %4024 }
 0x8c5   :  { %v2554_v26 = vmul.f32 0.5, %v4025_v33 }
 0x8c6   :  { %v4027_v32 = vpop.eup %4026 }
 0x8c7   :  { %v2555_v24 = vadd.f32 0.5, %v2554_v26  ;;  %v2558_v44 = vmul.f32 0.5, %v4027_v32  ;;  %v4029_v60 = vpop.eup %4028  ;;  %v2576_v26 = vunpack.c.l.bf16 %v5080_v39 }
 0x8c8   :  { %v4031_v35 = vpop.eup %4030 }
 0x8c9   :  { %v2559_v59 = vadd.f32 0.5, %v2558_v44  ;;  %v2566_v9 = vmul.f32 %v4029_v60, %v2555_v24  ;;  %v2563_v5 = vmul.f32 0.5, %v4031_v35  ;;  %v2577_v35 = vunpack.c.h.bf16 %v5080_v39 }
 0x8cb   :  { %v2565_v8 = vmul.f32 0.0, %v2559_v59  ;;  %v2564_v4 = vadd.f32 0.5, %v2563_v5 }
 0x8cd   :  { %v5177_v61 = vadd.f32 %v2566_v9, %v2565_v8 }
 0x8cf   :  { %4032 = vtanh.f32 %v5177_v61 }
 0x8dc   :  { %v4033_v11 = vpop.eup %4032 }
 0x8dd   :  { %v2569_v10 = vmul.f32 %v4033_v11, %v2564_v4 }
 0x8df   :  { %v2578_v15 = vpack.c.bf16 %v2569_v10, %v2569_v10 }
 0x8e1   :  { %2612 = vmatmul.mubr.bf16.vlgmr.msra.gmra.mxu0 %v2578_v15  ;;  %2653 = vmatmul.mubr.bf16.vlgmr.msra.gmra.mxu1 %v2578_v15 }
 0x8e2   :  { %2693 = vmatpush1.bf16.msra.mxu0 %v4948_v23  ;;  %2734 = vmatpush1.bf16.msra.mxu1 %v4950_v29 }
 0x8e3   :  { %2694 = vmatprep.subr.bf16.mxu0 %v4956_v1  ;;  %2735 = vmatprep.subr.bf16.mxu1 %v4958_v34 }
 0x8e4   :  { %2724 = vmatprep.mubr.bf16.mxu0 %v5572_v12  ;;  %2765 = vmatprep.mubr.bf16.mxu1 %v5572_v12 }
 0x8e6   :  { %2695 = vmatpush1.bf16.msra.mxu0 %v4960_v40  ;;  %2736 = vmatpush1.bf16.msra.mxu1 %v4962_v41 }
 0x8e7   :  { %2696 = vmatprep.subr.bf16.mxu0 %v4968_v42  ;;  %2737 = vmatprep.subr.bf16.mxu1 %v4970_v43 }
 0x8ea   :  { %2697 = vmatpush1.bf16.msra.mxu0 %v4972_v45  ;;  %2738 = vmatpush1.bf16.msra.mxu1 %v4974_v46 }
 0x8eb   :  { %2698 = vmatprep.subr.bf16.mxu0 %v4980_v62  ;;  %2739 = vmatprep.subr.bf16.mxu1 %v4982_v47 }
 0x8ee   :  { %2699 = vmatpush1.bf16.msra.mxu0 %v4984_v48  ;;  %2740 = vmatpush1.bf16.msra.mxu1 %v4986_v50 }
 0x8ef   :  { %2700 = vmatprep.subr.bf16.mxu0 %v4992_v31  ;;  %2741 = vmatprep.subr.bf16.mxu1 %v4994_v2 }
 0x8f2   :  { %2701 = vmatpush1.bf16.msra.mxu0 %v4996_v56  ;;  %2742 = vmatpush1.bf16.msra.mxu1 %v4998_v3 }
 0x8f3   :  { %2702 = vmatprep.subr.bf16.mxu0 %v5004_v57  ;;  %2743 = vmatprep.subr.bf16.mxu1 %v5006_v7 }
 0x8f6   :  { %2703 = vmatpush1.bf16.msra.mxu0 %v5008_v13  ;;  %2744 = vmatpush1.bf16.msra.mxu1 %v5010_v36 }
 0x8f7   :  { %2704 = vmatprep.subr.bf16.mxu0 %v5016_v6  ;;  %2745 = vmatprep.subr.bf16.mxu1 %v5018_v49 }
 0x8fa   :  { %2705 = vmatpush1.bf16.msra.mxu0 %v5020_v51  ;;  %2746 = vmatpush1.bf16.msra.mxu1 %v5022_v52 }
 0x8fb   :  { %2706 = vmatprep.subr.bf16.mxu0 %v5028_v54  ;;  %2747 = vmatprep.subr.bf16.mxu1 %v5030_v63 }
 0x8fe   :  { %2707 = vmatpush1.bf16.msra.mxu0 %v5032_v55  ;;  %2748 = vmatpush1.bf16.msra.mxu1 %v5034_v58 }
 0x8ff   :  { %2805 = vmatprep.subr.bf16.mxu0 %v4944_v19  ;;  %2846 = vmatprep.subr.bf16.mxu1 %v4946_v22 }
 0x9a1   :  { %v2613_v53 = vpop.f32.mrf.mxu0  ;;  %v2654_v16 = vpop.f32.mrf.mxu1 }
 0x9a2   :  { %v2661_v30 = vadd.f32 %v2613_v53, %v2574_v27  ;;  %v2663_v59 = vadd.f32 %v2654_v16, %v2576_v26 }
 0x9a3   :  { %v2615_v20 = vpop.f32.mrf.mxu0  ;;  %v2656_v37 = vpop.f32.mrf.mxu1 }
 0x9a4   :  { %v2665_v33 = vmul.f32 0.5, %v2661_v30  ;;  %v2662_v32 = vadd.f32 %v2615_v20, %v2575_v25  ;;  %v2664_v5 = vadd.f32 %v2656_v37, %v2577_v35 }
 0x9a5   :  { %v2617_v24 = vpop.f32.mrf.mxu0  ;;  %v2658_v44 = vpop.f32.mrf.mxu1 }
 0x9a6   :  { %4034 = vtanh.f32 %v2665_v33  ;;  %v2669_v60 = vmul.f32 0.5, %v2662_v32  ;;  %v2674_v4 = vmul.f32 0.5, %v2664_v5 }
 0x9a7   :  { %v2618_v8 = vpop.f32.mrf.mxu0  ;;  %v2659_v9 = vpop.f32.mrf.mxu1 }
 0x9a8   :  { %4036 = vtanh.f32 %v2669_v60  ;;  %v2688_v8 = vunpack.c.h.bf16 %v5086_v18 }
 0x9a9   :  { %4038 = vtanh.f32 %v2663_v59 }
 0x9aa   :  { %4040 = vtanh.f32 %v2674_v4  ;;  %v2689_v4 = vunpack.c.l.bf16 %v5088_v14 }
 0x9b3   :  { %v4035_v38 = vpop.eup %4034 }
 0x9b4   :  { %v2667_v11 = vmul.f32 0.5, %v4035_v38 }
 0x9b5   :  { %v4037_v10 = vpop.eup %4036 }
 0x9b6   :  { %v2668_v15 = vadd.f32 0.5, %v2667_v11  ;;  %v2671_v27 = vmul.f32 0.5, %v4037_v10  ;;  %v4039_v53 = vpop.eup %4038 }
 0x9b7   :  { %v4041_v33 = vpop.eup %4040 }
 0x9b8   :  { %v2672_v30 = vadd.f32 0.5, %v2671_v27  ;;  %v2679_v25 = vmul.f32 %v4039_v53, %v2668_v15  ;;  %v2676_v26 = vmul.f32 0.5, %v4041_v33 }
 0x9ba   :  { %v2678_v16 = vmul.f32 %v2672_v30, %v5177_v61  ;;  %v2677_v39 = vadd.f32 0.5, %v2676_v26  ;;  %v2687_v61 = vunpack.c.l.bf16 %v5086_v18 }
 0x9bc   :  { %v5219_v20 = vadd.f32 %v2679_v25, %v2678_v16  ;;  %v2690_v25 = vunpack.c.h.bf16 %v5088_v14 }
 0x9be   :  { %4042 = vtanh.f32 %v5219_v20 }
 0x9cb   :  { %v4043_v37 = vpop.eup %4042 }
 0x9cc   :  { %v2682_v32 = vmul.f32 %v4043_v37, %v2677_v39 }
 0x9ce   :  { %v2691_v24 = vpack.c.bf16 %v2682_v32, %v2682_v32 }
 0x9d0   :  { %2725 = vmatmul.mubr.bf16.vlgmr.msra.gmra.mxu0 %v2691_v24  ;;  %2766 = vmatmul.mubr.bf16.vlgmr.msra.gmra.mxu1 %v2691_v24 }
 0x9d1   :  { %2806 = vmatpush1.bf16.msra.mxu0 %v4948_v23  ;;  %2847 = vmatpush1.bf16.msra.mxu1 %v4950_v29 }
 0x9d2   :  { %2807 = vmatprep.subr.bf16.mxu0 %v4956_v1  ;;  %2848 = vmatprep.subr.bf16.mxu1 %v4958_v34 }
 0x9d3   :  { %2837 = vmatprep.mubr.bf16.mxu0 %v5572_v12  ;;  %2878 = vmatprep.mubr.bf16.mxu1 %v5572_v12 }
 0x9d5   :  { %2808 = vmatpush1.bf16.msra.mxu0 %v4960_v40  ;;  %2849 = vmatpush1.bf16.msra.mxu1 %v4962_v41 }
 0x9d6   :  { %2809 = vmatprep.subr.bf16.mxu0 %v4968_v42  ;;  %2850 = vmatprep.subr.bf16.mxu1 %v4970_v43 }
 0x9d9   :  { %2810 = vmatpush1.bf16.msra.mxu0 %v4972_v45  ;;  %2851 = vmatpush1.bf16.msra.mxu1 %v4974_v46 }
 0x9da   :  { %2811 = vmatprep.subr.bf16.mxu0 %v4980_v62  ;;  %2852 = vmatprep.subr.bf16.mxu1 %v4982_v47 }
 0x9dd   :  { %2812 = vmatpush1.bf16.msra.mxu0 %v4984_v48  ;;  %2853 = vmatpush1.bf16.msra.mxu1 %v4986_v50 }
 0x9de   :  { %2813 = vmatprep.subr.bf16.mxu0 %v4992_v31  ;;  %2854 = vmatprep.subr.bf16.mxu1 %v4994_v2 }
 0x9e1   :  { %2814 = vmatpush1.bf16.msra.mxu0 %v4996_v56  ;;  %2855 = vmatpush1.bf16.msra.mxu1 %v4998_v3 }
 0x9e2   :  { %2815 = vmatprep.subr.bf16.mxu0 %v5004_v57  ;;  %2856 = vmatprep.subr.bf16.mxu1 %v5006_v7 }
 0x9e5   :  { %2816 = vmatpush1.bf16.msra.mxu0 %v5008_v13  ;;  %2857 = vmatpush1.bf16.msra.mxu1 %v5010_v36 }
 0x9e6   :  { %2817 = vmatprep.subr.bf16.mxu0 %v5016_v6  ;;  %2858 = vmatprep.subr.bf16.mxu1 %v5018_v49 }
 0x9e9   :  { %2818 = vmatpush1.bf16.msra.mxu0 %v5020_v51  ;;  %2859 = vmatpush1.bf16.msra.mxu1 %v5022_v52 }
 0x9ea   :  { %2819 = vmatprep.subr.bf16.mxu0 %v5028_v54  ;;  %2860 = vmatprep.subr.bf16.mxu1 %v5030_v63 }
 0x9ed   :  { %2820 = vmatpush1.bf16.msra.mxu0 %v5032_v55  ;;  %2861 = vmatpush1.bf16.msra.mxu1 %v5034_v58 }
 0x9ee   :  { %2918 = vmatprep.subr.bf16.mxu0 %v4944_v19  ;;  %2959 = vmatprep.subr.bf16.mxu1 %v4946_v22 }
 0xa90   :  { %v2726_v44 = vpop.f32.mrf.mxu0  ;;  %v2767_v59 = vpop.f32.mrf.mxu1 }
 0xa91   :  { %v2774_v60 = vadd.f32 %v2726_v44, %v2687_v61  ;;  %v2776_v15 = vadd.f32 %v2767_v59, %v2689_v4 }
 0xa92   :  { %v2728_v9 = vpop.f32.mrf.mxu0  ;;  %v2769_v35 = vpop.f32.mrf.mxu1 }
 0xa93   :  { %v2778_v5 = vmul.f32 0.5, %v2774_v60  ;;  %v2775_v38 = vadd.f32 %v2728_v9, %v2688_v8  ;;  %v2777_v16 = vadd.f32 %v2769_v35, %v2690_v25 }
 0xa94   :  { %v2730_v11 = vpop.f32.mrf.mxu0  ;;  %v2771_v10 = vpop.f32.mrf.mxu1 }
 0xa95   :  { %4044 = vtanh.f32 %v2778_v5  ;;  %v2782_v27 = vmul.f32 0.5, %v2775_v38  ;;  %v2787_v33 = vmul.f32 0.5, %v2777_v16  ;;  %v5597_v16 = vld [vmem:[#allocation20_spill] sm:$0xff] }
 0xa96   :  { %v2731_v53 = vpop.f32.mrf.mxu0  ;;  %v2772_v30 = vpop.f32.mrf.mxu1 }
 0xa97   :  { %4046 = vtanh.f32 %v2782_v27 }
 0xa98   :  { %4048 = vtanh.f32 %v2776_v15 }
 0xa99   :  { %4050 = vtanh.f32 %v2787_v33  ;;  %v2802_v33 = vunpack.c.l.bf16 %v5597_v16 }
 0xaa2   :  { %v4045_v18 = vpop.eup %4044 }
 0xaa3   :  { %v2780_v26 = vmul.f32 0.5, %v4045_v18 }
 0xaa4   :  { %v4047_v39 = vpop.eup %4046 }
 0xaa5   :  { %v2781_v37 = vadd.f32 0.5, %v2780_v26  ;;  %v2784_v32 = vmul.f32 0.5, %v4047_v39  ;;  %v4049_v24 = vpop.eup %4048 }
 0xaa6   :  { %v4051_v8 = vpop.eup %4050 }
 0xaa7   :  { %v2785_v61 = vadd.f32 0.5, %v2784_v32  ;;  %v2792_v44 = vmul.f32 %v4049_v24, %v2781_v37  ;;  %v2789_v9 = vmul.f32 0.5, %v4051_v8  ;;  %v2803_v24 = vunpack.c.h.bf16 %v5597_v16 }
 0xaa9   :  { %v2791_v59 = vmul.f32 %v2785_v61, %v5219_v20  ;;  %v2790_v14 = vadd.f32 0.5, %v2789_v9  ;;  %v5596_v20 = vld [vmem:[#allocation19_spill] sm:$0xff] }
 0xaaa   :  { %v2800_v38 = vunpack.c.l.bf16 %v5596_v20  ;;  %v2801_v27 = vunpack.c.h.bf16 %v5596_v20 }
 0xaab   :  { %v5261_v60 = vadd.f32 %v2792_v44, %v2791_v59 }
 0xaad   :  { %4052 = vtanh.f32 %v5261_v60 }
 0xaba   :  { %v4053_v35 = vpop.eup %4052 }
 0xabb   :  { %v2795_v5 = vmul.f32 %v4053_v35, %v2790_v14 }
 0xabd   :  { %v2804_v4 = vpack.c.bf16 %v2795_v5, %v2795_v5 }
 0xabf   :  { %2838 = vmatmul.mubr.bf16.vlgmr.msra.gmra.mxu0 %v2804_v4  ;;  %2879 = vmatmul.mubr.bf16.vlgmr.msra.gmra.mxu1 %v2804_v4 }
 0xac0   :  { %2919 = vmatpush1.bf16.msra.mxu0 %v4948_v23  ;;  %2960 = vmatpush1.bf16.msra.mxu1 %v4950_v29 }
 0xac1   :  { %2920 = vmatprep.subr.bf16.mxu0 %v4956_v1  ;;  %2961 = vmatprep.subr.bf16.mxu1 %v4958_v34 }
 0xac2   :  { %2950 = vmatprep.mubr.bf16.mxu0 %v5572_v12  ;;  %2991 = vmatprep.mubr.bf16.mxu1 %v5572_v12 }
 0xac4   :  { %2921 = vmatpush1.bf16.msra.mxu0 %v4960_v40  ;;  %2962 = vmatpush1.bf16.msra.mxu1 %v4962_v41 }
 0xac5   :  { %2922 = vmatprep.subr.bf16.mxu0 %v4968_v42  ;;  %2963 = vmatprep.subr.bf16.mxu1 %v4970_v43 }
 0xac8   :  { %2923 = vmatpush1.bf16.msra.mxu0 %v4972_v45  ;;  %2964 = vmatpush1.bf16.msra.mxu1 %v4974_v46 }
 0xac9   :  { %2924 = vmatprep.subr.bf16.mxu0 %v4980_v62  ;;  %2965 = vmatprep.subr.bf16.mxu1 %v4982_v47 }
 0xacc   :  { %2925 = vmatpush1.bf16.msra.mxu0 %v4984_v48  ;;  %2966 = vmatpush1.bf16.msra.mxu1 %v4986_v50 }
 0xacd   :  { %2926 = vmatprep.subr.bf16.mxu0 %v4992_v31  ;;  %2967 = vmatprep.subr.bf16.mxu1 %v4994_v2 }
 0xad0   :  { %2927 = vmatpush1.bf16.msra.mxu0 %v4996_v56  ;;  %2968 = vmatpush1.bf16.msra.mxu1 %v4998_v3 }
 0xad1   :  { %2928 = vmatprep.subr.bf16.mxu0 %v5004_v57  ;;  %2969 = vmatprep.subr.bf16.mxu1 %v5006_v7 }
 0xad4   :  { %2929 = vmatpush1.bf16.msra.mxu0 %v5008_v13  ;;  %2970 = vmatpush1.bf16.msra.mxu1 %v5010_v36 }
 0xad5   :  { %2930 = vmatprep.subr.bf16.mxu0 %v5016_v6  ;;  %2971 = vmatprep.subr.bf16.mxu1 %v5018_v49 }
 0xad8   :  { %2931 = vmatpush1.bf16.msra.mxu0 %v5020_v51  ;;  %2972 = vmatpush1.bf16.msra.mxu1 %v5022_v52 }
 0xad9   :  { %2932 = vmatprep.subr.bf16.mxu0 %v5028_v54  ;;  %2973 = vmatprep.subr.bf16.mxu1 %v5030_v63 }
 0xadc   :  { %2933 = vmatpush1.bf16.msra.mxu0 %v5032_v55  ;;  %2974 = vmatpush1.bf16.msra.mxu1 %v5034_v58 }
 0xadd   :  { %3031 = vmatprep.subr.bf16.mxu0 %v4944_v19  ;;  %3072 = vmatprep.subr.bf16.mxu1 %v4946_v22 }
 0xb7f   :  { %v2839_v11 = vpop.f32.mrf.mxu0  ;;  %v2880_v10 = vpop.f32.mrf.mxu1 }
 0xb80   :  { %v2887_v15 = vadd.f32 %v2839_v11, %v2800_v38  ;;  %v2889_v37 = vadd.f32 %v2880_v10, %v2802_v33 }
 0xb81   :  { %v2841_v53 = vpop.f32.mrf.mxu0  ;;  %v2882_v30 = vpop.f32.mrf.mxu1 }
 0xb82   :  { %v2891_v25 = vmul.f32 0.5, %v2887_v15  ;;  %v2888_v18 = vadd.f32 %v2841_v53, %v2801_v27  ;;  %v2890_v61 = vadd.f32 %v2882_v30, %v2803_v24  ;;  %v5355_v24 = vld [vmem:[#allocation11 + $0xe8] ss:$16 sps:$4 sm:$0xff]  }
 0xb83   :  { %v2843_v26 = vpop.f32.mrf.mxu0  ;;  %v2884_v39 = vpop.f32.mrf.mxu1 }
 0xb84   :  { %4054 = vtanh.f32 %v2891_v25  ;;  %v2895_v19 = vmul.f32 0.5, %v2888_v18  ;;  %v2900_v44 = vmul.f32 0.5, %v2890_v61  ;;  %v5358_v61 = vld [vmem:[#allocation11 + $0xc4] ss:$16 sps:$4 sm:$0xff]  }
 0xb85   :  { %v2844_v32 = vpop.f32.mrf.mxu0  ;;  %v2885_v22 = vpop.f32.mrf.mxu1 }
 0xb86   :  { %4056 = vtanh.f32 %v2895_v19  ;;  %v5352_v22 = vld [vmem:[#allocation11 + $0xe0] ss:$16 sps:$4 sm:$0xff]  }
 0xb87   :  { %4058 = vtanh.f32 %v2889_v37 }
 0xb88   :  { %4060 = vtanh.f32 %v2900_v44  ;;  %v5361_v44 = vld [vmem:[#allocation11 + $0xcc] ss:$16 sps:$4 sm:$0xff]  }
 0xb91   :  { %v4055_v59 = vpop.eup %4054 }
 0xb92   :  { %v2893_v8 = vmul.f32 0.5, %v4055_v59  ;;  %v5366_v59 = vld [vmem:[#allocation11 + $0xc0] ss:$16 sps:$4 sm:$0xff]  }
 0xb93   :  { %v4057_v9 = vpop.eup %4056 }
 0xb94   :  { %v2894_v14 = vadd.f32 0.5, %v2893_v8  ;;  %v2897_v35 = vmul.f32 0.5, %v4057_v9  ;;  %v4059_v5 = vpop.eup %4058  ;;  %v5369_v8 = vld [vmem:[#allocation11 + $0xc8] ss:$16 sps:$4 sm:$0xff]   ;;  %v5372_v9 = vld [vmem:[#allocation11 + $0xa4] ss:$16 sps:$4 sm:$0xff]  }
 0xb95   :  { %v4061_v10 = vpop.eup %4060 }
 0xb96   :  { %v2898_v4 = vadd.f32 0.5, %v2897_v35  ;;  %v2905_v20 = vmul.f32 %v4059_v5, %v2894_v14  ;;  %v2902_v15 = vmul.f32 0.5, %v4061_v10  ;;  %v5375_v14 = vld [vmem:[#allocation11 + $0xac] ss:$16 sps:$4 sm:$0xff]   ;;  %v5378_v35 = vld [vmem:[#allocation11 + $0xa0] ss:$16 sps:$4 sm:$0xff]  }
 0xb97   :  { %v5381_v5 = vld [vmem:[#allocation11 + $0xa8] ss:$16 sps:$4 sm:$0xff]   ;;  %v5396_v10 = vld [vmem:[#allocation11 + $0x64] ss:$16 sps:$4 sm:$0xff]  }
 0xb98   :  { %v2904_v38 = vmul.f32 %v2898_v4, %v5261_v60  ;;  %v2903_v27 = vadd.f32 0.5, %v2902_v15  ;;  %v5384_v4 = vld [vmem:[#allocation11 + $0x84] ss:$16 sps:$4 sm:$0xff]   ;;  %v5399_v15 = vld [vmem:[#allocation11 + $0x6c] ss:$16 sps:$4 sm:$0xff]  }
 0xb9a   :  { %v5303_v11 = vadd.f32 %v2905_v20, %v2904_v38  ;;  %v5387_v20 = vld [vmem:[#allocation11 + $0x8c] ss:$16 sps:$4 sm:$0xff]   ;;  %v5390_v38 = vld [vmem:[#allocation11 + $0x80] ss:$16 sps:$4 sm:$0xff]  }
 0xb9c   :  { %4062 = vtanh.f32 %v5303_v11 }
 0xba9   :  { %v4063_v53 = vpop.eup %4062 }
 0xbaa   :  { %v2908_v30 = vmul.f32 %v4063_v53, %v2903_v27  ;;  %v5402_v27 = vld [vmem:[#allocation11 + $0x60] ss:$16 sps:$4 sm:$0xff]   ;;  %v5405_v53 = vld [vmem:[#allocation11 + $0x68] ss:$16 sps:$4 sm:$0xff]  }
 0xbac   :  { %v2917_v25 = vpack.c.bf16 %v2908_v30, %v2908_v30  ;;  %v5408_v30 = vld [vmem:[#allocation11 + $0x44] ss:$16 sps:$4 sm:$0xff]  }
 0xbae   :  { %2951 = vmatmul.mubr.bf16.vlgmr.msra.gmra.mxu0 %v2917_v25  ;;  %2992 = vmatmul.mubr.bf16.vlgmr.msra.gmra.mxu1 %v2917_v25  ;;  %v5411_v25 = vld [vmem:[#allocation11 + $0x4c] ss:$16 sps:$4 sm:$0xff]  }
 0xbaf   :  { %3032 = vmatpush1.bf16.msra.mxu0 %v4948_v23  ;;  %3073 = vmatpush1.bf16.msra.mxu1 %v4950_v29  ;;  %v5338_v23 = vld [vmem:[#allocation11 + $0xe4] ss:$16 sps:$4 sm:$0xff]   ;;  %v5341_v29 = vld [vmem:[#allocation11 + $0xec] ss:$16 sps:$4 sm:$0xff]  }
 0xbb0   :  { %3033 = vmatprep.subr.bf16.mxu0 %v4956_v1  ;;  %3074 = vmatprep.subr.bf16.mxu1 %v4958_v34  ;;  %v5598_v1 = vld [vmem:[#allocation21_spill] sm:$0xff] }
 0xbb1   :  { %3063 = vmatprep.mubr.bf16.mxu0 %v5572_v12  ;;  %3104 = vmatprep.mubr.bf16.mxu1 %v5572_v12  ;;  %v2913_v34 = vunpack.c.l.bf16 %v5598_v1 }
 0xbb3   :  { %3034 = vmatpush1.bf16.msra.mxu0 %v4960_v40  ;;  %3075 = vmatpush1.bf16.msra.mxu1 %v4962_v41 }
 0xbb4   :  { %3035 = vmatprep.subr.bf16.mxu0 %v4968_v42  ;;  %3076 = vmatprep.subr.bf16.mxu1 %v4970_v43  ;;  %v2914_v43 = vunpack.c.h.bf16 %v5598_v1  ;;  %v5414_v1 = vld [vmem:[#allocation11 + $0x40] ss:$16 sps:$4 sm:$0xff]  }
 0xbb7   :  { %3036 = vmatpush1.bf16.msra.mxu0 %v4972_v45  ;;  %3077 = vmatpush1.bf16.msra.mxu1 %v4974_v46 }
 0xbb8   :  { %3037 = vmatprep.subr.bf16.mxu0 %v4980_v62  ;;  %3078 = vmatprep.subr.bf16.mxu1 %v4982_v47  ;;  %v5599_v47 = vld [vmem:[#allocation16_spill] sm:$0xff] }
 0xbbb   :  { %3038 = vmatpush1.bf16.msra.mxu0 %v4984_v48  ;;  %3079 = vmatpush1.bf16.msra.mxu1 %v4986_v50  ;;  %v2915_v48 = vunpack.c.l.bf16 %v5599_v47 }
 0xbbc   :  { %3039 = vmatprep.subr.bf16.mxu0 %v4992_v31  ;;  %3080 = vmatprep.subr.bf16.mxu1 %v4994_v2 }
 0xbbf   :  { %3040 = vmatpush1.bf16.msra.mxu0 %v4996_v56  ;;  %3081 = vmatpush1.bf16.msra.mxu1 %v4998_v3 }
 0xbc0   :  { %3041 = vmatprep.subr.bf16.mxu0 %v5004_v57  ;;  %3082 = vmatprep.subr.bf16.mxu1 %v5006_v7 }
 0xbc3   :  { %3042 = vmatpush1.bf16.msra.mxu0 %v5008_v13  ;;  %3083 = vmatpush1.bf16.msra.mxu1 %v5010_v36  ;;  %v2916_v13 = vunpack.c.h.bf16 %v5599_v47  ;;  %v5441_v47 = vld [vmem:[#allocation11 + $0x8] ss:$16 sps:$4 sm:$0xff]  }
 0xbc4   :  { %3043 = vmatprep.subr.bf16.mxu0 %v5016_v6  ;;  %3084 = vmatprep.subr.bf16.mxu1 %v5018_v49 }
 0xbc7   :  { %3044 = vmatpush1.bf16.msra.mxu0 %v5020_v51  ;;  %3085 = vmatpush1.bf16.msra.mxu1 %v5022_v52 }
 0xbc8   :  { %3045 = vmatprep.subr.bf16.mxu0 %v5028_v54  ;;  %3086 = vmatprep.subr.bf16.mxu1 %v5030_v63 }
 0xbcb   :  { %3046 = vmatpush1.bf16.msra.mxu0 %v5032_v55  ;;  %3087 = vmatpush1.bf16.msra.mxu1 %v5034_v58 }
 0xbcc   :  { %3144 = vmatprep.subr.bf16.mxu0 %v5338_v23  ;;  %3185 = vmatprep.subr.bf16.mxu1 %v5341_v29 }
 0xc6e   :  { %v2952_v40 = vpop.f32.mrf.mxu0  ;;  %v2993_v41 = vpop.f32.mrf.mxu1 }
 0xc6f   :  { %v3000_v42 = vadd.f32 %v2952_v40, %v2913_v34  ;;  %v3002_v56 = vadd.f32 %v2993_v41, %v2915_v48  ;;  %v5417_v34 = vld [vmem:[#allocation11 + $0x48] ss:$16 sps:$4 sm:$0xff]   ;;  %v5420_v40 = vld [vmem:[#allocation11 + $0x24] ss:$16 sps:$4 sm:$0xff]   ;;  %v5423_v41 = vld [vmem:[#allocation11 + $0x2c] ss:$16 sps:$4 sm:$0xff]  }
 0xc70   :  { %v2954_v45 = vpop.f32.mrf.mxu0  ;;  %v2995_v46 = vpop.f32.mrf.mxu1  ;;  %v5600_v48 = vld [vmem:[#allocation24_spill] sm:$0xff] }
 0xc71   :  { %v3004_v62 = vmul.f32 0.5, %v3000_v42  ;;  %v3001_v50 = vadd.f32 %v2954_v45, %v2914_v43  ;;  %v3003_v36 = vadd.f32 %v2995_v46, %v2916_v13  ;;  %v5426_v42 = vld [vmem:[#allocation11 + $0x20] ss:$16 sps:$4 sm:$0xff]   ;;  %v5429_v43 = vld [vmem:[#allocation11 + $0x28] ss:$16 sps:$4 sm:$0xff]  }
 0xc72   :  { %v2956_v31 = vpop.f32.mrf.mxu0  ;;  %v2997_v2 = vpop.f32.mrf.mxu1  ;;  %v5432_v45 = vld [vmem:[#allocation11 + $0x4] ss:$16 sps:$4 sm:$0xff]   ;;  %v5435_v46 = vld [vmem:[#allocation11 + $0xc] ss:$16 sps:$4 sm:$0xff]  }
 0xc73   :  { %4064 = vtanh.f32 %v3004_v62  ;;  %v3008_v3 = vmul.f32 0.5, %v3001_v50  ;;  %v3013_v6 = vmul.f32 0.5, %v3003_v36  ;;  %v5438_v62 = vld [vmem:[#allocation11] ss:$16 sps:$4 sm:$0xff]   ;;  %v2098_v50 = vadd.f32 %v5600_v48, %v5068_v17  ;;  %v5601_v31 = vld [vmem:[#allocation17_spill] sm:$0xff]  ;;  %v5605_v36 = vld [vmem:[#allocation23_spill] sm:$0xff] }
 0xc74   :  { %v2957_v57 = vpop.f32.mrf.mxu0  ;;  %v2998_v7 = vpop.f32.mrf.mxu1  ;;  %v5602_v2 = vld [vmem:[#allocation22_spill] sm:$0xff] }
 0xc75   :  { %4066 = vtanh.f32 %v3008_v3  ;;  %v5603_v57 = vld [vmem:[#allocation25_spill] sm:$0xff]  ;;  %v5604_v13 = vld [vmem:[#allocation18_spill] sm:$0xff] }
 0xc76   :  { %4068 = vtanh.f32 %v3002_v56  ;;  %v2096_v56 = vadd.f32 %v5602_v2, %v5601_v31  ;;  %v2171_v7 = vadd.f32 %v5603_v57, %v5072_v0 }
 0xc77   :  { %4070 = vtanh.f32 %v3013_v6  ;;  %v2169_v6 = vadd.f32 %v5605_v36, %v5604_v13 }
 0xc78   :  { %v3695_v3 = vpack.c.bf16 %v2098_v50, %v2096_v56 }
 0xc80   :  { %v4065_v49 = vpop.eup %4064 }
 0xc81   :  { %v3006_v51 = vmul.f32 0.5, %v4065_v49  ;;  %v3696_v49 = vpack.c.bf16 %v2171_v7, %v2169_v6 }
 0xc82   :  { %v4067_v52 = vpop.eup %4066 }
 0xc83   :  { %v3007_v54 = vadd.f32 0.5, %v3006_v51  ;;  %v3010_v63 = vmul.f32 0.5, %v4067_v52  ;;  %v4069_v55 = vpop.eup %4068  ;;  %v3026_v51 = vunpack.c.l.bf16 %v3695_v3  ;;  %v3028_v17 = vunpack.c.l.bf16 %v3696_v49 }
 0xc84   :  { %v4071_v18 = vpop.eup %4070 }
 0xc85   :  { %v3011_v58 = vadd.f32 0.5, %v3010_v63  ;;  %v3018_v60 = vmul.f32 %v4069_v55, %v3007_v54  ;;  %v3015_v26 = vmul.f32 0.5, %v4071_v18  ;;  %v3027_v63 = vunpack.c.h.bf16 %v3695_v3 }
 0xc87   :  { %v3017_v16 = vmul.f32 %v3011_v58, %v5303_v11  ;;  %v3016_v39 = vadd.f32 0.5, %v3015_v26  ;;  %v5393_v11 = vld [vmem:[#allocation11 + $0x88] ss:$16 sps:$4 sm:$0xff]  }
 0xc89   :  { %v5349_v33 = vadd.f32 %v3018_v60, %v3017_v16 }
 0xc8b   :  { %4072 = vtanh.f32 %v5349_v33 }
 0xc98   :  { %v4073_v37 = vpop.eup %4072 }
 0xc99   :  { %v3021_v19 = vmul.f32 %v4073_v37, %v3016_v39 }
 0xc9b   :  { %v3030_v32 = vpack.c.bf16 %v3021_v19, %v3021_v19  ;;  %v3029_v19 = vunpack.c.h.bf16 %v3696_v49 }
 0xc9d   :  { %3064 = vmatmul.mubr.bf16.vlgmr.msra.gmra.mxu0 %v3030_v32  ;;  %3105 = vmatmul.mubr.bf16.vlgmr.msra.gmra.mxu1 %v3030_v32 }
 0xc9e   :  { %3145 = vmatpush1.bf16.msra.mxu0 %v5352_v22  ;;  %3186 = vmatpush1.bf16.msra.mxu1 %v5355_v24 }
 0xc9f   :  { %3146 = vmatprep.subr.bf16.mxu0 %v5358_v61  ;;  %3187 = vmatprep.subr.bf16.mxu1 %v5361_v44 }
 0xca0   :  { %3176 = vmatprep.mubr.bf16.mxu0 %v5572_v12  ;;  %3217 = vmatprep.mubr.bf16.mxu1 %v5572_v12 }
 0xca2   :  { %3147 = vmatpush1.bf16.msra.mxu0 %v5366_v59  ;;  %3188 = vmatpush1.bf16.msra.mxu1 %v5369_v8 }
 0xca3   :  { %3148 = vmatprep.subr.bf16.mxu0 %v5372_v9  ;;  %3189 = vmatprep.subr.bf16.mxu1 %v5375_v14 }
 0xca6   :  { %3149 = vmatpush1.bf16.msra.mxu0 %v5378_v35  ;;  %3190 = vmatpush1.bf16.msra.mxu1 %v5381_v5 }
 0xca7   :  { %3150 = vmatprep.subr.bf16.mxu0 %v5384_v4  ;;  %3191 = vmatprep.subr.bf16.mxu1 %v5387_v20 }
 0xcaa   :  { %3151 = vmatpush1.bf16.msra.mxu0 %v5390_v38  ;;  %3192 = vmatpush1.bf16.msra.mxu1 %v5393_v11 }
 0xcab   :  { %3152 = vmatprep.subr.bf16.mxu0 %v5396_v10  ;;  %3193 = vmatprep.subr.bf16.mxu1 %v5399_v15 }
 0xcae   :  { %3153 = vmatpush1.bf16.msra.mxu0 %v5402_v27  ;;  %3194 = vmatpush1.bf16.msra.mxu1 %v5405_v53 }
 0xcaf   :  { %3154 = vmatprep.subr.bf16.mxu0 %v5408_v30  ;;  %3195 = vmatprep.subr.bf16.mxu1 %v5411_v25 }
 0xcb2   :  { %3155 = vmatpush1.bf16.msra.mxu0 %v5414_v1  ;;  %3196 = vmatpush1.bf16.msra.mxu1 %v5417_v34 }
 0xcb3   :  { %3156 = vmatprep.subr.bf16.mxu0 %v5420_v40  ;;  %3197 = vmatprep.subr.bf16.mxu1 %v5423_v41 }
 0xcb6   :  { %3157 = vmatpush1.bf16.msra.mxu0 %v5426_v42  ;;  %3198 = vmatpush1.bf16.msra.mxu1 %v5429_v43 }
 0xcb7   :  { %3158 = vmatprep.subr.bf16.mxu0 %v5432_v45  ;;  %3199 = vmatprep.subr.bf16.mxu1 %v5435_v46 }
 0xcba   :  { %3159 = vmatpush1.bf16.msra.mxu0 %v5438_v62  ;;  %3200 = vmatpush1.bf16.msra.mxu1 %v5441_v47 }
 0xcbb   :  { %3257 = vmatprep.subr.bf16.mxu0 %v5338_v23  ;;  %3298 = vmatprep.subr.bf16.mxu1 %v5341_v29 }
 0xd5d   :  { %v3065_v52 = vpop.f32.mrf.mxu0  ;;  %v3106_v54 = vpop.f32.mrf.mxu1 }
 0xd5e   :  { %v3113_v23 = vadd.f32 %v3065_v52, %v3026_v51  ;;  %v3115_v26 = vadd.f32 %v3106_v54, %v3028_v17 }
 0xd5f   :  { %v3067_v29 = vpop.f32.mrf.mxu0  ;;  %v3108_v55 = vpop.f32.mrf.mxu1 }
 0xd60   :  { %v3117_v58 = vmul.f32 0.5, %v3113_v23  ;;  %v3114_v60 = vadd.f32 %v3067_v29, %v3027_v63  ;;  %v3116_v32 = vadd.f32 %v3108_v55, %v3029_v19  ;;  %v3941_v19 = vld [vmem:[%s5540_s7 + $0x10] sm:$0xff]  }
 0xd61   :  { %v3069_v16 = vpop.f32.mrf.mxu0  ;;  %v3110_v18 = vpop.f32.mrf.mxu1 }
 0xd62   :  { %4074 = vtanh.f32 %v3117_v58  ;;  %v3121_v39 = vmul.f32 0.5, %v3114_v60  ;;  %v3126_v48 = vmul.f32 0.5, %v3116_v32  ;;  %v3936_v16 = vld [vmem:[%s5540_s7 + $0x38] sm:$0xff]   ;;  %v4262_v18 = vmov 0.0   ;;  %v3942_v32 = vld [vmem:[%s5540_s7 + $0x8] sm:$0xff]  }
 0xd63   :  { %v3070_v0 = vpop.f32.mrf.mxu0  ;;  %v3111_v37 = vpop.f32.mrf.mxu1 }
 0xd64   :  { %4076 = vtanh.f32 %v3121_v39  ;;  %v3938_v39 = vld [vmem:[%s5540_s7 + $0x28] sm:$0xff]   ;;  %v3939_v0 = vld [vmem:[%s5540_s7 + $0x20] sm:$0xff]   ;;  %v3940_v37 = vld [vmem:[%s5540_s7 + $0x18] sm:$0xff]  }
 0xd65   :  { %4078 = vtanh.f32 %v3115_v26  ;;  %v3937_v26 = vld [vmem:[%s5540_s7 + $0x30] sm:$0xff]  }
 0xd66   :  { %4080 = vtanh.f32 %v3126_v48  ;;  %v3943_v48 = vld [vmem:[%s5540_s7] sm:$0xff]  }
 0xd6f   :  { %v4075_v50 = vpop.eup %4074 }
 0xd70   :  { %v3119_v31 = vmul.f32 0.5, %v4075_v50  ;;  %v3252_v50 = vunpack.c.l.bf16 %v5173_v28 }
 0xd71   :  { %v4077_v2 = vpop.eup %4076 }
 0xd72   :  { %v3120_v56 = vadd.f32 0.5, %v3119_v31  ;;  %v3123_v3 = vmul.f32 0.5, %v4077_v2  ;;  %v4079_v57 = vpop.eup %4078 }
 0xd73   :  { %v4081_v51 = vpop.eup %4080 }
 0xd74   :  { %v3124_v7 = vadd.f32 0.5, %v3123_v3  ;;  %v3131_v13 = vmul.f32 %v4079_v57, %v3120_v56  ;;  %v3128_v52 = vmul.f32 0.5, %v4081_v51  ;;  %v3253_v3 = vunpack.c.h.bf16 %v5173_v28 }
 0xd76   :  { %v3130_v36 = vmul.f32 %v3124_v7, %v5349_v33  ;;  %v3129_v49 = vadd.f32 0.5, %v3128_v52 }
 0xd78   :  { %v5455_v6 = vadd.f32 %v3131_v13, %v3130_v36  ;;  %v3254_v36 = vunpack.c.l.bf16 %v5175_v21 }
 0xd7a   :  { %4082 = vtanh.f32 %v5455_v6 }
 0xd87   :  { %v4083_v54 = vpop.eup %4082 }
 0xd88   :  { %v3134_v23 = vmul.f32 %v4083_v54, %v3129_v49 }
 0xd8a   :  { %v3143_v63 = vpack.c.bf16 %v3134_v23, %v3134_v23 }
 0xd8c   :  { %3177 = vmatmul.mubr.bf16.vlgmr.msra.gmra.mxu0 %v3143_v63  ;;  %3218 = vmatmul.mubr.bf16.vlgmr.msra.gmra.mxu1 %v3143_v63 }
 0xd8d   :  { %3258 = vmatpush1.bf16.msra.mxu0 %v5352_v22  ;;  %3299 = vmatpush1.bf16.msra.mxu1 %v5355_v24 }
 0xd8e   :  { %3259 = vmatprep.subr.bf16.mxu0 %v5358_v61  ;;  %3300 = vmatprep.subr.bf16.mxu1 %v5361_v44 }
 0xd8f   :  { %3289 = vmatprep.mubr.bf16.mxu0 %v5572_v12  ;;  %3330 = vmatprep.mubr.bf16.mxu1 %v5572_v12  ;;  %v5606_v12 = vld [vmem:[#allocation26_spill] sm:$0xff] }
 0xd90   :  { %v3139_v33 = vunpack.c.l.bf16 %v5606_v12  ;;  %v3140_v44 = vunpack.c.h.bf16 %v5606_v12  ;;  %v3255_v12 = vunpack.c.h.bf16 %v5175_v21 }
 0xd91   :  { %3260 = vmatpush1.bf16.msra.mxu0 %v5366_v59  ;;  %3301 = vmatpush1.bf16.msra.mxu1 %v5369_v8 }
 0xd92   :  { %3261 = vmatprep.subr.bf16.mxu0 %v5372_v9  ;;  %3302 = vmatprep.subr.bf16.mxu1 %v5375_v14  ;;  %v5607_v14 = vld [vmem:[#allocation27_spill] sm:$0xff] }
 0xd95   :  { %3262 = vmatpush1.bf16.msra.mxu0 %v5378_v35  ;;  %3303 = vmatpush1.bf16.msra.mxu1 %v5381_v5  ;;  %v3141_v35 = vunpack.c.l.bf16 %v5607_v14 }
 0xd96   :  { %3263 = vmatprep.subr.bf16.mxu0 %v5384_v4  ;;  %3304 = vmatprep.subr.bf16.mxu1 %v5387_v20 }
 0xd99   :  { %3264 = vmatpush1.bf16.msra.mxu0 %v5390_v38  ;;  %3305 = vmatpush1.bf16.msra.mxu1 %v5393_v11 }
 0xd9a   :  { %3265 = vmatprep.subr.bf16.mxu0 %v5396_v10  ;;  %3306 = vmatprep.subr.bf16.mxu1 %v5399_v15 }
 0xd9d   :  { %3266 = vmatpush1.bf16.msra.mxu0 %v5402_v27  ;;  %3307 = vmatpush1.bf16.msra.mxu1 %v5405_v53  ;;  %v3142_v27 = vunpack.c.h.bf16 %v5607_v14 }
 0xd9e   :  { %3267 = vmatprep.subr.bf16.mxu0 %v5408_v30  ;;  %3308 = vmatprep.subr.bf16.mxu1 %v5411_v25 }
 0xda1   :  { %3268 = vmatpush1.bf16.msra.mxu0 %v5414_v1  ;;  %3309 = vmatpush1.bf16.msra.mxu1 %v5417_v34 }
 0xda2   :  { %3269 = vmatprep.subr.bf16.mxu0 %v5420_v40  ;;  %3310 = vmatprep.subr.bf16.mxu1 %v5423_v41 }
 0xda5   :  { %3270 = vmatpush1.bf16.msra.mxu0 %v5426_v42  ;;  %3311 = vmatpush1.bf16.msra.mxu1 %v5429_v43 }
 0xda6   :  { %3271 = vmatprep.subr.bf16.mxu0 %v5432_v45  ;;  %3312 = vmatprep.subr.bf16.mxu1 %v5435_v46 }
 0xda9   :  { %3272 = vmatpush1.bf16.msra.mxu0 %v5438_v62  ;;  %3313 = vmatpush1.bf16.msra.mxu1 %v5441_v47 }
 0xdaa   :  { %3710 = vmatprep.subr.bf16.mxu0 %v4262_v18 }
 0xe4c   :  { %v3178_v22 = vpop.f32.mrf.mxu0  ;;  %v3219_v24 = vpop.f32.mrf.mxu1 }
 0xe4d   :  { %v3226_v61 = vadd.f32 %v3178_v22, %v3139_v33  ;;  %v3228_v38 = vadd.f32 %v3219_v24, %v3141_v35 }
 0xe4e   :  { %v3180_v59 = vpop.f32.mrf.mxu0  ;;  %v3221_v8 = vpop.f32.mrf.mxu1 }
 0xe4f   :  { %v3230_v9 = vmul.f32 0.5, %v3226_v61  ;;  %v3227_v5 = vadd.f32 %v3180_v59, %v3140_v44  ;;  %v3229_v53 = vadd.f32 %v3221_v8, %v3142_v27 }
 0xe50   :  { %v3182_v4 = vpop.f32.mrf.mxu0  ;;  %v3223_v20 = vpop.f32.mrf.mxu1 }
 0xe51   :  { %4084 = vtanh.f32 %v3230_v9  ;;  %v3234_v11 = vmul.f32 0.5, %v3227_v5  ;;  %v3239_v30 = vmul.f32 0.5, %v3229_v53 }
 0xe52   :  { %v3183_v10 = vpop.f32.mrf.mxu0  ;;  %v3224_v15 = vpop.f32.mrf.mxu1 }
 0xe53   :  { %4086 = vtanh.f32 %v3234_v11  ;;  %v3660_v15 = vld [vmem:[%s5541_s8] ss:$0 sm:$0xff] }
 0xe54   :  { %4088 = vtanh.f32 %v3228_v38 }
 0xe55   :  { %4090 = vtanh.f32 %v3239_v30 }
 0xe5e   :  { %v4085_v25 = vpop.eup %4084 }
 0xe5f   :  { %v3232_v1 = vmul.f32 0.5, %v4085_v25 }
 0xe60   :  { %v4087_v34 = vpop.eup %4086 }
 0xe61   :  { %v3233_v40 = vadd.f32 0.5, %v3232_v1  ;;  %v3236_v41 = vmul.f32 0.5, %v4087_v34  ;;  %v4089_v42 = vpop.eup %4088 }
 0xe62   :  { %v4091_v47 = vpop.eup %4090 }
 0xe63   :  { %v3237_v43 = vadd.f32 0.5, %v3236_v41  ;;  %v3244_v45 = vmul.f32 %v4089_v42, %v3233_v40  ;;  %v3241_v29 = vmul.f32 0.5, %v4091_v47 }
 0xe65   :  { %v3243_v46 = vmul.f32 %v3237_v43, %v5455_v6  ;;  %v3242_v55 = vadd.f32 0.5, %v3241_v29 }
 0xe67   :  { %v5495_v62 = vadd.f32 %v3244_v45, %v3243_v46 }
 0xe69   :  { %4092 = vtanh.f32 %v5495_v62 }
 0xe76   :  { %v4093_v58 = vpop.eup %4092 }
 0xe77   :  { %v3247_v17 = vmul.f32 %v4093_v58, %v3242_v55 }
 0xe79   :  { %v3256_v60 = vpack.c.bf16 %v3247_v17, %v3247_v17 }
 0xe7b   :  { %3290 = vmatmul.mubr.bf16.vlgmr.msra.gmra.mxu0 %v3256_v60  ;;  %3331 = vmatmul.mubr.bf16.vlgmr.msra.gmra.mxu1 %v3256_v60 }
 0xe7c   :  { %3711 = vmatpush3.bf16.msra.mxu0 %v3936_v16  ;;  %3726 = vmatprep.mubr.msk.bf16.mxu0 %vm4263_vm0, %v4262_v18 }
 0xe7d   :  { %3712 = vmatprep.subr.bf16.mxu0 %v4262_v18 }
 0xe80   :  { %3713 = vmatpush3.bf16.msra.mxu0 %v3937_v26 }
 0xe81   :  { %3714 = vmatprep.subr.bf16.mxu0 %v4262_v18 }
 0xe84   :  { %3715 = vmatpush3.bf16.msra.mxu0 %v3938_v39 }
 0xe85   :  { %3716 = vmatprep.subr.bf16.mxu0 %v4262_v18 }
 0xe88   :  { %3717 = vmatpush3.bf16.msra.mxu0 %v3939_v0 }
 0xe89   :  { %3718 = vmatprep.subr.bf16.mxu0 %v4262_v18 }
 0xe8c   :  { %3719 = vmatpush3.bf16.msra.mxu0 %v3940_v37 }
 0xe8d   :  { %3720 = vmatprep.subr.bf16.mxu0 %v4262_v18 }
 0xe90   :  { %3721 = vmatpush3.bf16.msra.mxu0 %v3941_v19 }
 0xe91   :  { %3722 = vmatprep.subr.bf16.mxu0 %v4262_v18 }
 0xe94   :  { %3723 = vmatpush3.bf16.msra.mxu0 %v3942_v32 }
 0xe95   :  { %3724 = vmatprep.subr.bf16.mxu0 %v4262_v18 }
 0xe98   :  { %3725 = vmatpush3.bf16.msra.mxu0 %v3943_v48 }
 0xf3b   :  { %v3291_v31 = vpop.f32.mrf.mxu0  ;;  %v3332_v2 = vpop.f32.mrf.mxu1 }
 0xf3c   :  { %v3339_v56 = vadd.f32 %v3291_v31, %v3252_v50  ;;  %v3341_v49 = vadd.f32 %v3332_v2, %v3254_v36 }
 0xf3d   :  { %v3293_v57 = vpop.f32.mrf.mxu0  ;;  %v3334_v7 = vpop.f32.mrf.mxu1 }
 0xf3e   :  { %v3343_v13 = vmul.f32 0.5, %v3339_v56  ;;  %v3340_v6 = vadd.f32 %v3293_v57, %v3253_v3  ;;  %v3342_v33 = vadd.f32 %v3334_v7, %v3255_v12 }
 0xf3f   :  { %v3295_v51 = vpop.f32.mrf.mxu0  ;;  %v3336_v52 = vpop.f32.mrf.mxu1 }
 0xf40   :  { %4094 = vtanh.f32 %v3343_v13  ;;  %v3347_v54 = vmul.f32 0.5, %v3340_v6  ;;  %v3352_v22 = vmul.f32 0.5, %v3342_v33 }
 0xf41   :  { %v3296_v23 = vpop.f32.mrf.mxu0  ;;  %v3337_v63 = vpop.f32.mrf.mxu1 }
 0xf42   :  { %4096 = vtanh.f32 %v3347_v54 }
 0xf43   :  { %4098 = vtanh.f32 %v3341_v49 }
 0xf44   :  { %4100 = vtanh.f32 %v3352_v22 }
 0xf4d   :  { %v4095_v28 = vpop.eup %4094 }
 0xf4e   :  { %v3345_v24 = vmul.f32 0.5, %v4095_v28 }
 0xf4f   :  { %v4097_v61 = vpop.eup %4096 }
 0xf50   :  { %v3346_v44 = vadd.f32 0.5, %v3345_v24  ;;  %v3349_v59 = vmul.f32 0.5, %v4097_v61  ;;  %v4099_v8 = vpop.eup %4098 }
 0xf51   :  { %v4101_v4 = vpop.eup %4100 }
 0xf52   :  { %v3350_v9 = vadd.f32 0.5, %v3349_v59  ;;  %v3357_v14 = vmul.f32 %v4099_v8, %v3346_v44  ;;  %v3354_v20 = vmul.f32 0.5, %v4101_v4 }
 0xf54   :  { %v3356_v35 = vmul.f32 %v3350_v9, %v5495_v62  ;;  %v3355_v38 = vadd.f32 0.5, %v3354_v20 }
 0xf56   :  { %v3358_v5 = vadd.f32 %v3357_v14, %v3356_v35 }
 0xf58   :  { %4102 = vtanh.f32 %v3358_v5 }
 0xf65   :  { %v4103_v11 = vpop.eup %4102 }
 0xf66   :  { %v3360_v21 = vmul.f32 %v4103_v11, %v3355_v38 }
 0xf68   :  { %v3369_v10 = vpack.c.bf16 %v3360_v21, %v3360_v21 }
 0xf6a   :  { %3727 = vmatmul.mubr.bf16.vlgmr.msra.gmra.mxu0 %v3369_v10 }
0x102a   :  { %v3475_v27 = vpop.f32.mrf.mxu0 }
0x102b   :  { %v3476_v53 = vadd.f32 %v3660_v15, %v3475_v27 }
0x102c   :  { %v3728_v30 = vpop.f32.mrf.mxu0 }
0x102d   :  { %3481 = vst [vmem:[%s5542_s9] sm:$0xff] %v3476_v53 }
0x102e   :  { %v3478_v25 = vpop.f32.mrf.mxu0 }
0x1030   :  { %v3729_v1 = vpop.f32.mrf.mxu0 }
0x1031   :  { %3486 = vsyncpa [#allocation7], 1 }
0x1032   :  { %3487 = vsyncpa [#allocation9], 1 }
0x1033   :  { %3488 = vsyncpa [#allocation12], 1 }

</bundles_post_ra>
